<compile_context>
chip_gen: v6e
topology: v6e:2x2x1
jax: 0.10.0
libtpu: 0.0.40
codegen_flags: <defaults>
</compile_context>

<pallas_src>
import jax
import jax.numpy as jnp
from jax.experimental import pallas as pl
from jax.experimental.pallas import tpu as pltpu


def fire_kernel(x_ref, wsq_ref, bsq_ref, we1_ref, be1_ref, we3_ref, be3_ref,
                out_ref, spad_ref):
    # x_ref    : (1, H, W, Cin)         input image (any float dtype; cast in-kernel)
    # wsq_ref  : (Cin, Csq)      bf16
    # bsq_ref  : (1, Csq)        f32
    # we1_ref  : (Csq, Ce1)      bf16
    # be1_ref  : (1, Ce1)        f32
    # we3_ref  : (9*Csq, Ce3)    bf16   rows ordered (dy, dx, csq)
    # out_ref  : (1, TH*W, Cout) bf16   lane-dense row tile (same order as NHWC)
    # spad_ref : (Hp+2, W+2, Csq) bf16  zero-padded squeeze activation (per image)
    H = x_ref.shape[1]
    W = x_ref.shape[2]
    Cin = x_ref.shape[3]
    Csq = wsq_ref.shape[1]
    Ce1 = we1_ref.shape[1]
    Ce3 = we3_ref.shape[1]
    Hp = spad_ref.shape[0] - 2
    TH = out_ref.shape[1] // W

    t = pl.program_id(1)

    # ---- squeeze 1x1 conv + ReLU, once per image, into padded scratch ----
    @pl.when(t == 0)
    def _():
        # Zero only the border strips (and the padded tail rows when Hp > H);
        # the interior is fully overwritten right below.
        spad_ref[0:1, :, :] = jnp.zeros((1, W + 2, Csq), spad_ref.dtype)
        spad_ref[H + 1:Hp + 2, :, :] = jnp.zeros((Hp + 1 - H, W + 2, Csq),
                                                 spad_ref.dtype)
        spad_ref[:, 0:1, :] = jnp.zeros((Hp + 2, 1, Csq), spad_ref.dtype)
        spad_ref[:, W + 1:W + 2, :] = jnp.zeros((Hp + 2, 1, Csq), spad_ref.dtype)

        x2d = x_ref[0].reshape(H * W, Cin).astype(jnp.bfloat16)     # cast in-kernel
        s = jnp.dot(x2d, wsq_ref[...], preferred_element_type=jnp.float32)
        s = jnp.maximum(s + bsq_ref[...], 0.0)                      # f32 epilogue
        # NOTE: squeeze activation stored in bf16 (quantized intermediate).
        spad_ref[1:H + 1, 1:W + 1, :] = s.reshape(H, W, Csq).astype(spad_ref.dtype)

    # ---- expand for this row tile: per-dy accumulated 3x3 + separate 1x1 ----
    r0 = pl.multiple_of(t * TH, 8)           # first padded scratch row of the halo

    acc3 = jnp.zeros((TH * W, Ce3), jnp.float32)
    e1 = None
    for dy in range(3):
        rows = spad_ref[pl.ds(r0 + dy, TH), :, :]            # (TH, W+2, Csq) bf16
        c0 = rows[:, 0:W, :]
        c1 = rows[:, 1:W + 1, :]
        c2 = rows[:, 2:W + 2, :]
        slab = jnp.concatenate([c0, c1, c2], axis=-1).reshape(TH * W, 3 * Csq)
        wdy = we3_ref[dy * 3 * Csq:(dy + 1) * 3 * Csq, :]     # (3*Csq, Ce3)
        acc3 = acc3 + jnp.dot(slab, wdy, preferred_element_type=jnp.float32)
        if dy == 1:
            # expand1x1 reuses the centre tap (no zero-padded fused weight).
            e1 = jnp.dot(c1.reshape(TH * W, Csq), we1_ref[...],
                         preferred_element_type=jnp.float32)

    e1 = jnp.maximum(e1 + be1_ref[...], 0.0).astype(out_ref.dtype)
    e3 = jnp.maximum(acc3 + be3_ref[...], 0.0).astype(out_ref.dtype)

    # Output arrives already channel-concatenated: e1 -> [0:Ce1], e3 -> [Ce1:].
    out_ref[0, :, 0:Ce1] = e1
    out_ref[0, :, Ce1:Ce1 + Ce3] = e3


def _choose_row_tile(H):
    """Largest sensible row tile (multiple of 8)."""
    hp8 = ((H + 7) // 8) * 8
    if hp8 <= 64:
        return hp8                    # whole image (plus <=7 pad rows), one tile
    for th in (64, 32, 16, 8):
        if 4 * ((-H) % th) <= H:      # accept <= 25% padded rows
            return th
    return 8


def pack_fire_params(params):
    """Pre-pack PyTorch-layout Fire params into kernel layout.

    Call once (per layer) and reuse across forward calls — hoists the
    transposes/reshapes/casts out of the per-call path.
    """
    w_sq, b_sq, w_e1, b_e1, w_e3, b_e3 = params
    Csq = w_sq.shape[0]
    Ce1 = w_e1.shape[0]
    Ce3 = w_e3.shape[0]
    wsq_m = jnp.transpose(w_sq[:, :, 0, 0], (1, 0)).astype(jnp.bfloat16)   # (Cin, Csq)
    we1_m = jnp.transpose(w_e1[:, :, 0, 0], (1, 0)).astype(jnp.bfloat16)   # (Csq, Ce1)
    we3_m = jnp.transpose(w_e3, (2, 3, 1, 0)).reshape(9 * Csq, Ce3).astype(jnp.bfloat16)
    bsq_m = b_sq.reshape(1, Csq).astype(jnp.float32)
    be1_m = b_e1.reshape(1, Ce1).astype(jnp.float32)
    be3_m = b_e3.reshape(1, Ce3).astype(jnp.float32)
    return (wsq_m, bsq_m, we1_m, be1_m, we3_m, be3_m)


def fire_forward_nhwc(x_nhwc, packed_params):
    """Fire forward on NHWC input (hot path). Returns (N, H, W, Ce1+Ce3) bf16."""
    wsq_m, bsq_m, we1_m, be1_m, we3_m, be3_m = packed_params
    N, H, W, Cin = x_nhwc.shape
    Csq = wsq_m.shape[1]
    Ce1 = we1_m.shape[1]
    Ce3 = we3_m.shape[1]
    Cout = Ce1 + Ce3

    TH = _choose_row_tile(H)
    T = -(-H // TH)
    Hp = T * TH

    w_bytes = sum(int(a.size) * a.dtype.itemsize for a in packed_params)
    flops = 2 * N * H * W * (Cin * Csq + Csq * Ce1 + 9 * Csq * Ce3)
    bytes_accessed = (int(x_nhwc.size) * x_nhwc.dtype.itemsize + w_bytes
                      + N * Hp * W * Cout * 2)

    # VMEM budget: double-buffered blocks + scratch + headroom for f32 temps,
    # capped at 75% of physical VMEM (64 MiB on v7x, 128 MiB on v5e/v6e).
    est = (2 * (H * W * Cin * x_nhwc.dtype.itemsize + TH * W * Cout * 2)
           + 2 * w_bytes
           + (Hp + 2) * (W + 2) * Csq * 2
           + max(H * W * (4 * Csq + 2 * Cin), TH * W * (8 * Cout + 12 * Csq)))
    try:
        cap = int(0.75 * pltpu.get_tpu_info().vmem_capacity_bytes)
    except Exception:
        cap = 40 * 1024 * 1024
    vmem_limit = int(max(32 * 1024 * 1024, min(2 * est, cap)))

    out_flat = pl.pallas_call(
        fire_kernel,
        out_shape=jax.ShapeDtypeStruct((N, Hp * W, Cout), jnp.bfloat16),
        grid_spec=pltpu.PrefetchScalarGridSpec(
            num_scalar_prefetch=0,
            grid=(N, T),
            in_specs=[
                pl.BlockSpec((1, H, W, Cin), lambda n, t: (n, 0, 0, 0)),
                pl.BlockSpec((Cin, Csq), lambda n, t: (0, 0)),
                pl.BlockSpec((1, Csq), lambda n, t: (0, 0)),
                pl.BlockSpec((Csq, Ce1), lambda n, t: (0, 0)),
                pl.BlockSpec((1, Ce1), lambda n, t: (0, 0)),
                pl.BlockSpec((9 * Csq, Ce3), lambda n, t: (0, 0)),
                pl.BlockSpec((1, Ce3), lambda n, t: (0, 0)),
            ],
            out_specs=pl.BlockSpec((1, TH * W, Cout), lambda n, t: (n, t, 0)),
            scratch_shapes=[pltpu.VMEM((Hp + 2, W + 2, Csq), jnp.bfloat16)],
        ),
        compiler_params=pltpu.CompilerParams(
            dimension_semantics=("parallel", "arbitrary"),
            vmem_limit_bytes=vmem_limit),
        cost_estimate=pl.CostEstimate(flops=flops, transcendentals=0,
                                      bytes_accessed=int(bytes_accessed)),
    )(x_nhwc, wsq_m, bsq_m, we1_m, be1_m, we3_m, be3_m)

    out = out_flat.reshape(N, Hp, W, Cout)
    if Hp != H:
        out = out[:, :H]     # drop padded rows (no-op when H is tile-aligned)
    return out


def fire_forward(x_nchw, params):
    """PyTorch-parity entry: x (N, Cin, H, W) f32 -> (N, Ce1+Ce3, H, W) f32.

    For best performance keep the network NHWC/bf16 end-to-end, call
    pack_fire_params once, and use fire_forward_nhwc directly — the transposes
    here are HBM round trips.
    """
    packed = pack_fire_params(params)
    x_nhwc = jnp.transpose(x_nchw, (0, 2, 3, 1))
    out_nhwc = fire_forward_nhwc(x_nhwc, packed)
    return jnp.transpose(out_nhwc, (0, 3, 1, 2)).astype(jnp.float32)


def init_fire_params(key, inplanes, squeeze_planes, e1_planes, e3_planes):
    ks = jax.random.split(key, 6)
    scale = 0.1
    w_sq = scale * jax.random.normal(ks[0], (squeeze_planes, inplanes, 1, 1), jnp.float32)
    b_sq = scale * jax.random.normal(ks[1], (squeeze_planes,), jnp.float32)
    w_e1 = scale * jax.random.normal(ks[2], (e1_planes, squeeze_planes, 1, 1), jnp.float32)
    b_e1 = scale * jax.random.normal(ks[3], (e1_planes,), jnp.float32)
    w_e3 = scale * jax.random.normal(ks[4], (e3_planes, squeeze_planes, 3, 3), jnp.float32)
    b_e3 = scale * jax.random.normal(ks[5], (e3_planes,), jnp.float32)
    return (w_sq, b_sq, w_e1, b_e1, w_e3, b_e3)


def fire_reference(x_nchw, params):
    """Pure-JAX reference using lax convolutions (NCHW, like PyTorch)."""
    w_sq, b_sq, w_e1, b_e1, w_e3, b_e3 = params
    dn = jax.lax.conv_dimension_numbers(x_nchw.shape, w_sq.shape,
                                        ("NCHW", "OIHW", "NCHW"))
    prec = jax.lax.Precision.HIGHEST
    s = jax.lax.conv_general_dilated(x_nchw, w_sq, (1, 1), "VALID",
                                     dimension_numbers=dn, precision=prec)
    s = jax.nn.relu(s + b_sq[None, :, None, None])
    e1 = jax.lax.conv_general_dilated(s, w_e1, (1, 1), "VALID",
                                      dimension_numbers=dn, precision=prec)
    e1 = jax.nn.relu(e1 + b_e1[None, :, None, None])
    e3 = jax.lax.conv_general_dilated(s, w_e3, (1, 1), ((1, 1), (1, 1)),
                                      dimension_numbers=dn, precision=prec)
    e3 = jax.nn.relu(e3 + b_e3[None, :, None, None])
    return jnp.concatenate([e1, e3], axis=1)


def _run_case(key, N, Cin, H, W, Csq, Ce1, Ce3):
    kx, kp = jax.random.split(key)
    x = jax.random.normal(kx, (N, Cin, H, W), jnp.float32)
    params = init_fire_params(kp, Cin, Csq, Ce1, Ce3)

    # Pre-round to bf16-representable values so the bf16-operand kernel and the
    # f32 reference see identical inputs (isolates accumulation / bf16
    # intermediate+output quantization error only).
    x = x.astype(jnp.bfloat16).astype(jnp.float32)
    params = tuple(p.astype(jnp.bfloat16).astype(jnp.float32) for p in params)

    out = jax.block_until_ready(fire_forward(x, params))
    ref = fire_reference(x, params)

    assert out.shape == (N, Ce1 + Ce3, H, W), out.shape
    max_err = float(jnp.max(jnp.abs(out - ref)))
    assert jnp.allclose(out, ref, atol=2e-2, rtol=2e-2), \
        f"mismatch vs reference (H={H}, W={W}): {max_err}"
    return max_err


if __name__ == "__main__":
    key = jax.random.PRNGKey(0)
    k1, k2, k3 = jax.random.split(key, 3)

    # Primary small config: inplanes=16, squeeze=8, expand1x1=16, expand3x3=16.
    _run_case(k1, 2, 16, 16, 16, 8, 16, 16)   # tile-aligned spatial, T=1
    _run_case(k2, 1, 16, 13, 13, 8, 16, 16)   # SqueezeNet-like odd spatial (padded rows)
    _run_case(k3, 1, 8, 72, 8, 8, 16, 16)     # multi-row-tile path (T > 1)

    print("KERNEL_OK")
</pallas_src>

<mosaic_0001>
module attributes {stable_mosaic.version = 11 : i64} {
  func.func @fire_kernel(%arg0: i32, %arg1: i32, %arg2: memref<1x16x16x16xf32, #tpu.memory_space<vmem>>, %arg3: memref<16x8xbf16, #tpu.memory_space<vmem>>, %arg4: memref<1x8xf32, #tpu.memory_space<vmem>>, %arg5: memref<8x16xbf16, #tpu.memory_space<vmem>>, %arg6: memref<1x16xf32, #tpu.memory_space<vmem>>, %arg7: memref<72x16xbf16, #tpu.memory_space<vmem>>, %arg8: memref<1x16xf32, #tpu.memory_space<vmem>>, %arg9: memref<1x256x32xbf16, #tpu.memory_space<vmem>>, %arg10: memref<18x18x8xbf16, #tpu.memory_space<vmem>>) attributes {dimension_semantics = [#tpu.dimension_semantics<parallel>, #tpu.dimension_semantics<arbitrary>], iteration_bounds = array<i64: 2, 1>, scalar_prefetch = 0 : i64, scratch_operands = 1 : i64, tpu.core_type = #tpu.core_type<tc>, window_params = [{transform_indices = @transform_0, window_bounds = array<i64: 1, 16, 16, 16>}, {pipeline_mode = #tpu.pipeline_mode<synchronous>, transform_indices = @transform_1, window_bounds = array<i64: 16, 8>}, {pipeline_mode = #tpu.pipeline_mode<synchronous>, transform_indices = @transform_2, window_bounds = array<i64: 1, 8>}, {pipeline_mode = #tpu.pipeline_mode<synchronous>, transform_indices = @transform_3, window_bounds = array<i64: 8, 16>}, {pipeline_mode = #tpu.pipeline_mode<synchronous>, transform_indices = @transform_4, window_bounds = array<i64: 1, 16>}, {pipeline_mode = #tpu.pipeline_mode<synchronous>, transform_indices = @transform_5, window_bounds = array<i64: 72, 16>}, {pipeline_mode = #tpu.pipeline_mode<synchronous>, transform_indices = @transform_6, window_bounds = array<i64: 1, 16>}, {transform_indices = @transform_7, window_bounds = array<i64: 1, 256, 32>}]} {
    %c0_i32 = arith.constant 0 : i32
    %0 = arith.cmpi eq, %arg1, %c0_i32 : i32
    %1 = arith.extui %0 : i1 to i32
    %c0_i32_0 = arith.constant 0 : i32
    %2 = arith.cmpi ne, %1, %c0_i32_0 : i32
    scf.if %2 {
      %cst_28 = arith.constant 0.000000e+00 : bf16
      %60 = vector.broadcast %cst_28 : bf16 to vector<1x18x8xbf16>
      %c0_29 = arith.constant 0 : index
      %c0_30 = arith.constant 0 : index
      %c0_31 = arith.constant 0 : index
      %61 = vector.load %arg10[%c0_29, %c0_30, %c0_31] : memref<18x18x8xbf16, #tpu.memory_space<vmem>>, vector<1x18x8xbf16>
      tpu.vector_store %arg10[%c0_29, %c0_30, %c0_31], %60 {strides = array<i32>} : memref<18x18x8xbf16, #tpu.memory_space<vmem>>, vector<1x18x8xbf16>,
      %cst_32 = arith.constant 0.000000e+00 : bf16
      %62 = vector.broadcast %cst_32 : bf16 to vector<1x18x8xbf16>
      %c17 = arith.constant 17 : index
      %c0_33 = arith.constant 0 : index
      %c0_34 = arith.constant 0 : index
      %63 = vector.load %arg10[%c17, %c0_33, %c0_34] : memref<18x18x8xbf16, #tpu.memory_space<vmem>>, vector<1x18x8xbf16>
      tpu.vector_store %arg10[%c17, %c0_33, %c0_34], %62 {strides = array<i32>} : memref<18x18x8xbf16, #tpu.memory_space<vmem>>, vector<1x18x8xbf16>,
      %cst_35 = arith.constant 0.000000e+00 : bf16
      %64 = vector.broadcast %cst_35 : bf16 to vector<18x1x8xbf16>
      %c0_36 = arith.constant 0 : index
      %c0_37 = arith.constant 0 : index
      %c0_38 = arith.constant 0 : index
      %65 = vector.load %arg10[%c0_36, %c0_37, %c0_38] : memref<18x18x8xbf16, #tpu.memory_space<vmem>>, vector<18x1x8xbf16>
      tpu.vector_store %arg10[%c0_36, %c0_37, %c0_38], %64 {strides = array<i32>} : memref<18x18x8xbf16, #tpu.memory_space<vmem>>, vector<18x1x8xbf16>,
      %cst_39 = arith.constant 0.000000e+00 : bf16
      %66 = vector.broadcast %cst_39 : bf16 to vector<18x1x8xbf16>
      %c0_40 = arith.constant 0 : index
      %c17_41 = arith.constant 17 : index
      %c0_42 = arith.constant 0 : index
      %67 = vector.load %arg10[%c0_40, %c17_41, %c0_42] : memref<18x18x8xbf16, #tpu.memory_space<vmem>>, vector<18x1x8xbf16>
      tpu.vector_store %arg10[%c0_40, %c17_41, %c0_42], %66 {strides = array<i32>} : memref<18x18x8xbf16, #tpu.memory_space<vmem>>, vector<18x1x8xbf16>,
      %c0_43 = arith.constant 0 : index
      %c0_44 = arith.constant 0 : index
      %c0_45 = arith.constant 0 : index
      %c0_46 = arith.constant 0 : index
      %68 = vector.load %arg2[%c0_43, %c0_44, %c0_45, %c0_46] : memref<1x16x16x16xf32, #tpu.memory_space<vmem>>, vector<1x16x16x16xf32>
      %69 = vector.shape_cast %68 : vector<1x16x16x16xf32> to vector<16x16x16xf32>
      %70 = vector.shape_cast %69 : vector<16x16x16xf32> to vector<256x16xf32>
      %71 = arith.truncf %70 : vector<256x16xf32> to vector<256x16xbf16>
      %c0_47 = arith.constant 0 : index
      %c0_48 = arith.constant 0 : index
      %72 = vector.load %arg3[%c0_47, %c0_48] : memref<16x8xbf16, #tpu.memory_space<vmem>>, vector<16x8xbf16>
      %cst_49 = arith.constant dense<0.000000e+00> : vector<256x8xf32>
      %73 = tpu.matmul %71, %72, %cst_49 {dimension_numbers = #tpu.dot_dimension_numbers<[1], [0], [0], [1], [0, 0, 1, 1], [], []>} : vector<256x16xbf16>, vector<16x8xbf16>, vector<256x8xf32> -> vector<256x8xf32>
      %c0_50 = arith.constant 0 : index
      %c0_51 = arith.constant 0 : index
      %74 = vector.load %arg4[%c0_50, %c0_51] : memref<1x8xf32, #tpu.memory_space<vmem>>, vector<1x8xf32>
      %75 = vector.broadcast %74 : vector<1x8xf32> to vector<256x8xf32>
      %76 = arith.addf %73, %75 : vector<256x8xf32>
      %cst_52 = arith.constant 0.000000e+00 : f32
      %77 = vector.broadcast %cst_52 : f32 to vector<256x8xf32>
      %78 = arith.maximumf %76, %77 : vector<256x8xf32>
      %79 = vector.shape_cast %78 : vector<256x8xf32> to vector<16x16x8xf32>
      %80 = arith.truncf %79 : vector<16x16x8xf32> to vector<16x16x8xbf16>
      %c1 = arith.constant 1 : index
      %c1_53 = arith.constant 1 : index
      %c0_54 = arith.constant 0 : index
      %81 = vector.load %arg10[%c1, %c1_53, %c0_54] : memref<18x18x8xbf16, #tpu.memory_space<vmem>>, vector<16x16x8xbf16>
      tpu.vector_store %arg10[%c1, %c1_53, %c0_54], %80 {strides = array<i32>} : memref<18x18x8xbf16, #tpu.memory_space<vmem>>, vector<16x16x8xbf16>,
    } else {
    }
    %c16_i32 = arith.constant 16 : i32
    %3 = arith.muli %arg1, %c16_i32 : i32
    %4 = tpu.assume_multiple %3, 8 : i32
    %cst = arith.constant 0.000000e+00 : f32
    %5 = vector.broadcast %cst : f32 to vector<256x16xf32>
    %c0_i32_1 = arith.constant 0 : i32
    %6 = arith.addi %4, %c0_i32_1 : i32
    %7 = arith.index_cast %6 : i32 to index
    %c0 = arith.constant 0 : index
    %c0_2 = arith.constant 0 : index
    %8 = vector.load %arg10[%7, %c0, %c0_2] : memref<18x18x8xbf16, #tpu.memory_space<vmem>>, vector<16x18x8xbf16>
    %9 = vector.extract_strided_slice %8 {offsets = [0, 0, 0], sizes = [16, 16, 8], strides = [1, 1, 1]} : vector<16x18x8xbf16> to vector<16x16x8xbf16>
    %10 = vector.extract_strided_slice %8 {offsets = [0, 1, 0], sizes = [16, 16, 8], strides = [1, 1, 1]} : vector<16x18x8xbf16> to vector<16x16x8xbf16>
    %11 = vector.extract_strided_slice %8 {offsets = [0, 2, 0], sizes = [16, 16, 8], strides = [1, 1, 1]} : vector<16x18x8xbf16> to vector<16x16x8xbf16>
    %12 = tpu.concatenate %9, %10, %11 in 2 : vector<16x16x8xbf16>, vector<16x16x8xbf16>, vector<16x16x8xbf16> -> vector<16x16x24xbf16>
    %13 = vector.shape_cast %12 : vector<16x16x24xbf16> to vector<256x24xbf16>
    %c0_3 = arith.constant 0 : index
    %c0_4 = arith.constant 0 : index
    %14 = vector.load %arg7[%c0_3, %c0_4] : memref<72x16xbf16, #tpu.memory_space<vmem>>, vector<24x16xbf16>
    %cst_5 = arith.constant dense<0.000000e+00> : vector<256x16xf32>
    %15 = tpu.matmul %13, %14, %cst_5 {dimension_numbers = #tpu.dot_dimension_numbers<[1], [0], [0], [1], [0, 0, 1, 1], [], []>} : vector<256x24xbf16>, vector<24x16xbf16>, vector<256x16xf32> -> vector<256x16xf32>
    %16 = arith.addf %5, %15 : vector<256x16xf32>
    %c1_i32 = arith.constant 1 : i32
    %17 = arith.addi %4, %c1_i32 : i32
    %18 = arith.index_cast %17 : i32 to index
    %c0_6 = arith.constant 0 : index
    %c0_7 = arith.constant 0 : index
    %19 = vector.load %arg10[%18, %c0_6, %c0_7] : memref<18x18x8xbf16, #tpu.memory_space<vmem>>, vector<16x18x8xbf16>
    %20 = vector.extract_strided_slice %19 {offsets = [0, 0, 0], sizes = [16, 16, 8], strides = [1, 1, 1]} : vector<16x18x8xbf16> to vector<16x16x8xbf16>
    %21 = vector.extract_strided_slice %19 {offsets = [0, 1, 0], sizes = [16, 16, 8], strides = [1, 1, 1]} : vector<16x18x8xbf16> to vector<16x16x8xbf16>
    %22 = vector.extract_strided_slice %19 {offsets = [0, 2, 0], sizes = [16, 16, 8], strides = [1, 1, 1]} : vector<16x18x8xbf16> to vector<16x16x8xbf16>
    %23 = tpu.concatenate %20, %21, %22 in 2 : vector<16x16x8xbf16>, vector<16x16x8xbf16>, vector<16x16x8xbf16> -> vector<16x16x24xbf16>
    %24 = vector.shape_cast %23 : vector<16x16x24xbf16> to vector<256x24xbf16>
    %c24 = arith.constant 24 : index
    %c0_8 = arith.constant 0 : index
    %25 = vector.load %arg7[%c24, %c0_8] : memref<72x16xbf16, #tpu.memory_space<vmem>>, vector<24x16xbf16>
    %cst_9 = arith.constant dense<0.000000e+00> : vector<256x16xf32>
    %26 = tpu.matmul %24, %25, %cst_9 {dimension_numbers = #tpu.dot_dimension_numbers<[1], [0], [0], [1], [0, 0, 1, 1], [], []>} : vector<256x24xbf16>, vector<24x16xbf16>, vector<256x16xf32> -> vector<256x16xf32>
    %27 = arith.addf %16, %26 : vector<256x16xf32>
    %28 = vector.shape_cast %21 : vector<16x16x8xbf16> to vector<256x8xbf16>
    %c0_10 = arith.constant 0 : index
    %c0_11 = arith.constant 0 : index
    %29 = vector.load %arg5[%c0_10, %c0_11] : memref<8x16xbf16, #tpu.memory_space<vmem>>, vector<8x16xbf16>
    %cst_12 = arith.constant dense<0.000000e+00> : vector<256x16xf32>
    %30 = tpu.matmul %28, %29, %cst_12 {dimension_numbers = #tpu.dot_dimension_numbers<[1], [0], [0], [1], [0, 0, 1, 1], [], []>} : vector<256x8xbf16>, vector<8x16xbf16>, vector<256x16xf32> -> vector<256x16xf32>
    %c2_i32 = arith.constant 2 : i32
    %31 = arith.addi %4, %c2_i32 : i32
    %32 = arith.index_cast %31 : i32 to index
    %c0_13 = arith.constant 0 : index
    %c0_14 = arith.constant 0 : index
    %33 = vector.load %arg10[%32, %c0_13, %c0_14] : memref<18x18x8xbf16, #tpu.memory_space<vmem>>, vector<16x18x8xbf16>
    %34 = vector.extract_strided_slice %33 {offsets = [0, 0, 0], sizes = [16, 16, 8], strides = [1, 1, 1]} : vector<16x18x8xbf16> to vector<16x16x8xbf16>
    %35 = vector.extract_strided_slice %33 {offsets = [0, 1, 0], sizes = [16, 16, 8], strides = [1, 1, 1]} : vector<16x18x8xbf16> to vector<16x16x8xbf16>
    %36 = vector.extract_strided_slice %33 {offsets = [0, 2, 0], sizes = [16, 16, 8], strides = [1, 1, 1]} : vector<16x18x8xbf16> to vector<16x16x8xbf16>
    %37 = tpu.concatenate %34, %35, %36 in 2 : vector<16x16x8xbf16>, vector<16x16x8xbf16>, vector<16x16x8xbf16> -> vector<16x16x24xbf16>
    %38 = vector.shape_cast %37 : vector<16x16x24xbf16> to vector<256x24xbf16>
    %c48 = arith.constant 48 : index
    %c0_15 = arith.constant 0 : index
    %39 = vector.load %arg7[%c48, %c0_15] : memref<72x16xbf16, #tpu.memory_space<vmem>>, vector<24x16xbf16>
    %cst_16 = arith.constant dense<0.000000e+00> : vector<256x16xf32>
    %40 = tpu.matmul %38, %39, %cst_16 {dimension_numbers = #tpu.dot_dimension_numbers<[1], [0], [0], [1], [0, 0, 1, 1], [], []>} : vector<256x24xbf16>, vector<24x16xbf16>, vector<256x16xf32> -> vector<256x16xf32>
    %41 = arith.addf %27, %40 : vector<256x16xf32>
    %c0_17 = arith.constant 0 : index
    %c0_18 = arith.constant 0 : index
    %42 = vector.load %arg6[%c0_17, %c0_18] : memref<1x16xf32, #tpu.memory_space<vmem>>, vector<1x16xf32>
    %43 = vector.broadcast %42 : vector<1x16xf32> to vector<256x16xf32>
    %44 = arith.addf %30, %43 : vector<256x16xf32>
    %cst_19 = arith.constant 0.000000e+00 : f32
    %45 = vector.broadcast %cst_19 : f32 to vector<256x16xf32>
    %46 = arith.maximumf %44, %45 : vector<256x16xf32>
    %47 = arith.truncf %46 : vector<256x16xf32> to vector<256x16xbf16>
    %c0_20 = arith.constant 0 : index
    %c0_21 = arith.constant 0 : index
    %48 = vector.load %arg8[%c0_20, %c0_21] : memref<1x16xf32, #tpu.memory_space<vmem>>, vector<1x16xf32>
    %49 = vector.broadcast %48 : vector<1x16xf32> to vector<256x16xf32>
    %50 = arith.addf %41, %49 : vector<256x16xf32>
    %cst_22 = arith.constant 0.000000e+00 : f32
    %51 = vector.broadcast %cst_22 : f32 to vector<256x16xf32>
    %52 = arith.maximumf %50, %51 : vector<256x16xf32>
    %53 = arith.truncf %52 : vector<256x16xf32> to vector<256x16xbf16>
    %c0_23 = arith.constant 0 : index
    %c0_24 = arith.constant 0 : index
    %c0_25 = arith.constant 0 : index
    %54 = vector.load %arg9[%c0_23, %c0_24, %c0_25] : memref<1x256x32xbf16, #tpu.memory_space<vmem>>, vector<1x256x16xbf16>
    %55 = vector.shape_cast %54 : vector<1x256x16xbf16> to vector<256x16xbf16>
    %56 = vector.shape_cast %47 : vector<256x16xbf16> to vector<1x256x16xbf16>
    tpu.vector_store %arg9[%c0_23, %c0_24, %c0_25], %56 {strides = array<i32>} : memref<1x256x32xbf16, #tpu.memory_space<vmem>>, vector<1x256x16xbf16>,
    %c0_26 = arith.constant 0 : index
    %c0_27 = arith.constant 0 : index
    %c16 = arith.constant 16 : index
    %57 = vector.load %arg9[%c0_26, %c0_27, %c16] : memref<1x256x32xbf16, #tpu.memory_space<vmem>>, vector<1x256x16xbf16>
    %58 = vector.shape_cast %57 : vector<1x256x16xbf16> to vector<256x16xbf16>
    %59 = vector.shape_cast %53 : vector<256x16xbf16> to vector<1x256x16xbf16>
    tpu.vector_store %arg9[%c0_26, %c0_27, %c16], %59 {strides = array<i32>} : memref<1x256x32xbf16, #tpu.memory_space<vmem>>, vector<1x256x16xbf16>,
    return
  }
  func.func @transform_0(%arg0: i32, %arg1: i32) -> (i32, i32, i32, i32) {
    %c0_i32 = arith.constant 0 : i32
    %c0_i32_0 = arith.constant 0 : i32
    %c0_i32_1 = arith.constant 0 : i32
    %c0_i32_2 = arith.constant 0 : i32
    return %arg0, %c0_i32, %c0_i32_0, %c0_i32_1 : i32, i32, i32, i32
  }
  func.func @transform_1(%arg0: i32, %arg1: i32) -> (i32, i32) {
    %c0_i32 = arith.constant 0 : i32
    %c0_i32_0 = arith.constant 0 : i32
    %c0_i32_1 = arith.constant 0 : i32
    return %c0_i32, %c0_i32_0 : i32, i32
  }
  func.func @transform_2(%arg0: i32, %arg1: i32) -> (i32, i32) {
    %c0_i32 = arith.constant 0 : i32
    %c0_i32_0 = arith.constant 0 : i32
    %c0_i32_1 = arith.constant 0 : i32
    return %c0_i32, %c0_i32_0 : i32, i32
  }
  func.func @transform_3(%arg0: i32, %arg1: i32) -> (i32, i32) {
    %c0_i32 = arith.constant 0 : i32
    %c0_i32_0 = arith.constant 0 : i32
    %c0_i32_1 = arith.constant 0 : i32
    return %c0_i32, %c0_i32_0 : i32, i32
  }
  func.func @transform_4(%arg0: i32, %arg1: i32) -> (i32, i32) {
    %c0_i32 = arith.constant 0 : i32
    %c0_i32_0 = arith.constant 0 : i32
    %c0_i32_1 = arith.constant 0 : i32
    return %c0_i32, %c0_i32_0 : i32, i32
  }
  func.func @transform_5(%arg0: i32, %arg1: i32) -> (i32, i32) {
    %c0_i32 = arith.constant 0 : i32
    %c0_i32_0 = arith.constant 0 : i32
    %c0_i32_1 = arith.constant 0 : i32
    return %c0_i32, %c0_i32_0 : i32, i32
  }
  func.func @transform_6(%arg0: i32, %arg1: i32) -> (i32, i32) {
    %c0_i32 = arith.constant 0 : i32
    %c0_i32_0 = arith.constant 0 : i32
    %c0_i32_1 = arith.constant 0 : i32
    return %c0_i32, %c0_i32_0 : i32, i32
  }
  func.func @transform_7(%arg0: i32, %arg1: i32) -> (i32, i32, i32) {
    %c0_i32 = arith.constant 0 : i32
    %c0_i32_0 = arith.constant 0 : i32
    return %arg0, %arg1, %c0_i32 : i32, i32, i32
  }
}

</mosaic_0001>

<bundles_post_ra>
// kernel: tpu_custom_call.1
= control target key start
LH: loop header
LB: loop body
LE: loop exit
PB: predicated region body
PF: predicated region fallthrough
CT: control target
= control target key end

     0   :  { %12 = vsyncpa [#allocation4], 0  ;;  %s7754_s0 = inlined_call_operand.hbm [shape: f32[2,16,16,16], index: 0, kind: input, shape index: {}]   ;;  %s7755_s1 = inlined_call_operand.vmem [shape: bf16[16,8], index: 1, kind: input, shape index: {}]   ;;  %s7756_s2 = inlined_call_operand.vmem [shape: f32[1,8], index: 2, kind: input, shape index: {}]   ;;  %s7757_s3 = inlined_call_operand.vmem [shape: bf16[8,16], index: 3, kind: input, shape index: {}]   ;;  %s7758_s4 = inlined_call_operand.vmem [shape: f32[1,16], index: 4, kind: input, shape index: {}]   ;;  %s7759_s5 = inlined_call_operand.vmem [shape: bf16[72,16], index: 5, kind: input, shape index: {}]   ;;  %s7760_s6 = inlined_call_operand.vmem [shape: f32[1,16], index: 6, kind: input, shape index: {}]   ;;  %s7761_s7 = inlined_call_operand.vmem [shape: bf16[2,256,32], index: 7, kind: output, shape index: {}]  }
   0x1   :  { %14 = vsyncpa [#allocation4 + $0x1], 0  ;;  %s5959_s24 = smov 0   ;;  %s5961_s25 = smov 0  }
   0x2   :  { %s5963_s26 = smov 0   ;;  %s5965_s27 = smov 0  }
   0x3   :  { %s5967_s28 = smov 0   ;;  %s5969_s29 = smov 0  }
   0x4 LB: > { %s4839_s30 = sadd.s32 4294967295, %s5911_s29   ;;  %s32_s8 = sadd.s32 1, %s5907_s28  ;;  %s5911_s29 = sphi %s5969_s29, %s20_s29   ;;  %s5907_s28 = sphi %s5967_s28, %s7818_s28   ;;  %s5903_s27 = sphi %s5965_s27, %s7817_s27   ;;  %s5899_s26 = sphi %s5963_s26, %s7816_s26   ;;  %s5895_s25 = sphi %s5961_s25, %s7815_s25   ;;  %s5891_s24 = sphi %s5959_s24, %s7814_s24  }
   0x5   : > { %p34_p0 = scmp.ge.s32.totalorder %s32_s8, 2  ;;  %s39_s9 = sadd.s32 1, %s5899_s26 }
   0x6   : > { %p46_p1 = scmp.ne.s32.totalorder %s5899_s26, %s5895_s25  ;;  %p47_p2 = scmp.eq.s32.totalorder %s5911_s29, 0 }
   0x7   : > { %s7820_s8 = smov (%p34_p0, %s32_s8), 0  ;;  %p52_p4 = scmp.ne.s32.totalorder %s5895_s25, %s5891_s24 }
   0x8   : > { %p5995_p3 = por %p47_p2, %p46_p1  ;;  %s36_s11 = ssub.s32 %s5907_s28, %s7820_s8 }
   0x9   : > { %p53_p5 = scmp.eq.s32.totalorder %s4839_s30, 0  ;;  %p37_p6 = scmp.eq.s32.totalorder %s36_s11, 0 }
   0xa   : > { %p5620_p8 = scmp.lt.s32.totalorder %s5911_s29, 2  ;;  %s248_s14 = sand.u32 1, %s5899_s26  }
   0xb   : > { %p6002_p7 = por %p53_p5, %p52_p4  ;;  %s5246_s15 = sshll.u32 %s5907_s28, 12 }
   0xc   : > { %s6008_s13 = scalar_select %p37_p6, %s5899_s26, %s39_s9  }
   0xd   : > { %s4843_s16 = sshll.u32 %s248_s14, 8  ;;  %s258_s19 = scalar_lea.hbm %s7754_s0, %s5246_s15 }
   0xe   : > { %s252_s20 = scalar_lea.vmem [#allocation3], %s4843_s16  ;;  %p6017_p9 = pnand %p5620_p8, %p5995_p3 }
   0xf   : > { %s259_s21 = sshll.u32 %s252_s20, 4  ;;  %s249_s23 = scalar_lea.sflag [#allocation4], %s248_s14  ;;  %s260_s21 = int_to_ptr.vmem [resolvable:$true] %s259_s21 }
  0x10   : > { %p5835_p10 = pneg %p6017_p9  ;;  %s5846_s24 = scalar_lea.vmem %s260_s21, 4096 }
  0x11   : > { %p5847_p11 = scmp.ne.s32.totalorder %s260_s21, %s5846_s24  ;;  %s5913_s30 = smov [#allocation3]  }
  0x12   : > { %s5851_s9 = sshll.u32 %s5913_s30, 4  ;;  %s5852_s9 = int_to_ptr.vmem [resolvable:$false] %s5851_s9 }
  0x13   : > { %p5849_p12 = pnand %p5847_p11, %p5835_p10  ;;  %s5853_s11 = scalar_lea.vmem %s5852_s9, 8192 }
  0x14   : > { %p5854_p0 = scmp.lt.s32.totalorder %s260_s21, %s5852_s9  ;;  %p5855_p1 = scmp.lt.s32.totalorder %s5853_s11, %s5846_s24 }
  0x15   : > { %p5850_p13 = pneg %p5849_p12 }
  0x16   : > { %p5856_p2 = por %p5855_p1, %p5854_p0 }
  0x18   : > { %p5857_p3 = pnand %p5856_p2, %p5850_p13 }
  0x1a   : > { %5860 = shalt.err (!%p5857_p3)
}
  0x1b   : > { %s5914_s10 = smov 128   ;;  %s5915_s14 = smov 8  }
  0x1c   : > { %5619 = dma.hbm_to_vmem [thread:$0]  (!%p6017_p9), %s258_s19, 4096, %s260_s21, %s249_s23, %s5914_s10, %s5914_s10, %s5915_s14  }
  0x1d   : > { %p4846_p4 = scmp.ge.s32.totalorder %s5911_s29, 1  ;;  %p267_p5 = scmp.lt.s32.totalorder %s5911_s29, 3 }
  0x1f   : > { %p268_p6 = pnand %p4846_p4, %p267_p5 }
  0x21   : > { %271 = sbr.rel (%p268_p6) target bundleno = 944 (0x3b0), region = 48 }
  0x26   : > { %s273_s15 = sand.u32 1, %s5895_s25  }
  0x27   : > { %s4847_s16 = sshll.u32 %s273_s15, 8  ;;  %s274_s17 = scalar_lea.sflag [#allocation4], %s273_s15 }
  0x28   : > { %s6028_s18 = scalar_lea.vmem [#allocation3], %s4847_s16 }
  0x29   : > { %5886 = dma.done.wait (%p6002_p7), %s274_s17, 4096  }
  0x2a   : > { %5888 = vsyncadd (%p6002_p7), %s274_s17, 4294963200  ;;  %v5674_v0 = vld [vmem:[%s7755_s1] sm:$0xff]   ;;  %v449_v1 = vld [vmem:[%s6028_s18] sm:$0xff]  ;;  %vm512_vm0 = vcmask 130048   ;;  %vm337_vm1 = vsmask.f32 256 }
  0x2b   : > { %v450_v2 = vld [vmem:[%s6028_s18 + $0x8] sm:$0xff]  ;;  %v465_v3 = vld [vmem:[%s6028_s18 + $0x80] sm:$0xff]  ;;  %5432 = vmatprep.subr.bf16.mxu0 %v5674_v0  ;;  %5608 = vmatprep.subr.bf16.mxu1 %v5674_v0  ;;  %v451_v6 = vld [vmem:[%s6028_s18 + $0x10] sm:$0xff]  ;;  %vm330_vm2 = vcmask 57344   ;;  %vm393_vm4 = vsmask.f32 7938 }
  0x2c   : > { %v481_v4 = vpack.c.bf16 %v450_v2, %v449_v1  ;;  %v466_v5 = vld [vmem:[%s6028_s18 + $0x88] sm:$0xff]  ;;  %v452_v7 = vld [vmem:[%s6028_s18 + $0x18] sm:$0xff]  ;;  %5433 = vmatpush3.bf16.msra.mxu0 %v5674_v0  ;;  %5609 = vmatpush3.bf16.msra.mxu1 %v5674_v0  ;;  %v467_v10 = vld [vmem:[%s6028_s18 + $0x90] sm:$0xff]  ;;  %vm327_vm5 = vcmask 60416   ;;  %v5916_v61 = vmov 0   ;;  %vm1692_vm7 = vcmask 1046528  }
  0x2d   : > { %v489_v8 = vpack.c.bf16 %v466_v5, %v465_v3  ;;  %v482_v9 = vpack.c.bf16 %v452_v7, %v451_v6  ;;  %v468_v11 = vld [vmem:[%s6028_s18 + $0x98] sm:$0xff]  ;;  %v453_v12 = vld [vmem:[%s6028_s18 + $0x20] sm:$0xff]  ;;  %v454_v14 = vld [vmem:[%s6028_s18 + $0x28] sm:$0xff]  ;;  %328 = vst.msk [vmem:[#allocation2] sm:$0xf] %vm327_vm5, %v5916_v61  ;;  %s5917_s12 = smov 16  }
  0x2e   : > { %5434 = vmatprep.mubr.msk.bf16.mxu0 %vm512_vm0, %v481_v4  ;;  %v490_v13 = vpack.c.bf16 %v468_v11, %v467_v10  ;;  %v483_v15 = vpack.c.bf16 %v454_v14, %v453_v12  ;;  %v469_v16 = vld [vmem:[%s6028_s18 + $0xa0] sm:$0xff]  ;;  %v470_v17 = vld [vmem:[%s6028_s18 + $0xa8] sm:$0xff]  ;;  %v455_v18 = vld [vmem:[%s6028_s18 + $0x30] sm:$0xff]  ;;  %329 = vst.msk [vmem:[#allocation2 + $0x4] sm:$0xf] %vm327_vm5, %v5916_v61  ;;  %s5918_s19 = smov 8  }
  0x2f   : > { %5450 = vmatprep.mubr.msk.bf16.mxu1 %vm512_vm0, %v489_v8  ;;  %5435 = vmatmul.mubr.msk.bf16.vlgmr.msra.gmra.mxu0 %vm512_vm0, %v482_v9  ;;  %v456_v19 = vld [vmem:[%s6028_s18 + $0x38] sm:$0xff]  ;;  %v491_v20 = vpack.c.bf16 %v470_v17, %v469_v16  ;;  %v471_v21 = vld [vmem:[%s6028_s18 + $0xb0] sm:$0xff]  ;;  %v457_v23 = vld [vmem:[%s6028_s18 + $0x40] sm:$0xff]  ;;  %331 = vst.msk [vmem:[#allocation2 + $0x8] sm:$0x1] %vm330_vm2, %v5916_v61  ;;  %vm1773_vm15 = vcmask 64512  }
  0x30   : > { %5451 = vmatmul.mubr.msk.bf16.vlgmr.msra.gmra.mxu1 %vm512_vm0, %v490_v13  ;;  %5438 = vmatprep.mubr.msk.bf16.mxu0 %vm512_vm0, %v483_v15  ;;  %v472_v22 = vld [vmem:[%s6028_s18 + $0xb8] sm:$0xff]  ;;  %v458_v24 = vld [vmem:[%s6028_s18 + $0x48] sm:$0xff]  ;;  %v473_v25 = vld [vmem:[%s6028_s18 + $0xc0] sm:$0xff]  ;;  %v484_v28 = vpack.c.bf16 %v456_v19, %v455_v18  ;;  %333 = vst.msk [vmem:[#allocation2 + $0xcc] sm:$0xf] %vm327_vm5, %v5916_v61  ;;  %p313_p7 = scmp.lt.s32.totalorder %s5903_s27, 1 }
  0x31   : > { %5454 = vmatprep.mubr.msk.bf16.mxu1 %vm512_vm0, %v491_v20  ;;  %v474_v26 = vld [vmem:[%s6028_s18 + $0xc8] sm:$0xff]  ;;  %vm6065_vm3 = vmand %vm330_vm2, %vm337_vm1  ;;  %v492_v29 = vpack.c.bf16 %v472_v22, %v471_v21  ;;  %v485_v30 = vpack.c.bf16 %v458_v24, %v457_v23  ;;  %v345_v32 = vld [vmem:[#allocation2 + $0x18] sm:$0x1]  ;;  %334 = vst.msk [vmem:[#allocation2 + $0xd0] sm:$0xf] %vm327_vm5, %v5916_v61 }
  0x32   : > { %v493_v31 = vpack.c.bf16 %v474_v26, %v473_v25  ;;  %v346_v33 = vsel %vm6065_vm3, 0, %v345_v32  ;;  %v459_v34 = vld [vmem:[%s6028_s18 + $0x50] sm:$0xff]  ;;  %v460_v35 = vld [vmem:[%s6028_s18 + $0x58] sm:$0xff]  ;;  %v461_v38 = vld [vmem:[%s6028_s18 + $0x60] sm:$0xff]  ;;  %335 = vst.msk [vmem:[#allocation2 + $0xd4] sm:$0x1] %vm330_vm2, %v5916_v61 }
  0x33   : > { %v475_v36 = vld [vmem:[%s6028_s18 + $0xd0] sm:$0xff]  ;;  %347 = vst [vmem:[#allocation2 + $0x18] sm:$0x1] %v346_v33  ;;  %v476_v37 = vld [vmem:[%s6028_s18 + $0xd8] sm:$0xff]  ;;  %v462_v39 = vld [vmem:[%s6028_s18 + $0x68] sm:$0xff]  ;;  %v486_v42 = vpack.c.bf16 %v460_v35, %v459_v34  ;;  %s7822_s27 = smov (!%p313_p7, %s5903_s27), 1 }
  0x34   : > { %v477_v40 = vld [vmem:[%s6028_s18 + $0xe0] sm:$0xff]  ;;  %v478_v41 = vld [vmem:[%s6028_s18 + $0xe8] sm:$0xff]  ;;  %v494_v43 = vpack.c.bf16 %v476_v37, %v475_v36  ;;  %v487_v44 = vpack.c.bf16 %v462_v39, %v461_v38  ;;  %v463_v46 = vld [vmem:[%s6028_s18 + $0x70] sm:$0xff]  ;;  %vm1467_vm8 = vsmask.f32 7424  ;;  %s5247_s14 = sshll.u32 %s7822_s27, 7 }
  0x35   : > { %v495_v45 = vpack.c.bf16 %v478_v41, %v477_v40  ;;  %v464_v47 = vld [vmem:[%s6028_s18 + $0x78] sm:$0xff]  ;;  %v479_v48 = vld [vmem:[%s6028_s18 + $0xf0] sm:$0xff]  ;;  %v369_v52 = vld [vmem:[#allocation2 + $0x78] sm:$0x1]  ;;  %vm850_vm9 = vsmask.f32 4368  ;;  %s7568_s16 = scalar_lea.vmem %s7761_s7, %s5247_s14 }
  0x36   : > { %v480_v49 = vld [vmem:[%s6028_s18 + $0xf8] sm:$0xff]  ;;  %v488_v50 = vpack.c.bf16 %v464_v47, %v463_v46  ;;  %v370_v53 = vsel %vm6065_vm3, 0, %v369_v52  ;;  %v342_v54 = vld [vmem:[#allocation2 + $0xc] sm:$0x1]  ;;  %vm6101_vm6 = vmand %vm330_vm2, %vm393_vm4  ;;  %vm2805_vm12 = vsmask.f32 3328 }
  0x37   : > { %5439 = vmatmul.mubr.msk.bf16.gmra.mxu0 %vm512_vm0, %v484_v28  ;;  %v496_v51 = vpack.c.bf16 %v480_v49, %v479_v48  ;;  %371 = vst [vmem:[#allocation2 + $0x78] sm:$0x1] %v370_v53  ;;  %v343_v55 = vsel %vm6065_vm3, 0, %v342_v54  ;;  %v366_v56 = vld [vmem:[#allocation2 + $0x6c] sm:$0x1]  ;;  %vm6194_vm10 = vmand %vm327_vm5, %vm393_vm4  ;;  %vm2435_vm2 = vcmask 1043456  }
  0x38   : > { %5455 = vmatmul.mubr.msk.bf16.gmra.mxu1 %vm512_vm0, %v492_v29  ;;  %5442 = vmatprep.mubr.msk.bf16.mxu0 %vm512_vm0, %v485_v30  ;;  %344 = vst [vmem:[#allocation2 + $0xc] sm:$0x1] %v343_v55  ;;  %v367_v57 = vsel %vm6065_vm3, 0, %v366_v56  ;;  %v401_v59 = vld [vmem:[#allocation2 + $0x20] sm:$0x1]  ;;  %vm6224_vm11 = vmor %vm337_vm1, %vm850_vm9  ;;  %vm2402_vm1 = vcmask 195584  }
  0x39   : > { %5458 = vmatprep.mubr.msk.bf16.mxu1 %vm512_vm0, %v493_v31  ;;  %368 = vst [vmem:[#allocation2 + $0x6c] sm:$0x1] %v367_v57  ;;  %v402_v60 = vsel %vm6101_vm6, 0, %v401_v59  ;;  %v425_v62 = vld [vmem:[#allocation2 + $0x80] sm:$0x1] }
  0x3a   : > { %403 = vst [vmem:[#allocation2 + $0x20] sm:$0x1] %v402_v60  ;;  %v426_v63 = vsel %vm6101_vm6, 0, %v425_v62  ;;  %v398_v0 = vld [vmem:[#allocation2 + $0x14] sm:$0x1] }
  0x3b   : > { %427 = vst [vmem:[#allocation2 + $0x80] sm:$0x1] %v426_v63  ;;  %v399_v1 = vsel %vm6101_vm6, 0, %v398_v0  ;;  %v422_v2 = vld [vmem:[#allocation2 + $0x74] sm:$0x1] }
  0x3c   : > { %400 = vst [vmem:[#allocation2 + $0x14] sm:$0x1] %v399_v1  ;;  %v423_v3 = vsel %vm6101_vm6, 0, %v422_v2  ;;  %v339_v4 = vld [vmem:[#allocation2] sm:$0x1] }
  0x3d   : > { %424 = vst [vmem:[#allocation2 + $0x74] sm:$0x1] %v423_v3  ;;  %v395_v5 = vld [vmem:[#allocation2 + $0x8] sm:$0x1]  ;;  %v340_v6 = vsel %vm6065_vm3, 0, %v339_v4 }
  0x3e   : > { %v396_v7 = vsel %vm6101_vm6, 0, %v395_v5  ;;  %341 = vst [vmem:[#allocation2] sm:$0x1] %v340_v6  ;;  %v351_v8 = vld [vmem:[#allocation2 + $0x30] sm:$0x1] }
  0x3f   : > { %5443 = vmatmul.mubr.msk.bf16.gmra.mxu0 %vm512_vm0, %v486_v42  ;;  %397 = vst [vmem:[#allocation2 + $0x8] sm:$0x1] %v396_v7  ;;  %v352_v9 = vsel %vm6065_vm3, 0, %v351_v8  ;;  %v348_v10 = vld [vmem:[#allocation2 + $0x24] sm:$0x1] }
  0x40   : > { %5459 = vmatmul.mubr.msk.bf16.gmra.mxu1 %vm512_vm0, %v494_v43  ;;  %5446 = vmatprep.mubr.msk.bf16.mxu0 %vm512_vm0, %v487_v44  ;;  %353 = vst [vmem:[#allocation2 + $0x30] sm:$0x1] %v352_v9  ;;  %v349_v12 = vsel %vm6065_vm3, 0, %v348_v10  ;;  %v407_v17 = vld [vmem:[#allocation2 + $0x38] sm:$0x1] }
  0x41   : > { %5462 = vmatprep.mubr.msk.bf16.mxu1 %vm512_vm0, %v495_v45  ;;  %350 = vst [vmem:[#allocation2 + $0x24] sm:$0x1] %v349_v12  ;;  %v375_v18 = vld [vmem:[#allocation2 + $0x90] sm:$0x1]  ;;  %v404_v19 = vld [vmem:[#allocation2 + $0x2c] sm:$0x1] }
  0x42   : > { %v408_v20 = vsel %vm6101_vm6, 0, %v407_v17  ;;  %v376_v21 = vsel %vm6065_vm3, 0, %v375_v18  ;;  %v405_v22 = vsel %vm6101_vm6, 0, %v404_v19  ;;  %v372_v28 = vld [vmem:[#allocation2 + $0x84] sm:$0x1] }
  0x43   : > { %409 = vst [vmem:[#allocation2 + $0x38] sm:$0x1] %v408_v20  ;;  %377 = vst [vmem:[#allocation2 + $0x90] sm:$0x1] %v376_v21  ;;  %v373_v29 = vsel %vm6065_vm3, 0, %v372_v28 }
  0x44   : > { %406 = vst [vmem:[#allocation2 + $0x2c] sm:$0x1] %v405_v22  ;;  %374 = vst [vmem:[#allocation2 + $0x84] sm:$0x1] %v373_v29  ;;  %v431_v33 = vld [vmem:[#allocation2 + $0x98] sm:$0x1] }
  0x45   : > { %v5675_v11 = vld [vmem:[#allocation2] sm:$0xff]   ;;  %v432_v34 = vsel %vm6101_vm6, 0, %v431_v33  ;;  %v428_v35 = vld [vmem:[#allocation2 + $0x8c] sm:$0x1]  ;;  %v357_v37 = vld [vmem:[#allocation2 + $0x48] sm:$0x1] }
  0x46   : > { %v5676_v13 = vld [vmem:[#allocation2 + $0x8] ss:$0 sps:$4 sm:$0x11]   ;;  %v1693_v14 = vrot.slane %v5675_v11, 1  ;;  %v1471_v15 = vshll.u32 %v5675_v11, 16  ;;  %v1469_v24 = vshrl.u32 %v5675_v11, 16 }
  0x47   : > { %5447 = vmatmul.mubr.msk.bf16.gmra.mxu0 %vm512_vm0, %v488_v50  ;;  %v1694_v16 = vrot.slane %v5676_v13, 1  ;;  %v1476_v26 = vshll.u32 %v5676_v13, 16  ;;  %433 = vst [vmem:[#allocation2 + $0x98] sm:$0x1] %v432_v34  ;;  %v429_v36 = vsel %vm6101_vm6, 0, %v428_v35  ;;  %v358_v38 = vsel %vm6065_vm3, 0, %v357_v37 }
  0x48   : > { %5463 = vmatmul.mubr.msk.bf16.gmra.mxu1 %vm512_vm0, %v496_v51  ;;  %v1473_v25 = vrot.slane %v1471_v15, 1  ;;  %430 = vst [vmem:[#allocation2 + $0x8c] sm:$0x1] %v429_v36  ;;  %359 = vst [vmem:[#allocation2 + $0x48] sm:$0x1] %v358_v38 }
  0x49   : > { %v1695_v23 = vsel %vm1692_vm7, %v1693_v14, %v1694_v16  ;;  %v1478_v31 = vrot.slane %v1476_v26, 1  ;;  %v354_v39 = vld [vmem:[#allocation2 + $0x3c] sm:$0x1]  ;;  %v413_v41 = vld [vmem:[#allocation2 + $0x50] sm:$0x1] }
  0x4a   : > { %1741 = vrot.lane.b32.xlu0 %v1695_v23, %s5917_s12  ;;  %v1474_v30 = vor.u32 %v1473_v25, %v1469_v24  ;;  %v355_v40 = vsel %vm6065_vm3, 0, %v354_v39  ;;  %v414_v42 = vsel %vm6101_vm6, 0, %v413_v41  ;;  %v381_v43 = vld [vmem:[#allocation2 + $0xa8] sm:$0x1]  ;;  %v410_v45 = vld [vmem:[#allocation2 + $0x44] sm:$0x1] }
  0x4b   : > { %356 = vst [vmem:[#allocation2 + $0x3c] sm:$0x1] %v355_v40  ;;  %415 = vst [vmem:[#allocation2 + $0x50] sm:$0x1] %v414_v42  ;;  %v382_v44 = vsel %vm6065_vm3, 0, %v381_v43  ;;  %v411_v46 = vsel %vm6101_vm6, 0, %v410_v45 }
  0x4c   : > { %v1479_v32 = vsel %vm1467_vm8, %v1474_v30, %v1478_v31  ;;  %383 = vst [vmem:[#allocation2 + $0xa8] sm:$0x1] %v382_v44  ;;  %412 = vst [vmem:[#allocation2 + $0x44] sm:$0x1] %v411_v46  ;;  %v378_v47 = vld [vmem:[#allocation2 + $0x9c] sm:$0x1] }
  0x4d   : > { %v379_v48 = vsel %vm6065_vm3, 0, %v378_v47  ;;  %v437_v49 = vld [vmem:[#allocation2 + $0xb0] sm:$0x1]  ;;  %v434_v51 = vld [vmem:[#allocation2 + $0xa4] sm:$0x1] }
  0x4e   : > { %1660 = vrot.lane.b32.xlu0 %v1479_v32, %s5918_s19  ;;  %380 = vst [vmem:[#allocation2 + $0x9c] sm:$0x1] %v379_v48  ;;  %v438_v50 = vsel %vm6101_vm6, 0, %v437_v49  ;;  %v435_v52 = vsel %vm6101_vm6, 0, %v434_v51  ;;  %v363_v53 = vld [vmem:[#allocation2 + $0x60] sm:$0x1] }
  0x4f   : > { %439 = vst [vmem:[#allocation2 + $0xb0] sm:$0x1] %v438_v50  ;;  %436 = vst [vmem:[#allocation2 + $0xa4] sm:$0x1] %v435_v52  ;;  %v364_v54 = vsel %vm6065_vm3, 0, %v363_v53 }
  0x50   : > { %365 = vst [vmem:[#allocation2 + $0x60] sm:$0x1] %v364_v54  ;;  %v360_v55 = vld [vmem:[#allocation2 + $0x54] sm:$0x1]  ;;  %v419_v57 = vld [vmem:[#allocation2 + $0x68] sm:$0x1] }
  0x51   : > { %v361_v56 = vsel %vm6065_vm3, 0, %v360_v55  ;;  %v420_v59 = vsel %vm6101_vm6, 0, %v419_v57  ;;  %v387_v60 = vld [vmem:[#allocation2 + $0xc0] sm:$0x1]  ;;  %v416_v62 = vld [vmem:[#allocation2 + $0x5c] sm:$0x1] }
  0x52   : > { %362 = vst [vmem:[#allocation2 + $0x54] sm:$0x1] %v361_v56  ;;  %421 = vst [vmem:[#allocation2 + $0x68] sm:$0x1] %v420_v59  ;;  %v388_v61 = vsel %vm6065_vm3, 0, %v387_v60  ;;  %v417_v63 = vsel %vm6101_vm6, 0, %v416_v62 }
  0x53   : > { %389 = vst [vmem:[#allocation2 + $0xc0] sm:$0x1] %v388_v61  ;;  %v384_v0 = vld [vmem:[#allocation2 + $0xb4] sm:$0x1]  ;;  %418 = vst [vmem:[#allocation2 + $0x5c] sm:$0x1] %v417_v63 }
  0x54   : > { %v385_v1 = vsel %vm6065_vm3, 0, %v384_v0  ;;  %v443_v2 = vld [vmem:[#allocation2 + $0xc8] sm:$0x1]  ;;  %v440_v4 = vld [vmem:[#allocation2 + $0xbc] sm:$0x1] }
  0x55   : > { %386 = vst [vmem:[#allocation2 + $0xb4] sm:$0x1] %v385_v1  ;;  %v444_v3 = vsel %vm6101_vm6, 0, %v443_v2  ;;  %v441_v5 = vsel %vm6101_vm6, 0, %v440_v4  ;;  %v6178_v6 = vld [vmem:[%s7756_s2] ss:$0 sm:$0xff] }
  0x56   : > { %445 = vst [vmem:[#allocation2 + $0xc8] sm:$0x1] %v444_v3  ;;  %442 = vst [vmem:[#allocation2 + $0xbc] sm:$0x1] %v441_v5  ;;  %v1182_v37 = vld [vmem:[#allocation2 + $0x18] sm:$0xf] }
  0x57   : > { %v1238_v42 = vld [vmem:[#allocation2 + $0x78] sm:$0xf]  ;;  %v1175_v60 = vld [vmem:[#allocation2 + $0xc] sm:$0xf]  ;;  %vm2806_vm13 = vsmask.f32 7440 }
  0x58   : > { %v1231_v61 = vld [vmem:[#allocation2 + $0x6c] sm:$0xf]  ;;  %vm6320_vm14 = vmor %vm2805_vm12, %vm2806_vm13 }
  0xef   : > { %v5436_v7 = vpop.f32.mrf.mxu0 }
  0xf0   : > { %v5452_v8 = vpop.f32.mrf.mxu1  ;;  %v604_v9 = vadd.f32 %v5436_v7, %v6178_v6 }
  0xf1   : > { %v668_v10 = vadd.f32 %v5452_v8, %v6178_v6  ;;  %v595_v11 = vpop.f32.mrf.mxu0 }
  0xf2   : > { %v659_v12 = vpop.f32.mrf.mxu1  ;;  %v724_v13 = vmax.f32 %v604_v9, 0.0  ;;  %v596_v15 = vadd.f32 %v6178_v6, %v595_v11 }
  0xf3   : > { %v740_v14 = vmax.f32 %v668_v10, 0.0  ;;  %v660_v16 = vadd.f32 %v6178_v6, %v659_v12  ;;  %v5437_v17 = vpop.f32.mrf.mxu0 }
  0xf4   : > { %v5453_v18 = vpop.f32.mrf.mxu1  ;;  %v5250_v19 = vpack.c.bf16 %v724_v13, %v724_v13  ;;  %v722_v21 = vmax.f32 %v596_v15, 0.0  ;;  %v607_v23 = vadd.f32 %v5437_v17, %v6178_v6 }
  0xf5   : > { %v5266_v20 = vpack.c.bf16 %v740_v14, %v740_v14  ;;  %v738_v22 = vmax.f32 %v660_v16, 0.0  ;;  %v671_v24 = vadd.f32 %v5453_v18, %v6178_v6  ;;  %v598_v25 = vpop.f32.mrf.mxu0  ;;  %v1186_v16 = vld [vmem:[#allocation2 + $0x20] sm:$0x1] }
  0xf6   : > { %v662_v26 = vpop.f32.mrf.mxu1  ;;  %v870_v28 = vshrl.u32 %v5250_v19, 16  ;;  %v873_v29 = vshll.u32 %v5250_v19, 16  ;;  %v5248_v32 = vpack.c.bf16 %v722_v21, %v722_v21  ;;  %v725_v34 = vmax.f32 %v607_v23, 0.0  ;;  %v1242_v21 = vld [vmem:[#allocation2 + $0x80] sm:$0x1] }
  0xf7   : > { %v1006_v30 = vshrl.u32 %v5266_v20, 16  ;;  %v1009_v31 = vshll.u32 %v5266_v20, 16  ;;  %v5264_v33 = vpack.c.bf16 %v738_v22, %v738_v22  ;;  %v741_v35 = vmax.f32 %v671_v24, 0.0  ;;  %v5440_v51 = vpop.f32.mrf.mxu0 }
  0xf8   : > { %v6186_v36 = vrot.slane %v870_v28, 7  ;;  %v599_v39 = vadd.f32 %v6178_v6, %v598_v25  ;;  %v663_v40 = vadd.f32 %v6178_v6, %v662_v26  ;;  %v853_v43 = vshrl.u32 %v5248_v32, 16  ;;  %v6206_v56 = vpop.f32.mrf.mxu1 }
  0xf9   : > { %v6188_v38 = vrot.slane %v1006_v30, 7  ;;  %v856_v44 = vshll.u32 %v5248_v32, 16  ;;  %v989_v45 = vshrl.u32 %v5264_v33, 16  ;;  %v992_v46 = vshll.u32 %v5264_v33, 16  ;;  %v611_v9 = vpop.f32.mrf.mxu0 }
  0xfa   : > { %v875_v47 = vor.u32 %v873_v29, %v6186_v36  ;;  %v876_v48 = vrot.slane %v6186_v36, 4  ;;  %v6202_v52 = vrot.slane %v853_v43, 7  ;;  %v5251_v54 = vpack.c.bf16 %v725_v34, %v725_v34  ;;  %v675_v14 = vpop.f32.mrf.mxu1  ;;  %v1235_v43 = vld [vmem:[#allocation2 + $0x74] sm:$0x1] }
  0xfb   : > { %v1011_v49 = vor.u32 %v1009_v31, %v6188_v38  ;;  %v1012_v50 = vrot.slane %v6188_v38, 4  ;;  %v6204_v53 = vrot.slane %v989_v45, 7  ;;  %v5267_v55 = vpack.c.bf16 %v741_v35, %v741_v35  ;;  %v5441_v31 = vpop.f32.mrf.mxu0 }
  0xfc   : > { %v1183_v57 = vsel %vm6194_vm10, %v875_v47, %v1182_v37  ;;  %v723_v62 = vmax.f32 %v599_v39, 0.0  ;;  %v739_v63 = vmax.f32 %v663_v40, 0.0  ;;  %v858_v0 = vor.u32 %v856_v44, %v6202_v52  ;;  %v5457_v36 = vpop.f32.mrf.mxu1 }
  0xfd   : > { %v1239_v59 = vsel %vm6194_vm10, %v1011_v49, %v1238_v42  ;;  %1184 = vst [vmem:[#allocation2 + $0x18] sm:$0xf] %v1183_v57  ;;  %v859_v1 = vrot.slane %v6202_v52, 4  ;;  %v994_v2 = vor.u32 %v992_v46, %v6204_v53  ;;  %v995_v3 = vrot.slane %v6204_v53, 4  ;;  %v1179_v42 = vld [vmem:[#allocation2 + $0x14] sm:$0x1]  ;;  %v614_v52 = vpop.f32.mrf.mxu0 }
  0xfe   : > { %1240 = vst [vmem:[#allocation2 + $0x78] sm:$0xf] %v1239_v59  ;;  %v878_v4 = vshrl.u32 %v5251_v54, 16  ;;  %v881_v5 = vshll.u32 %v5251_v54, 16  ;;  %v1014_v7 = vshrl.u32 %v5267_v55, 16  ;;  %v1017_v8 = vshll.u32 %v5267_v55, 16  ;;  %v678_v59 = vpop.f32.mrf.mxu1 }
  0xff   : > { %v1176_v10 = vsel %vm6194_vm10, %v858_v0, %v1175_v60  ;;  %v1232_v11 = vsel %vm6194_vm10, %v994_v2, %v1231_v61  ;;  %v5249_v12 = vpack.c.bf16 %v723_v62, %v723_v62  ;;  %v5265_v13 = vpack.c.bf16 %v739_v63, %v739_v63 }
 0x100   : > { %1177 = vst [vmem:[#allocation2 + $0xc] sm:$0xf] %v1176_v10  ;;  %1233 = vst [vmem:[#allocation2 + $0x6c] sm:$0xf] %v1232_v11  ;;  %v880_v15 = vrot.slane %v878_v4, 7  ;;  %v1016_v17 = vrot.slane %v1014_v7, 7  ;;  %v620_v18 = vadd.f32 %v5440_v51, %v6178_v6  ;;  %v612_v19 = vadd.f32 %v6178_v6, %v611_v9 }
 0x101   : > { %v861_v22 = vshrl.u32 %v5249_v12, 16  ;;  %v864_v23 = vshll.u32 %v5249_v12, 16  ;;  %v997_v24 = vshrl.u32 %v5265_v13, 16  ;;  %v1000_v25 = vshll.u32 %v5265_v13, 16  ;;  %v1189_v9 = vld [vmem:[#allocation2 + $0x24] sm:$0xf] }
 0x102   : > { %v883_v26 = vor.u32 %v881_v5, %v880_v15  ;;  %v885_v28 = vrot.slane %v880_v15, 4  ;;  %v1019_v29 = vor.u32 %v1017_v8, %v1016_v17  ;;  %v1021_v30 = vrot.slane %v1016_v17, 4  ;;  %v1196_v8 = vld [vmem:[#allocation2 + $0x30] sm:$0xf] }
 0x103   : > { %v863_v32 = vrot.slane %v861_v22, 7  ;;  %v999_v33 = vrot.slane %v997_v24, 7  ;;  %v728_v34 = vmax.f32 %v620_v18, 0.0  ;;  %v726_v35 = vmax.f32 %v612_v19, 0.0 }
 0x104   : > { %v884_v37 = vsel %vm6224_vm11, %v876_v48, %v883_v26  ;;  %v1187_v38 = vsel %vm6065_vm3, %v885_v28, %v1186_v16  ;;  %v1020_v39 = vsel %vm6224_vm11, %v1012_v50, %v1019_v29  ;;  %v1243_v40 = vsel %vm6065_vm3, %v1021_v30, %v1242_v21 }
 0x105   : > { %1185 = vst.msk [vmem:[#allocation2 + $0x1c] sm:$0xf] %vm327_vm5, %v884_v37  ;;  %1188 = vst [vmem:[#allocation2 + $0x20] sm:$0x1] %v1187_v38  ;;  %v866_v44 = vor.u32 %v864_v23, %v863_v32  ;;  %v868_v45 = vrot.slane %v863_v32, 4  ;;  %v1002_v46 = vor.u32 %v1000_v25, %v999_v33  ;;  %v1004_v47 = vrot.slane %v999_v33, 4 }
 0x106   : > { %1241 = vst.msk [vmem:[#allocation2 + $0x7c] sm:$0xf] %vm327_vm5, %v1020_v39  ;;  %1244 = vst [vmem:[#allocation2 + $0x80] sm:$0x1] %v1243_v40  ;;  %v5254_v48 = vpack.c.bf16 %v728_v34, %v728_v34  ;;  %v5252_v49 = vpack.c.bf16 %v726_v35, %v726_v35  ;;  %v623_v51 = vadd.f32 %v5441_v31, %v6178_v6  ;;  %v1200_v25 = vld [vmem:[#allocation2 + $0x38] sm:$0x1] }
 0x107   : > { %v684_v50 = vadd.f32 %v6206_v56, %v6178_v6  ;;  %v867_v53 = vsel %vm6224_vm11, %v859_v1, %v866_v44  ;;  %v1180_v54 = vsel %vm6065_vm3, %v868_v45, %v1179_v42  ;;  %v1003_v55 = vsel %vm6224_vm11, %v995_v3, %v1002_v46  ;;  %v1252_v31 = vld [vmem:[#allocation2 + $0x90] sm:$0xf] }
 0x108   : > { %v1236_v57 = vsel %vm6065_vm3, %v1004_v47, %v1235_v43  ;;  %1178 = vst.msk [vmem:[#allocation2 + $0x10] sm:$0xf] %vm327_vm5, %v867_v53  ;;  %1181 = vst [vmem:[#allocation2 + $0x14] sm:$0x1] %v1180_v54  ;;  %v904_v56 = vshrl.u32 %v5254_v48, 16  ;;  %v907_v60 = vshll.u32 %v5254_v48, 16  ;;  %v615_v1 = vadd.f32 %v6178_v6, %v614_v52 }
 0x109   : > { %1234 = vst.msk [vmem:[#allocation2 + $0x70] sm:$0xf] %vm327_vm5, %v1003_v55  ;;  %1237 = vst [vmem:[#allocation2 + $0x74] sm:$0x1] %v1236_v57  ;;  %v887_v61 = vshrl.u32 %v5252_v49, 16  ;;  %v890_v62 = vshll.u32 %v5252_v49, 16  ;;  %v676_v2 = vadd.f32 %v6178_v6, %v675_v14  ;;  %v687_v5 = vadd.f32 %v5457_v36, %v6178_v6 }
 0x10a   : > { %v729_v63 = vmax.f32 %v623_v51, 0.0  ;;  %v744_v0 = vmax.f32 %v684_v50, 0.0  ;;  %v906_v3 = vrot.slane %v904_v56, 7  ;;  %v679_v7 = vadd.f32 %v6178_v6, %v678_v59  ;;  %v4935_v48 = vld [vmem:[#allocation2 + $0x18] sm:$0xf] }
 0x10b   : > { %v6253_v4 = vrot.slane %v887_v61, 7  ;;  %v727_v12 = vmax.f32 %v615_v1, 0.0  ;;  %v742_v13 = vmax.f32 %v676_v2, 0.0  ;;  %v745_v32 = vmax.f32 %v687_v5, 0.0  ;;  %v1193_v52 = vld [vmem:[#allocation2 + $0x2c] sm:$0x1] }
 0x10c   : > { %v5255_v10 = vpack.c.bf16 %v729_v63, %v729_v63  ;;  %v5270_v11 = vpack.c.bf16 %v744_v0, %v744_v0  ;;  %v909_v15 = vor.u32 %v907_v60, %v906_v3  ;;  %v910_v16 = vrot.slane %v906_v3, 4  ;;  %v6265_v38 = vld [vmem:[#allocation2 + $0x1c] sm:$0xf]  ;;  %v1245_v53 = vld [vmem:[#allocation2 + $0x84] sm:$0xf] }
 0x10d   : > { %v892_v17 = vor.u32 %v890_v62, %v6253_v4  ;;  %v893_v18 = vrot.slane %v6253_v4, 4  ;;  %v5253_v26 = vpack.c.bf16 %v727_v12, %v727_v12  ;;  %v5268_v28 = vpack.c.bf16 %v742_v13, %v742_v13  ;;  %v6275_v54 = vld [vmem:[#allocation2 + $0x20] sm:$0x1]  ;;  %v1256_v4 = vld [vmem:[#allocation2 + $0x98] sm:$0x1] }
 0x10e   : > { %v912_v14 = vshrl.u32 %v5255_v10, 16  ;;  %v915_v19 = vshll.u32 %v5255_v10, 16  ;;  %v1040_v21 = vshrl.u32 %v5270_v11, 16  ;;  %v1043_v22 = vshll.u32 %v5270_v11, 16  ;;  %v1249_v5 = vld [vmem:[#allocation2 + $0x8c] sm:$0x1] }
 0x10f   : > { %v1197_v23 = vsel %vm6194_vm10, %v909_v15, %v1196_v8  ;;  %v1190_v24 = vsel %vm6194_vm10, %v892_v17, %v1189_v9  ;;  %v743_v33 = vmax.f32 %v679_v7, 0.0  ;;  %v895_v34 = vshrl.u32 %v5253_v26, 16  ;;  %v6291_v8 = vld [vmem:[#allocation2 + $0x18] sm:$0xff]   ;;  %v6295_v13 = vld [vmem:[#allocation2 + $0x20] ss:$0 sps:$4 sm:$0x11]  }
 0x110   : > { %1198 = vst [vmem:[#allocation2 + $0x30] sm:$0xf] %v1197_v23  ;;  %1191 = vst [vmem:[#allocation2 + $0x24] sm:$0xf] %v1190_v24  ;;  %v914_v29 = vrot.slane %v912_v14, 7  ;;  %v6263_v30 = vrot.slane %v1040_v21, 7  ;;  %v5271_v46 = vpack.c.bf16 %v745_v32, %v745_v32  ;;  %v6278_v55 = vcombine.low %v4935_v48, %v6265_v38 }
 0x111   : > { %v898_v35 = vshll.u32 %v5253_v26, 16  ;;  %v1023_v36 = vshrl.u32 %v5268_v28, 16  ;;  %v1026_v37 = vshll.u32 %v5268_v28, 16  ;;  %v897_v44 = vrot.slane %v895_v34, 7  ;;  %v4960_v14 = vld [vmem:[#allocation2 + $0x7c] sm:$0xf] }
 0x112   : > { %v917_v39 = vor.u32 %v915_v19, %v914_v29  ;;  %v919_v40 = vrot.slane %v914_v29, 4  ;;  %v1045_v42 = vor.u32 %v1043_v22, %v6263_v30  ;;  %v1046_v43 = vrot.slane %v6263_v30, 4  ;;  %v4961_v24 = vld [vmem:[#allocation2 + $0x80] sm:$0x1]  ;;  %v4959_v30 = vld [vmem:[#allocation2 + $0x78] sm:$0xf] }
 0x113   : > { %v1025_v45 = vrot.slane %v1023_v36, 7  ;;  %v5269_v47 = vpack.c.bf16 %v743_v33, %v743_v33  ;;  %v900_v57 = vor.u32 %v898_v35, %v897_v44  ;;  %v902_v59 = vrot.slane %v897_v44, 4  ;;  %v6310_v35 = vld [vmem:[#allocation2 + $0x18] sm:$0xff]   ;;  %v6312_v36 = vld [vmem:[#allocation2 + $0x20] ss:$0 sps:$4 sm:$0x11]  }
 0x114   : > { %v918_v49 = vsel %vm6224_vm11, %v910_v16, %v917_v39  ;;  %v1201_v51 = vsel %vm6065_vm3, %v919_v40, %v1200_v25  ;;  %v1253_v50 = vsel %vm6194_vm10, %v1045_v42, %v1252_v31  ;;  %v1048_v61 = vshrl.u32 %v5271_v46, 16  ;;  %v4957_v44 = vld [vmem:[#allocation2 + $0x70] sm:$0xf] }
 0x115   : > { %1199 = vst.msk [vmem:[#allocation2 + $0x34] sm:$0xf] %vm327_vm5, %v918_v49  ;;  %1202 = vst [vmem:[#allocation2 + $0x38] sm:$0x1] %v1201_v51  ;;  %v1028_v56 = vor.u32 %v1026_v37, %v1025_v45  ;;  %v1029_v60 = vrot.slane %v1025_v45, 4  ;;  %v1051_v62 = vshll.u32 %v5271_v46, 16  ;;  %v901_v1 = vsel %vm6224_vm11, %v893_v18, %v900_v57 }
 0x116   : > { %1254 = vst [vmem:[#allocation2 + $0x90] sm:$0xf] %v1253_v50  ;;  %v1031_v63 = vshrl.u32 %v5269_v47, 16  ;;  %v1034_v0 = vshll.u32 %v5269_v47, 16  ;;  %v1194_v2 = vsel %vm6065_vm3, %v902_v59, %v1193_v52  ;;  %v6289_v7 = vcombine.low %v6275_v54, %v6275_v54  ;;  %1192 = vst.msk [vmem:[#allocation2 + $0x28] sm:$0xf] %vm327_vm5, %v901_v1 }
 0x117   : > { %v1246_v3 = vsel %vm6194_vm10, %v1028_v56, %v1245_v53  ;;  %1195 = vst [vmem:[#allocation2 + $0x2c] sm:$0x1] %v1194_v2  ;;  %v1050_v9 = vrot.slane %v1048_v61, 7  ;;  %v2249_v11 = vrot.slane %v6278_v55, 1  ;;  %v2833_v12 = vshrl.u32 %v4935_v48, 16  ;;  %v5444_v61 = vpop.f32.mrf.mxu0  ;;  %v6336_v2 = vld [vmem:[#allocation2 + $0xc] sm:$0xff]  }
 0x118   : > { %1247 = vst [vmem:[#allocation2 + $0x84] sm:$0xf] %v1246_v3  ;;  %v1033_v10 = vrot.slane %v1031_v63, 7  ;;  %v2250_v15 = vrot.slane %v6289_v7, 1  ;;  %v2836_v16 = vshll.u32 %v4935_v48, 16  ;;  %v2842_v17 = vshll.u32 %v6265_v38, 16 }
 0x119   : > { %v2846_v18 = vshrl.u32 %v6265_v38, 16  ;;  %v1053_v19 = vor.u32 %v1051_v62, %v1050_v9  ;;  %v1055_v21 = vrot.slane %v1050_v9, 4  ;;  %v2835_v26 = vrot.slane %v2833_v12, 4  ;;  %v4933_v37 = vld [vmem:[#allocation2 + $0x10] sm:$0xf] }
 0x11a   : > { %v1036_v22 = vor.u32 %v1034_v0, %v1033_v10  ;;  %v1038_v23 = vrot.slane %v1033_v10, 4  ;;  %v2251_v25 = vsel %vm1692_vm7, %v2249_v11, %v2250_v15  ;;  %v2838_v28 = vrot.slane %v2836_v16, 5  ;;  %v4932_v49 = vld [vmem:[#allocation2 + $0xc] sm:$0xf] }
 0x11b   : > { %v2844_v29 = vrot.slane %v2842_v17, 5  ;;  %v1054_v31 = vsel %vm6224_vm11, %v1046_v43, %v1053_v19  ;;  %v1257_v32 = vsel %vm6065_vm3, %v1055_v21, %v1256_v4  ;;  %2296 = vrot.lane.b32.xlu1 %v2251_v25, %s5917_s12  ;;  %v2848_v39 = vrot.slane %v2846_v18, 4  ;;  %v4934_v43 = vld [vmem:[#allocation2 + $0x14] sm:$0x1]  ;;  %v4956_v53 = vld [vmem:[#allocation2 + $0x6c] sm:$0xf] }
 0x11c   : > { %v1037_v33 = vsel %vm6224_vm11, %v1029_v60, %v1036_v22  ;;  %v1250_v34 = vsel %vm6065_vm3, %v1038_v23, %v1249_v5  ;;  %1255 = vst.msk [vmem:[#allocation2 + $0x94] sm:$0xf] %vm327_vm5, %v1054_v31  ;;  %1258 = vst [vmem:[#allocation2 + $0x98] sm:$0x1] %v1257_v32  ;;  %v2839_v38 = vor.u32 %v2838_v28, %v2835_v26  ;;  %v2852_v40 = vshll.u32 %v6275_v54, 16 }
 0x11d   : > { %1248 = vst.msk [vmem:[#allocation2 + $0x88] sm:$0xf] %vm327_vm5, %v1037_v33  ;;  %1251 = vst [vmem:[#allocation2 + $0x8c] sm:$0x1] %v1250_v34  ;;  %v3597_v42 = vrot.slane %v6291_v8, 1  ;;  %v7786_v45 = vmov 0  ;;  %v6325_v47 = vcombine.low %v4959_v30, %v4960_v14  ;;  %v5005_v48 = vcombine.low %v4961_v24, %v4961_v24  ;;  %v627_v14 = vpop.f32.mrf.mxu0 }
 0x11e   : > { %v7787_v45 = vsel %vm6320_vm14, 4294967295, %v7786_v45  ;;  %v3598_v46 = vrot.slane %v6295_v13, 1  ;;  %v2840_v51 = vrot.slane %v2839_v38, 4  ;;  %v2849_v50 = vor.u32 %v2848_v39, %v2844_v29  ;;  %v4958_v54 = vld [vmem:[#allocation2 + $0x74] sm:$0x1] }
 0x11f   : > { %7788 = vst [vmem:[#allocation6_spill] sm:$0xff] %v7787_v45  ;;  %v2854_v52 = vrot.slane %v2852_v40, 5  ;;  %v2273_v59 = vrot.slane %v6325_v47, 1  ;;  %v2274_v56 = vrot.slane %v5005_v48, 1  ;;  %v1699_v60 = vrot.slane %v6310_v35, 1 }
 0x120   : > { %v3599_v57 = vsel %vm1692_vm7, %v3597_v42, %v3598_v46  ;;  %v2845_v62 = vsel %vm6320_vm14, %v2840_v51, %v2844_v29  ;;  %v2850_v63 = vrot.slane %v2849_v50, 4  ;;  %v1700_v0 = vrot.slane %v6312_v36, 1  ;;  %v6338_v3 = vld [vmem:[#allocation2 + $0x14] ss:$0 sps:$4 sm:$0x11]  }
 0x121   : > { %3645 = vrot.lane.b32.xlu0 %v3599_v57, %s5917_s12  ;;  %v6334_v1 = vcombine.low %v4932_v49, %v4933_v37  ;;  %v2275_v4 = vsel %vm1692_vm7, %v2273_v59, %v2274_v56  ;;  %v6341_v5 = vcombine.low %v4934_v43, %v4934_v43  ;;  %v6343_v9 = vcombine.low %v4956_v53, %v4957_v44  ;;  %v5445_v37 = vpop.f32.mrf.mxu0  ;;  %v5460_v53 = vpop.f32.mrf.mxu1 }
 0x122   : > { %v2855_v10 = vsel %vm6320_vm14, %v2850_v63, %v2854_v52  ;;  %2312 = vrot.lane.b32.xlu1 %v2275_v4, %s5917_s12  ;;  %v6349_v12 = vcombine.low %v4958_v54, %v4958_v54  ;;  %v1701_v16 = vsel %vm1692_vm7, %v1699_v60, %v1700_v0  ;;  %v1696_v21 = vrot.slane %v6336_v2, 1 }
 0x123   : > { %v2246_v11 = vrot.slane %v6334_v1, 1  ;;  %v6351_v15 = vcombine.low %v2845_v62, %v2855_v10  ;;  %v2247_v17 = vrot.slane %v6341_v5, 1  ;;  %v2270_v18 = vrot.slane %v6343_v9, 1  ;;  %v630_v56 = vpop.f32.mrf.mxu0 }
 0x124   : > { %v2271_v19 = vrot.slane %v6349_v12, 1  ;;  %v1697_v22 = vrot.slane %v6338_v3, 1  ;;  %v2037_v24 = vshll.u32 %v6278_v55, 16  ;;  %v2042_v25 = vshll.u32 %v6289_v7, 16 }
 0x125   : > { %7789 = vst [vmem:[#allocation7_spill] sm:$0xff] %v6351_v15  ;;  %1745 = vrot.lane.b32.xlu0 %v1701_v16, %s5917_s12  ;;  %v2248_v23 = vsel %vm1692_vm7, %v2246_v11, %v2247_v17  ;;  %v2035_v29 = vshrl.u32 %v6278_v55, 16  ;;  %v636_v30 = vadd.f32 %v5444_v61, %v6178_v6  ;;  %v628_v33 = vadd.f32 %v6178_v6, %v627_v14  ;;  %v1210_v11 = vld [vmem:[#allocation2 + $0x48] sm:$0xf]  ;;  %v691_v14 = vpop.f32.mrf.mxu1 }
 0x126   : > { %2294 = vrot.lane.b32.xlu1 %v2248_v23, %s5917_s12  ;;  %v2272_v26 = vsel %vm1692_vm7, %v2270_v18, %v2271_v19  ;;  %v1698_v28 = vsel %vm1692_vm7, %v1696_v21, %v1697_v22  ;;  %v2039_v31 = vrot.slane %v2037_v24, 1  ;;  %v2044_v32 = vrot.slane %v2042_v25, 1  ;;  %v1203_v25 = vld [vmem:[#allocation2 + $0x3c] sm:$0xf] }
 0x127   : > { %v2131_v34 = vshrl.u32 %v6325_v47, 16  ;;  %v732_v7 = vmax.f32 %v636_v30, 0.0  ;;  %v2133_v38 = vshll.u32 %v6325_v47, 16  ;;  %v2138_v39 = vshll.u32 %v5005_v48, 16 }
 0x128   : > { %v3374_v40 = vshrl.u32 %v6291_v8, 16  ;;  %v2040_v42 = vor.u32 %v2039_v31, %v2035_v29  ;;  %v730_v43 = vmax.f32 %v628_v33, 0.0  ;;  %v3376_v44 = vshll.u32 %v6291_v8, 16 }
 0x129   : > { %2310 = vrot.lane.b32.xlu0 %v2272_v26, %s5917_s12  ;;  %v3381_v46 = vshll.u32 %v6295_v13, 16  ;;  %v5258_v49 = vpack.c.bf16 %v732_v7, %v732_v7  ;;  %v2135_v51 = vrot.slane %v2133_v38, 1  ;;  %v2140_v50 = vrot.slane %v2138_v39, 1  ;;  %v1214_v39 = vld [vmem:[#allocation2 + $0x50] sm:$0x1] }
 0x12a   : > { %1743 = vrot.lane.b32.xlu1 %v1698_v28, %s5917_s12  ;;  %v639_v52 = vadd.f32 %v5445_v37, %v6178_v6  ;;  %v2045_v54 = vsel %vm1467_vm8, %v2040_v42, %v2044_v32  ;;  %v5256_v57 = vpack.c.bf16 %v730_v43, %v730_v43  ;;  %v3378_v48 = vrot.slane %v3376_v44, 1 }
 0x12b   : > { %v3383_v59 = vrot.slane %v3381_v46, 1  ;;  %v938_v60 = vshrl.u32 %v5258_v49, 16  ;;  %v941_v8 = vshll.u32 %v5258_v49, 16  ;;  %v2136_v61 = vor.u32 %v2135_v51, %v2131_v34  ;;  %v1266_v49 = vld [vmem:[#allocation2 + $0xa8] sm:$0xf] }
 0x12c   : > { %v733_v13 = vmax.f32 %v639_v52, 0.0  ;;  %v921_v62 = vshrl.u32 %v5256_v57, 16  ;;  %v924_v63 = vshll.u32 %v5256_v57, 16  ;;  %v3379_v0 = vor.u32 %v3378_v48, %v3374_v40  ;;  %v5461_v48 = vpop.f32.mrf.mxu1 }
 0x12d   : > { %2216 = vrot.lane.b32.xlu0 %v2045_v54, %s5918_s19  ;;  %v700_v4 = vadd.f32 %v5460_v53, %v6178_v6  ;;  %v940_v10 = vrot.slane %v938_v60, 7  ;;  %v2141_v16 = vsel %vm1467_vm8, %v2136_v61, %v2140_v50  ;;  %v631_v18 = vadd.f32 %v6178_v6, %v630_v56  ;;  %v1207_v60 = vld [vmem:[#allocation2 + $0x44] sm:$0x1] }
 0x12e   : > { %v5259_v17 = vpack.c.bf16 %v733_v13, %v733_v13  ;;  %v6382_v19 = vrot.slane %v921_v62, 7  ;;  %2232 = vrot.lane.b32.xlu1 %v2141_v16, %s5918_s19  ;;  %v3384_v21 = vsel %vm1467_vm8, %v3379_v0, %v3383_v59  ;;  %v692_v23 = vadd.f32 %v6178_v6, %v691_v14 }
 0x12f   : > { %v748_v22 = vmax.f32 %v700_v4, 0.0  ;;  %v943_v24 = vor.u32 %v941_v8, %v940_v10  ;;  %v944_v29 = vrot.slane %v940_v10, 4  ;;  %v731_v32 = vmax.f32 %v631_v18, 0.0 }
 0x130   : > { %v946_v26 = vshrl.u32 %v5259_v17, 16  ;;  %v949_v28 = vshll.u32 %v5259_v17, 16  ;;  %v926_v30 = vor.u32 %v924_v63, %v6382_v19  ;;  %v927_v34 = vrot.slane %v6382_v19, 4  ;;  %v1259_v63 = vld [vmem:[#allocation2 + $0x9c] sm:$0xf]  ;;  %v694_v19 = vpop.f32.mrf.mxu1 }
 0x131   : > { %3565 = vrot.lane.b32.xlu0 %v3384_v21, %s5918_s19  ;;  %v5274_v31 = vpack.c.bf16 %v748_v22, %v748_v22  ;;  %v1211_v33 = vsel %vm6194_vm10, %v943_v24, %v1210_v11  ;;  %v746_v7 = vmax.f32 %v692_v23, 0.0  ;;  %v5257_v43 = vpack.c.bf16 %v731_v32, %v731_v32  ;;  %v4941_v24 = vld [vmem:[#allocation2 + $0x30] sm:$0xf] }
 0x132   : > { %v948_v37 = vrot.slane %v946_v26, 7  ;;  %1212 = vst [vmem:[#allocation2 + $0x48] sm:$0xf] %v1211_v33  ;;  %v1204_v38 = vsel %vm6194_vm10, %v926_v30, %v1203_v25  ;;  %v1483_v50 = vshll.u32 %v6336_v2, 16  ;;  %v1488_v57 = vshll.u32 %v6338_v3, 16 }
 0x133   : > { %v1074_v40 = vshrl.u32 %v5274_v31, 16  ;;  %v1077_v42 = vshll.u32 %v5274_v31, 16  ;;  %1205 = vst [vmem:[#allocation2 + $0x3c] sm:$0xf] %v1204_v38  ;;  %v5272_v51 = vpack.c.bf16 %v746_v7, %v746_v7  ;;  %v929_v53 = vshrl.u32 %v5257_v43, 16 }
 0x134   : > { %v951_v44 = vor.u32 %v949_v28, %v948_v37  ;;  %v953_v46 = vrot.slane %v948_v37, 4  ;;  %v932_v54 = vshll.u32 %v5257_v43, 16  ;;  %v1481_v0 = vshrl.u32 %v6336_v2, 16  ;;  %v4943_v25 = vld [vmem:[#allocation2 + $0x38] sm:$0x1] }
 0x135   : > { %v6395_v52 = vrot.slane %v1074_v40, 7  ;;  %v1057_v8 = vshrl.u32 %v5272_v51, 16  ;;  %v1060_v61 = vshll.u32 %v5272_v51, 16  ;;  %v931_v62 = vrot.slane %v929_v53, 7  ;;  %v4942_v31 = vld [vmem:[#allocation2 + $0x34] sm:$0xf] }
 0x136   : > { %v952_v59 = vsel %vm6224_vm11, %v944_v29, %v951_v44  ;;  %v1215_v56 = vsel %vm6065_vm3, %v953_v46, %v1214_v39  ;;  %v1485_v3 = vrot.slane %v1483_v50, 1  ;;  %v1490_v10 = vrot.slane %v1488_v57, 1  ;;  %v4967_v43 = vld [vmem:[#allocation2 + $0x98] sm:$0x1]  ;;  %v4966_v51 = vld [vmem:[#allocation2 + $0x94] sm:$0xf]  ;;  %v5448_v50 = vpop.f32.mrf.mxu0 }
 0x137   : > { %1213 = vst.msk [vmem:[#allocation2 + $0x4c] sm:$0xf] %vm327_vm5, %v952_v59  ;;  %1216 = vst [vmem:[#allocation2 + $0x50] sm:$0x1] %v1215_v56  ;;  %v1079_v13 = vor.u32 %v1077_v42, %v6395_v52  ;;  %v6405_v4 = vrot.slane %v1057_v8, 7  ;;  %v1495_v11 = vshll.u32 %v6310_v35, 16  ;;  %v934_v17 = vor.u32 %v932_v54, %v931_v62 }
 0x138   : > { %v936_v18 = vrot.slane %v931_v62, 4  ;;  %v1486_v14 = vor.u32 %v1485_v3, %v1481_v0  ;;  %v1493_v22 = vshrl.u32 %v6310_v35, 16  ;;  %v1500_v2 = vshll.u32 %v6312_v36, 16  ;;  %v4965_v42 = vld [vmem:[#allocation2 + $0x90] sm:$0xf] }
 0x139   : > { %v1267_v16 = vsel %vm6194_vm10, %v1079_v13, %v1266_v49  ;;  %v1062_v21 = vor.u32 %v1060_v61, %v6405_v4  ;;  %v1497_v23 = vrot.slane %v1495_v11, 1  ;;  %v935_v26 = vsel %vm6224_vm11, %v927_v34, %v934_v17  ;;  %v1270_v61 = vld [vmem:[#allocation2 + $0xb0] sm:$0x1]  ;;  %v6441_v3 = vld [vmem:[#allocation2 + $0x2c] ss:$0 sps:$4 sm:$0x11]  }
 0x13a   : > { %1268 = vst [vmem:[#allocation2 + $0xa8] sm:$0xf] %v1267_v16  ;;  %v1208_v28 = vsel %vm6065_vm3, %v936_v18, %v1207_v60  ;;  %v1491_v29 = vsel %vm1467_vm8, %v1486_v14, %v1490_v10  ;;  %v703_v30 = vadd.f32 %v5461_v48, %v6178_v6  ;;  %1206 = vst.msk [vmem:[#allocation2 + $0x40] sm:$0xf] %vm327_vm5, %v935_v26  ;;  %v1502_v32 = vrot.slane %v1500_v2, 1  ;;  %v643_v14 = vpop.f32.mrf.mxu0 }
 0x13b   : > { %1209 = vst [vmem:[#allocation2 + $0x44] sm:$0x1] %v1208_v28  ;;  %v1260_v35 = vsel %vm6194_vm10, %v1062_v21, %v1259_v63  ;;  %1662 = vrot.lane.b32.xlu1 %v1491_v29, %s5918_s19  ;;  %v1498_v36 = vor.u32 %v1497_v23, %v1493_v22  ;;  %v695_v33 = vadd.f32 %v6178_v6, %v694_v19  ;;  %v2025_v40 = vshll.u32 %v6334_v1, 16  ;;  %v1263_v11 = vld [vmem:[#allocation2 + $0xa4] sm:$0x1] }
 0x13c   : > { %1261 = vst [vmem:[#allocation2 + $0x9c] sm:$0xf] %v1260_v35  ;;  %v749_v34 = vmax.f32 %v703_v30, 0.0  ;;  %v6424_v37 = vcombine.low %v4941_v24, %v4942_v31  ;;  %v6426_v7 = vcombine.low %v4943_v25, %v4943_v25  ;;  %v2023_v49 = vshrl.u32 %v6334_v1, 16  ;;  %v6456_v28 = vld [vmem:[#allocation2 + $0x24] sm:$0xff]  }
 0x13d   : > { %v1503_v38 = vsel %vm1467_vm8, %v1498_v36, %v1502_v32  ;;  %v747_v39 = vmax.f32 %v695_v33, 0.0  ;;  %v2027_v54 = vrot.slane %v2025_v40, 1  ;;  %v2030_v57 = vshll.u32 %v6341_v5, 16  ;;  %v6446_v18 = vld [vmem:[#allocation2 + $0x38] ss:$0 sps:$4 sm:$0x11]  }
 0x13e   : > { %1664 = vrot.lane.b32.xlu0 %v1503_v38, %s5918_s19  ;;  %v5275_v44 = vpack.c.bf16 %v749_v34, %v749_v34  ;;  %v2255_v46 = vrot.slane %v6424_v37, 1  ;;  %v2256_v6 = vrot.slane %v6426_v7, 1  ;;  %v6435_v48 = vcombine.low %v4965_v42, %v4966_v51  ;;  %v6451_v2 = vld [vmem:[#allocation2 + $0x2c] ss:$0 sps:$4 sm:$0x11]   ;;  %v6466_v34 = vld [vmem:[#allocation2 + $0x30] sm:$0xff]  }
 0x13f   : > { %v5273_v53 = vpack.c.bf16 %v747_v39, %v747_v39  ;;  %v6438_v8 = vcombine.low %v4967_v43, %v4967_v43  ;;  %v2028_v63 = vor.u32 %v2027_v54, %v2023_v49  ;;  %v2032_v0 = vrot.slane %v2030_v57, 1  ;;  %v4940_v38 = vld [vmem:[#allocation2 + $0x2c] sm:$0x1]  ;;  %v5449_v39 = vpop.f32.mrf.mxu0  ;;  %v6482_v51 = vld [vmem:[%s7756_s2] ss:$0 sm:$0xff] }
 0x140   : > { %v1082_v59 = vshrl.u32 %v5275_v44, 16  ;;  %v1085_v56 = vshll.u32 %v5275_v44, 16  ;;  %v2257_v60 = vsel %vm1692_vm7, %v2255_v46, %v2256_v6  ;;  %v1080_v10 = vrot.slane %v6395_v52, 4  ;;  %v6473_v44 = vld [vmem:[#allocation2 + $0x24] sm:$0xff]  }
 0x141   : > { %v1065_v13 = vshrl.u32 %v5273_v53, 16  ;;  %v1068_v62 = vshll.u32 %v5273_v53, 16  ;;  %2300 = vrot.lane.b32.xlu1 %v2257_v60, %s5917_s12  ;;  %v2279_v16 = vrot.slane %v6435_v48, 1  ;;  %v2280_v17 = vrot.slane %v6438_v8, 1  ;;  %v4938_v54 = vld [vmem:[#allocation2 + $0x24] sm:$0xf] }
 0x142   : > { %v1084_v5 = vrot.slane %v1082_v59, 7  ;;  %v1063_v19 = vrot.slane %v6405_v4, 4  ;;  %v2033_v22 = vsel %vm1467_vm8, %v2028_v63, %v2032_v0  ;;  %v2121_v23 = vshll.u32 %v6343_v9, 16 }
 0x143   : > { %v1067_v21 = vrot.slane %v1065_v13, 7  ;;  %2214 = vrot.lane.b32.xlu0 %v2033_v22, %s5918_s19  ;;  %v2281_v25 = vsel %vm1692_vm7, %v2279_v16, %v2280_v17  ;;  %v2119_v26 = vshrl.u32 %v6343_v9, 16  ;;  %v2126_v31 = vshll.u32 %v6349_v12, 16 }
 0x144   : > { %v1087_v24 = vor.u32 %v1085_v56, %v1084_v5  ;;  %v1089_v52 = vrot.slane %v1084_v5, 4  ;;  %v2123_v4 = vrot.slane %v2121_v23, 1  ;;  %v3600_v32 = vrot.slane %v6456_v28, 1 }
 0x145   : > { %v1070_v29 = vor.u32 %v1068_v62, %v1067_v21  ;;  %v1072_v30 = vrot.slane %v1067_v21, 4  ;;  %2316 = vrot.lane.b32.xlu1 %v2281_v25, %s5917_s12  ;;  %v3601_v33 = vrot.slane %v6441_v3, 1  ;;  %v2128_v43 = vrot.slane %v2126_v31, 1 }
 0x146   : > { %v1088_v35 = vsel %vm6224_vm11, %v1080_v10, %v1087_v24  ;;  %v1271_v36 = vsel %vm6065_vm3, %v1089_v52, %v1270_v61  ;;  %v2124_v42 = vor.u32 %v2123_v4, %v2119_v26  ;;  %v3603_v6 = vrot.slane %v6466_v34, 1  ;;  %v4939_v61 = vld [vmem:[#allocation2 + $0x28] sm:$0xf] }
 0x147   : > { %1269 = vst.msk [vmem:[#allocation2 + $0xac] sm:$0xf] %vm327_vm5, %v1088_v35  ;;  %1272 = vst [vmem:[#allocation2 + $0xb0] sm:$0x1] %v1271_v36  ;;  %v1071_v12 = vsel %vm6224_vm11, %v1063_v19, %v1070_v29  ;;  %v1264_v40 = vsel %vm6065_vm3, %v1072_v30, %v1263_v11  ;;  %v3602_v46 = vsel %vm1692_vm7, %v3600_v32, %v3601_v33  ;;  %v3604_v49 = vrot.slane %v6446_v18, 1  ;;  %v5464_v11 = vpop.f32.mrf.mxu1 }
 0x148   : > { %1262 = vst.msk [vmem:[#allocation2 + $0xa0] sm:$0xf] %vm327_vm5, %v1071_v12  ;;  %1265 = vst [vmem:[#allocation2 + $0xa4] sm:$0x1] %v1264_v40  ;;  %v652_v53 = vadd.f32 %v6482_v51, %v5448_v50  ;;  %v2129_v57 = vsel %vm1467_vm8, %v2124_v42, %v2128_v43  ;;  %v644_v59 = vadd.f32 %v6482_v51, %v643_v14  ;;  %v1702_v56 = vrot.slane %v6473_v44, 1  ;;  %v646_v50 = vpop.f32.mrf.mxu0 }
 0x149   : > { %3647 = vrot.lane.b32.xlu1 %v3602_v46, %s5917_s12  ;;  %v1703_v60 = vrot.slane %v6451_v2, 1  ;;  %2230 = vrot.lane.b32.xlu0 %v2129_v57, %s5918_s19  ;;  %v6491_v62 = vcombine.low %v4938_v54, %v4939_v61  ;;  %v6493_v63 = vcombine.low %v4940_v38, %v4940_v38  ;;  %v655_v5 = vadd.f32 %v6482_v51, %v5449_v39  ;;  %v707_v35 = vpop.f32.mrf.mxu1  ;;  %v1224_v32 = vld [vmem:[#allocation2 + $0x60] sm:$0xf]  ;;  %v1217_v33 = vld [vmem:[#allocation2 + $0x54] sm:$0xf] }
 0x14a   : > { %v736_v13 = vmax.f32 %v652_v53, 0.0  ;;  %v734_v0 = vmax.f32 %v644_v59, 0.0  ;;  %v716_v19 = vadd.f32 %v6482_v51, %v5464_v11  ;;  %v3605_v21 = vsel %vm1692_vm7, %v3603_v6, %v3604_v49  ;;  %v1228_v53 = vld [vmem:[#allocation2 + $0x68] sm:$0x1]  ;;  %v1280_v61 = vld [vmem:[#allocation2 + $0xc0] sm:$0xf] }
 0x14b   : > { %v1704_v10 = vsel %vm1692_vm7, %v1702_v56, %v1703_v60  ;;  %v2252_v17 = vrot.slane %v6491_v62, 1  ;;  %v2253_v14 = vrot.slane %v6493_v63, 1  ;;  %v737_v23 = vmax.f32 %v655_v5, 0.0  ;;  %v1221_v5 = vld [vmem:[#allocation2 + $0x5c] sm:$0x1] }
 0x14c   : > { %v5262_v16 = vpack.c.bf16 %v736_v13, %v736_v13  ;;  %v5260_v22 = vpack.c.bf16 %v734_v0, %v734_v0  ;;  %v647_v24 = vadd.f32 %v6482_v51, %v646_v50  ;;  %v752_v26 = vmax.f32 %v716_v19, 0.0 }
 0x14d   : > { %1747 = vrot.lane.b32.xlu1 %v1704_v10, %s5917_s12  ;;  %3649 = vrot.lane.b32.xlu0 %v3605_v21, %s5917_s12  ;;  %v5263_v4 = vpack.c.bf16 %v737_v23, %v737_v23  ;;  %v2254_v38 = vsel %vm1692_vm7, %v2252_v17, %v2253_v14  ;;  %v708_v12 = vadd.f32 %v6482_v51, %v707_v35  ;;  %v1505_v20 = vshrl.u32 %v6473_v44, 16 }
 0x14e   : > { %v972_v52 = vshrl.u32 %v5262_v16, 16  ;;  %v975_v25 = vshll.u32 %v5262_v16, 16  ;;  %v955_v29 = vshrl.u32 %v5260_v22, 16  ;;  %v958_v30 = vshll.u32 %v5260_v22, 16  ;;  %v5465_v16 = vpop.f32.mrf.mxu1  ;;  %v4964_v22 = vld [vmem:[#allocation2 + $0x8c] sm:$0x1] }
 0x14f   : > { %v735_v31 = vmax.f32 %v647_v24, 0.0  ;;  %v5278_v39 = vpack.c.bf16 %v752_v26, %v752_v26  ;;  %v980_v42 = vshrl.u32 %v5263_v4, 16  ;;  %v983_v43 = vshll.u32 %v5263_v4, 16  ;;  %v4962_v26 = vld [vmem:[#allocation2 + $0x84] sm:$0xf] }
 0x150   : > { %v974_v36 = vrot.slane %v972_v52, 7  ;;  %v957_v40 = vrot.slane %v955_v29, 7  ;;  %v750_v11 = vmax.f32 %v708_v12, 0.0  ;;  %v2059_v52 = vshrl.u32 %v6424_v37, 16  ;;  %v4963_v29 = vld [vmem:[#allocation2 + $0x88] sm:$0xf] }
 0x151   : > { %v5261_v46 = vpack.c.bf16 %v735_v31, %v735_v31  ;;  %2298 = vrot.lane.b32.xlu0 %v2254_v38, %s5917_s12  ;;  %v1108_v54 = vshrl.u32 %v5278_v39, 16  ;;  %v1111_v57 = vshll.u32 %v5278_v39, 16  ;;  %v982_v60 = vrot.slane %v980_v42, 7  ;;  %v710_v39 = vpop.f32.mrf.mxu1 }
 0x152   : > { %v977_v6 = vor.u32 %v975_v25, %v974_v36  ;;  %v978_v49 = vrot.slane %v974_v36, 4  ;;  %v960_v59 = vor.u32 %v958_v30, %v957_v40  ;;  %v961_v56 = vrot.slane %v957_v40, 4 }
 0x153   : > { %v963_v13 = vshrl.u32 %v5261_v46, 16  ;;  %v6509_v0 = vrot.slane %v1108_v54, 7  ;;  %v966_v10 = vshll.u32 %v5261_v46, 16  ;;  %v985_v14 = vor.u32 %v983_v43, %v982_v60 }
 0x154   : > { %v1225_v50 = vsel %vm6194_vm10, %v977_v6, %v1224_v32  ;;  %v1218_v17 = vsel %vm6194_vm10, %v960_v59, %v1217_v33  ;;  %v987_v19 = vrot.slane %v982_v60, 4  ;;  %v5276_v24 = vpack.c.bf16 %v750_v11, %v750_v11 }
 0x155   : > { %1226 = vst [vmem:[#allocation2 + $0x60] sm:$0xf] %v1225_v50  ;;  %v965_v21 = vrot.slane %v963_v13, 7  ;;  %1219 = vst [vmem:[#allocation2 + $0x54] sm:$0xf] %v1218_v17  ;;  %v1113_v23 = vor.u32 %v1111_v57, %v6509_v0  ;;  %v2061_v25 = vshll.u32 %v6424_v37, 16  ;;  %v986_v30 = vsel %vm6224_vm11, %v978_v49, %v985_v14 }
 0x156   : > { %v1229_v4 = vsel %vm6065_vm3, %v987_v19, %v1228_v53  ;;  %1227 = vst.msk [vmem:[#allocation2 + $0x64] sm:$0xf] %vm327_vm5, %v986_v30  ;;  %v1091_v32 = vshrl.u32 %v5276_v24, 16  ;;  %v1094_v33 = vshll.u32 %v5276_v24, 16  ;;  %v2066_v42 = vshll.u32 %v6426_v7, 16 }
 0x157   : > { %v968_v31 = vor.u32 %v966_v10, %v965_v21  ;;  %v970_v35 = vrot.slane %v965_v21, 4  ;;  %1230 = vst [vmem:[#allocation2 + $0x68] sm:$0x1] %v1229_v4  ;;  %v1281_v36 = vsel %vm6194_vm10, %v1113_v23, %v1280_v61  ;;  %v2063_v38 = vrot.slane %v2061_v25, 1  ;;  %v1273_v53 = vld [vmem:[#allocation2 + $0xb4] sm:$0xf] }
 0x158   : > { %1282 = vst [vmem:[#allocation2 + $0xc0] sm:$0xf] %v1281_v36  ;;  %v6528_v43 = vcombine.low %v4962_v26, %v4963_v29  ;;  %v1093_v46 = vrot.slane %v1091_v32, 7  ;;  %v6531_v49 = vcombine.low %v4964_v22, %v4964_v22  ;;  %v2068_v54 = vrot.slane %v2066_v42, 1  ;;  %v1277_v4 = vld [vmem:[#allocation2 + $0xbc] sm:$0x1] }
 0x159   : > { %v969_v12 = vsel %vm6224_vm11, %v961_v56, %v968_v31  ;;  %v1222_v40 = vsel %vm6065_vm3, %v970_v35, %v1221_v5  ;;  %v2064_v6 = vor.u32 %v2063_v38, %v2059_v52  ;;  %v719_v59 = vadd.f32 %v6482_v51, %v5465_v16 }
 0x15a   : > { %1220 = vst.msk [vmem:[#allocation2 + $0x58] sm:$0xf] %vm327_vm5, %v969_v12  ;;  %1223 = vst [vmem:[#allocation2 + $0x5c] sm:$0x1] %v1222_v40  ;;  %v2276_v57 = vrot.slane %v6528_v43, 1  ;;  %v711_v56 = vadd.f32 %v6482_v51, %v710_v39  ;;  %v1114_v60 = vrot.slane %v6509_v0, 4  ;;  %v1096_v7 = vor.u32 %v1094_v33, %v1093_v46 }
 0x15b   : > { %v1097_v61 = vrot.slane %v1093_v46, 4  ;;  %v2277_v13 = vrot.slane %v6531_v49, 1  ;;  %v2069_v50 = vsel %vm1467_vm8, %v2064_v6, %v2068_v54  ;;  %v753_v10 = vmax.f32 %v719_v59, 0.0 }
 0x15c   : > { %v751_v5 = vmax.f32 %v711_v56, 0.0  ;;  %v2155_v11 = vshrl.u32 %v6435_v48, 16  ;;  %v1274_v17 = vsel %vm6194_vm10, %v1096_v7, %v1273_v53  ;;  %2220 = vrot.lane.b32.xlu1 %v2069_v50, %s5918_s19  ;;  %v2157_v51 = vshll.u32 %v6435_v48, 16 }
 0x15d   : > { %v2278_v16 = vsel %vm1692_vm7, %v2276_v57, %v2277_v13  ;;  %v2162_v0 = vshll.u32 %v6438_v8, 16  ;;  %1275 = vst [vmem:[#allocation2 + $0xb4] sm:$0xf] %v1274_v17  ;;  %v5279_v14 = vpack.c.bf16 %v753_v10, %v753_v10  ;;  %v3398_v21 = vshrl.u32 %v6466_v34, 16  ;;  %v1284_v8 = vld [vmem:[#allocation2 + $0xc8] sm:$0x1] }
 0x15e   : > { %2314 = vrot.lane.b32.xlu0 %v2278_v16, %s5917_s12  ;;  %v5277_v19 = vpack.c.bf16 %v751_v5, %v751_v5  ;;  %v3400_v22 = vshll.u32 %v6466_v34, 16  ;;  %v2159_v23 = vrot.slane %v2157_v51, 1  ;;  %v3405_v24 = vshll.u32 %v6446_v18, 16  ;;  %v4949_v10 = vld [vmem:[#allocation2 + $0x50] sm:$0x1] }
 0x15f   : > { %v2164_v41 = vrot.slane %v2162_v0, 1  ;;  %v3386_v52 = vshrl.u32 %v6456_v28, 16  ;;  %v1116_v25 = vshrl.u32 %v5279_v14, 16  ;;  %v1119_v26 = vshll.u32 %v5279_v14, 16  ;;  %v4947_v0 = vld [vmem:[#allocation2 + $0x48] sm:$0xf] }
 0x160   : > { %v1099_v29 = vshrl.u32 %v5277_v19, 16  ;;  %v1102_v30 = vshll.u32 %v5277_v19, 16  ;;  %v2160_v31 = vor.u32 %v2159_v23, %v2155_v11  ;;  %v3402_v35 = vrot.slane %v3400_v22, 1  ;;  %v4946_v22 = vld [vmem:[#allocation2 + $0x44] sm:$0x1] }
 0x161   : > { %v3407_v36 = vrot.slane %v3405_v24, 1  ;;  %v3388_v32 = vshll.u32 %v6456_v28, 16  ;;  %v1118_v33 = vrot.slane %v1116_v25, 7  ;;  %v3393_v34 = vshll.u32 %v6441_v3, 16 }
 0x162   : > { %v1101_v38 = vrot.slane %v1099_v29, 7  ;;  %v2047_v39 = vshrl.u32 %v6491_v62, 16  ;;  %v2165_v18 = vsel %vm1467_vm8, %v2160_v31, %v2164_v41  ;;  %v3403_v12 = vor.u32 %v3402_v35, %v3398_v21  ;;  %v4948_v21 = vld [vmem:[#allocation2 + $0x4c] sm:$0xf]  ;;  %v4973_v29 = vld [vmem:[#allocation2 + $0xb0] sm:$0x1] }
 0x163   : > { %v3390_v40 = vrot.slane %v3388_v32, 1  ;;  %v2049_v42 = vshll.u32 %v6491_v62, 16  ;;  %v1121_v46 = vor.u32 %v1119_v26, %v1118_v33  ;;  %v1123_v6 = vrot.slane %v1118_v33, 4  ;;  %2236 = vrot.lane.b32.xlu1 %v2165_v18, %s5918_s19  ;;  %v4971_v26 = vld [vmem:[#allocation2 + $0xa8] sm:$0xf] }
 0x164   : > { %v1104_v53 = vor.u32 %v1102_v30, %v1101_v38  ;;  %v1106_v54 = vrot.slane %v1101_v38, 4  ;;  %v3408_v28 = vsel %vm1467_vm8, %v3403_v12, %v3407_v36  ;;  %v3395_v59 = vrot.slane %v3393_v34, 1  ;;  %v4970_v32 = vld [vmem:[#allocation2 + $0xa4] sm:$0x1] }
 0x165   : > { %v3391_v57 = vor.u32 %v3390_v40, %v3386_v52  ;;  %v2051_v56 = vrot.slane %v2049_v42, 1  ;;  %v1122_v3 = vsel %vm6224_vm11, %v1114_v60, %v1121_v46  ;;  %v1285_v7 = vsel %vm6065_vm3, %v1123_v6, %v1284_v8  ;;  %3569 = vrot.lane.b32.xlu0 %v3408_v28, %s5918_s19  ;;  %v4944_v52 = vld [vmem:[#allocation2 + $0x3c] sm:$0xf]  ;;  %v6591_v18 = vld [vmem:[#allocation2 + $0x44] ss:$0 sps:$4 sm:$0x11]  }
 0x166   : > { %v1105_v13 = vsel %vm6224_vm11, %v1097_v61, %v1104_v53  ;;  %v1278_v50 = vsel %vm6065_vm3, %v1106_v54, %v1277_v4  ;;  %1283 = vst.msk [vmem:[#allocation2 + $0xc4] sm:$0xf] %vm327_vm5, %v1122_v3  ;;  %1286 = vst [vmem:[#allocation2 + $0xc8] sm:$0x1] %v1285_v7  ;;  %v2054_v11 = vshll.u32 %v6493_v63, 16  ;;  %v1507_v61 = vshll.u32 %v6473_v44, 16 }
 0x167   : > { %1276 = vst.msk [vmem:[#allocation2 + $0xb8] sm:$0xf] %vm327_vm5, %v1105_v13  ;;  %1279 = vst [vmem:[#allocation2 + $0xbc] sm:$0x1] %v1278_v50  ;;  %v3396_v60 = vsel %vm1467_vm8, %v3391_v57, %v3395_v59  ;;  %v2052_v5 = vor.u32 %v2051_v56, %v2047_v39  ;;  %v1512_v17 = vshll.u32 %v6451_v2, 16  ;;  %v2143_v16 = vshrl.u32 %v6528_v43, 16 }
 0x168   : > { %3567 = vrot.lane.b32.xlu1 %v3396_v60, %s5918_s19  ;;  %v2145_v51 = vshll.u32 %v6528_v43, 16  ;;  %v2056_v14 = vrot.slane %v2054_v11, 1  ;;  %v2150_v19 = vshll.u32 %v6531_v49, 16  ;;  %v1509_v23 = vrot.slane %v1507_v61, 1  ;;  %v4945_v49 = vld [vmem:[#allocation2 + $0x40] sm:$0xf] }
 0x169   : > { %v1514_v63 = vrot.slane %v1512_v17, 1  ;;  %v6578_v24 = vcombine.low %v4949_v10, %v4949_v10  ;;  %v6581_v2 = vcombine.low %v4947_v0, %v4948_v21  ;;  %v4972_v4 = vld [vmem:[#allocation2 + $0xac] sm:$0xf]  ;;  %v6585_v35 = vcombine.low %v4944_v52, %v4945_v49  ;;  %v4968_v46 = vld [vmem:[#allocation2 + $0x9c] sm:$0xf] }
 0x16a   : > { %v2147_v41 = vrot.slane %v2145_v51, 1  ;;  %v2057_v44 = vsel %vm1467_vm8, %v2052_v5, %v2056_v14  ;;  %v2152_v25 = vrot.slane %v2150_v19, 1  ;;  %v1510_v30 = vor.u32 %v1509_v23, %v1505_v20  ;;  %v4969_v6 = vld [vmem:[#allocation2 + $0xa0] sm:$0xf]  ;;  %v4952_v5 = vld [vmem:[#allocation2 + $0x5c] sm:$0x1] }
 0x16b   : > { %2218 = vrot.lane.b32.xlu0 %v2057_v44, %s5918_s19  ;;  %v2261_v31 = vrot.slane %v6581_v2, 1  ;;  %v5000_v36 = vcombine.low %v4946_v22, %v4946_v22  ;;  %v2262_v38 = vrot.slane %v6578_v24, 1  ;;  %v6589_v34 = vcombine.low %v4971_v26, %v4972_v4  ;;  %v6602_v7 = vld [vmem:[#allocation2 + $0x3c] sm:$0xff]   ;;  %v4951_v49 = vld [vmem:[#allocation2 + $0x58] sm:$0xf] }
 0x16c   : > { %v2148_v8 = vor.u32 %v2147_v41, %v2143_v16  ;;  %v1515_v33 = vsel %vm1467_vm8, %v1510_v30, %v1514_v63  ;;  %v5009_v39 = vcombine.low %v4973_v29, %v4973_v29  ;;  %v2258_v40 = vrot.slane %v6585_v35, 1 }
 0x16d   : > { %1666 = vrot.lane.b32.xlu1 %v1515_v33, %s5918_s19  ;;  %v2259_v42 = vrot.slane %v5000_v36, 1  ;;  %v2285_v53 = vrot.slane %v6589_v34, 1  ;;  %v6598_v28 = vcombine.low %v4968_v46, %v4969_v6  ;;  %v5008_v57 = vcombine.low %v4970_v32, %v4970_v32 }
 0x16e   : > { %v2153_v12 = vsel %vm1467_vm8, %v2148_v8, %v2152_v25  ;;  %v2286_v54 = vrot.slane %v5009_v39, 1  ;;  %v2263_v59 = vsel %vm1692_vm7, %v2261_v31, %v2262_v38  ;;  %v2071_v50 = vshrl.u32 %v6585_v35, 16  ;;  %v4950_v25 = vld [vmem:[#allocation2 + $0x54] sm:$0xf]  ;;  %v4976_v32 = vld [vmem:[#allocation2 + $0xbc] sm:$0x1] }
 0x16f   : > { %2234 = vrot.lane.b32.xlu0 %v2153_v12, %s5918_s19  ;;  %v2282_v56 = vrot.slane %v6598_v28, 1  ;;  %v2283_v3 = vrot.slane %v5008_v57, 1  ;;  %v2260_v13 = vsel %vm1692_vm7, %v2258_v40, %v2259_v42  ;;  %v2073_v10 = vshll.u32 %v6585_v35, 16 }
 0x170   : > { %v2078_v60 = vshll.u32 %v5000_v36, 16  ;;  %v2287_v11 = vsel %vm1692_vm7, %v2285_v53, %v2286_v54  ;;  %v3606_v20 = vrot.slane %v6602_v7, 1  ;;  %v3607_v61 = vrot.slane %v6591_v18, 1  ;;  %v4974_v53 = vld [vmem:[#allocation2 + $0xb4] sm:$0xf] }
 0x171   : > { %2304 = vrot.lane.b32.xlu1 %v2263_v59, %s5917_s12  ;;  %v2085_v17 = vshll.u32 %v6581_v2, 16  ;;  %v2284_v16 = vsel %vm1692_vm7, %v2282_v56, %v2283_v3  ;;  %v2075_v51 = vrot.slane %v2073_v10, 1  ;;  %v2083_v0 = vshrl.u32 %v6581_v2, 16 }
 0x172   : > { %v2169_v14 = vshll.u32 %v6598_v28, 16  ;;  %v2080_v19 = vrot.slane %v2078_v60, 1  ;;  %v2090_v22 = vshll.u32 %v6578_v24, 16  ;;  %v2167_v23 = vshrl.u32 %v6598_v28, 16 }
 0x173   : > { %2302 = vrot.lane.b32.xlu0 %v2260_v13, %s5917_s12  ;;  %v2087_v21 = vrot.slane %v2085_v17, 1  ;;  %v2076_v63 = vor.u32 %v2075_v51, %v2071_v50  ;;  %v2174_v52 = vshll.u32 %v5008_v57, 16  ;;  %v2181_v44 = vshll.u32 %v6589_v34, 16  ;;  %v4955_v57 = vld [vmem:[#allocation2 + $0x68] sm:$0x1] }
 0x174   : > { %v2171_v41 = vrot.slane %v2169_v14, 1  ;;  %v5002_v26 = vcombine.low %v4952_v5, %v4952_v5  ;;  %v2179_v29 = vshrl.u32 %v6589_v34, 16  ;;  %v2186_v8 = vshll.u32 %v5009_v39, 16  ;;  %v4975_v50 = vld [vmem:[#allocation2 + $0xb8] sm:$0xf]  ;;  %v6639_v5 = vld [vmem:[#allocation2 + $0x30] sm:$0xff]  }
 0x175   : > { %2320 = vrot.lane.b32.xlu1 %v2287_v11, %s5917_s12  ;;  %v2183_v30 = vrot.slane %v2181_v44, 1  ;;  %v3608_v24 = vsel %vm1692_vm7, %v3606_v20, %v3607_v61  ;;  %v2088_v4 = vor.u32 %v2087_v21, %v2083_v0  ;;  %v2092_v31 = vrot.slane %v2090_v22, 1  ;;  %v4953_v20 = vld [vmem:[#allocation2 + $0x60] sm:$0xf]  ;;  %v4979_v0 = vld [vmem:[#allocation2 + $0xc8] sm:$0x1] }
 0x176   : > { %v6623_v36 = vcombine.low %v4950_v25, %v4951_v49  ;;  %v2081_v33 = vsel %vm1467_vm8, %v2076_v63, %v2080_v19  ;;  %v2172_v38 = vor.u32 %v2171_v41, %v2167_v23  ;;  %v2176_v12 = vrot.slane %v2174_v52, 1  ;;  %v6651_v41 = vld [vmem:[#allocation2 + $0x38] ss:$0 sps:$4 sm:$0x11]   ;;  %v4978_v49 = vld [vmem:[#allocation2 + $0xc4] sm:$0xf] }
 0x177   : > { %2318 = vrot.lane.b32.xlu0 %v2284_v16, %s5917_s12  ;;  %v3412_v40 = vshll.u32 %v6602_v7, 16  ;;  %v2265_v42 = vrot.slane %v5002_v26, 1  ;;  %v2184_v46 = vor.u32 %v2183_v30, %v2179_v29  ;;  %v2188_v6 = vrot.slane %v2186_v8, 1  ;;  %v4954_v16 = vld [vmem:[#allocation2 + $0x64] sm:$0xf] }
 0x178   : > { %v2264_v39 = vrot.slane %v6623_v36, 1  ;;  %v6630_v54 = vcombine.low %v4976_v32, %v4976_v32  ;;  %v2093_v59 = vsel %vm1467_vm8, %v2088_v4, %v2092_v31  ;;  %v3410_v56 = vshrl.u32 %v6602_v7, 16  ;;  %v4977_v8 = vld [vmem:[#allocation2 + $0xc0] sm:$0xf] }
 0x179   : > { %3651 = vrot.lane.b32.xlu1 %v3608_v24, %s5917_s12  ;;  %v3414_v3 = vrot.slane %v3412_v40, 1  ;;  %v3417_v13 = vshll.u32 %v6591_v18, 16  ;;  %v2177_v10 = vsel %vm1467_vm8, %v2172_v38, %v2176_v12  ;;  %v6637_v60 = vcombine.low %v4974_v53, %v4975_v50 }
 0x17a   : > { %v2266_v11 = vsel %vm1692_vm7, %v2264_v39, %v2265_v42  ;;  %v2097_v61 = vshll.u32 %v6623_v36, 16  ;;  %v2189_v7 = vsel %vm1467_vm8, %v2184_v46, %v2188_v6  ;;  %v2289_v17 = vrot.slane %v6630_v54, 1  ;;  %v6666_v39 = vld [vmem:[#allocation2 + $0x48] sm:$0xff]  }
 0x17b   : > { %2222 = vrot.lane.b32.xlu0 %v2081_v33, %s5918_s19  ;;  %v2288_v18 = vrot.slane %v6637_v60, 1  ;;  %v5003_v51 = vcombine.low %v4955_v57, %v4955_v57  ;;  %v3415_v14 = vor.u32 %v3414_v3, %v3410_v56  ;;  %v3419_v19 = vrot.slane %v3417_v13, 1  ;;  %v6673_v3 = vld [vmem:[#allocation2 + $0x3c] sm:$0xff]  }
 0x17c   : > { %v6647_v21 = vcombine.low %v4953_v20, %v4954_v16  ;;  %v2102_v22 = vshll.u32 %v5002_v26, 16  ;;  %v2095_v23 = vshrl.u32 %v6623_v36, 16  ;;  %v2099_v63 = vrot.slane %v2097_v61, 1  ;;  %v6657_v26 = vpop.permute.xlu0 %1741 }
 0x17d   : > { %2224 = vrot.lane.b32.xlu1 %v2093_v59, %s5918_s19  ;;  %v1519_v52 = vshll.u32 %v6639_v5, 16  ;;  %v5011_v44 = vcombine.low %v4979_v0, %v4979_v0  ;;  %v2290_v25 = vsel %vm1692_vm7, %v2288_v18, %v2289_v17  ;;  %v2268_v30 = vrot.slane %v5003_v51, 1  ;;  %v6682_v18 = vld [vmem:[#allocation2 + $0x44] ss:$0 sps:$4 sm:$0x11]  }
 0x17e   : > { %v2267_v29 = vrot.slane %v6647_v21, 1  ;;  %v3420_v24 = vsel %vm1467_vm8, %v3415_v14, %v3419_v19  ;;  %v2104_v4 = vrot.slane %v2102_v22, 1  ;;  %v6660_v31 = vcombine.low %v4977_v8, %v4978_v49 }
 0x17f   : > { %2238 = vrot.lane.b32.xlu0 %v2177_v10, %s5918_s19  ;;  %v2109_v32 = vshll.u32 %v6647_v21, 16  ;;  %v2100_v33 = vor.u32 %v2099_v63, %v2095_v23  ;;  %v1517_v38 = vshrl.u32 %v6639_v5, 16  ;;  %v1521_v12 = vrot.slane %v1519_v52, 1 }
 0x180   : > { %v1524_v40 = vshll.u32 %v6651_v41, 16  ;;  %v2291_v42 = vrot.slane %v6660_v31, 1  ;;  %v2292_v46 = vrot.slane %v5011_v44, 1  ;;  %v2114_v6 = vshll.u32 %v5003_v51, 16  ;;  %v1661_v61 = vpop.permute.xlu0 %1660 }
 0x181   : > { %2240 = vrot.lane.b32.xlu1 %v2189_v7, %s5918_s19  ;;  %v2269_v53 = vsel %vm1692_vm7, %v2267_v29, %v2268_v30  ;;  %v2107_v57 = vshrl.u32 %v6647_v21, 16  ;;  %v2111_v59 = vrot.slane %v2109_v32, 1  ;;  %v2205_v56 = vshll.u32 %v6660_v31, 16  ;;  %v6694_v30 = vld [vmem:[#allocation2 + $0x48] sm:$0xff]  }
 0x182   : > { %v2105_v13 = vsel %vm1467_vm8, %v2100_v33, %v2104_v4  ;;  %v1522_v50 = vor.u32 %v1521_v12, %v1517_v38  ;;  %v1526_v10 = vrot.slane %v1524_v40, 1  ;;  %v3424_v20 = vshll.u32 %v6666_v39, 16  ;;  %v6702_v33 = vld [vmem:[#allocation2 + $0x50] ss:$0 sps:$4 sm:$0x11]  }
 0x183   : > { %2306 = vrot.lane.b32.xlu0 %v2266_v11, %s5917_s12  ;;  %v6677_v11 = vld [vmem:[#allocation2 + $0x50] ss:$0 sps:$4 sm:$0x11]   ;;  %v2293_v7 = vsel %vm1692_vm7, %v2291_v42, %v2292_v46  ;;  %v2116_v17 = vrot.slane %v2114_v6, 1  ;;  %v1705_v16 = vrot.slane %v6639_v5, 1  ;;  %v1706_v51 = vrot.slane %v6651_v41, 1 }
 0x184   : > { %v2210_v0 = vshll.u32 %v5011_v44, 16  ;;  %v2112_v14 = vor.u32 %v2111_v59, %v2107_v57  ;;  %v2203_v19 = vshrl.u32 %v6660_v31, 16  ;;  %v2207_v22 = vrot.slane %v2205_v56, 1  ;;  %v5778_v59 = vld [vmem:[#allocation2] sm:$0xff]  }
 0x185   : > { %3571 = vrot.lane.b32.xlu1 %v3420_v24, %s5918_s19  ;;  %v1531_v23 = vshll.u32 %v6673_v3, 16  ;;  %v1527_v52 = vsel %vm1467_vm8, %v1522_v50, %v1526_v10  ;;  %v3426_v29 = vrot.slane %v3424_v20, 1  ;;  %v3429_v5 = vshll.u32 %v6677_v11, 16 }
 0x186   : > { %v2212_v41 = vrot.slane %v2210_v0, 1  ;;  %v1536_v44 = vshll.u32 %v6682_v18, 16  ;;  %v2117_v49 = vsel %vm1467_vm8, %v2112_v14, %v2116_v17  ;;  %v2208_v24 = vor.u32 %v2207_v22, %v2203_v19  ;;  %v6731_v19 = vld [vmem:[#allocation2 + $0x68] ss:$0 sps:$4 sm:$0x11]   ;;  %v6733_v22 = vld [vmem:[#allocation2 + $0x6c] sm:$0xff]  }
 0x187   : > { %2322 = vrot.lane.b32.xlu0 %v2290_v25, %s5917_s12  ;;  %v3422_v25 = vshrl.u32 %v6666_v39, 16  ;;  %v1529_v4 = vshrl.u32 %v6673_v3, 16  ;;  %v1533_v32 = vrot.slane %v1531_v23, 1  ;;  %v1707_v38 = vsel %vm1692_vm7, %v1705_v16, %v1706_v51  ;;  %v6718_v16 = vld [vmem:[#allocation2 + $0x60] sm:$0xff]   ;;  %7791 = vst [vmem:[#allocation9_spill] sm:$0xff] %v6733_v22 }
 0x188   : > { %v3431_v40 = vrot.slane %v3429_v5, 1  ;;  %v1543_v42 = vshll.u32 %v6694_v30, 16  ;;  %v1538_v6 = vrot.slane %v1536_v44, 1  ;;  %v3610_v57 = vrot.slane %v6677_v11, 1  ;;  %7790 = vst [vmem:[#allocation8_spill] sm:$0xff] %v6718_v16 }
 0x189   : > { %2308 = vrot.lane.b32.xlu1 %v2269_v53, %s5917_s12  ;;  %v3427_v12 = vor.u32 %v3426_v29, %v3422_v25  ;;  %v3609_v53 = vrot.slane %v6666_v39, 1  ;;  %v1775_v56 = vsel %vm1773_vm15, %v5778_v59, %v1661_v61  ;;  %v1534_v50 = vor.u32 %v1533_v32, %v1529_v4  ;;  %v6726_v61 = vld [vmem:[#allocation2 + $0x5c] ss:$0 sps:$4 sm:$0x11]   ;;  %v6739_v29 = vld [vmem:[#allocation2 + $0x54] sm:$0xff]  }
 0x18a   : > { %v1541_v10 = vshrl.u32 %v6694_v30, 16  ;;  %v1548_v20 = vshll.u32 %v6702_v33, 16  ;;  %v1545_v17 = vrot.slane %v1543_v42, 1  ;;  %v1808_v39 = vsel %vm512_vm0, %v1775_v56, %v6657_v26  ;;  %v6756_v42 = vld [vmem:[#allocation2 + $0x54] sm:$0xff]  }
 0x18b   : > { %2226 = vrot.lane.b32.xlu0 %v2105_v13, %s5918_s19  ;;  %v2213_v13 = vsel %vm1467_vm8, %v2208_v24, %v2212_v41  ;;  %5506 = vmatprep.mubr.msk.bf16.mxu0 %vm2402_vm1, %v1808_v39  ;;  %v1539_v51 = vsel %vm1467_vm8, %v1534_v50, %v1538_v6  ;;  %v1708_v0 = vrot.slane %v6673_v3, 1  ;;  %v1709_v14 = vrot.slane %v6682_v18, 1  ;;  %v6743_v41 = vld [vmem:[#allocation2 + $0x5c] ss:$0 sps:$4 sm:$0x11]  }
 0x18c   : > { %v3611_v23 = vsel %vm1692_vm7, %v3609_v53, %v3610_v57  ;;  %v1550_v25 = vrot.slane %v1548_v20, 1  ;;  %v3448_v5 = vshll.u32 %v6718_v16, 16  ;;  %v3612_v18 = vrot.slane %v6739_v29, 1  ;;  %v6764_v59 = vld [vmem:[#allocation2 + $0x74] ss:$0 sps:$4 sm:$0x11]  }
 0x18d   : > { %v6688_v63 = vpop.permute.xlu1 %2296  ;;  %2324 = vrot.lane.b32.xlu1 %v2293_v7, %s5917_s12  ;;  %v3432_v7 = vsel %vm1467_vm8, %v3427_v12, %v3431_v40  ;;  %v3613_v44 = vrot.slane %v6726_v61, 1  ;;  %v1712_v24 = vrot.slane %v6702_v33, 1  ;;  %v1710_v32 = vsel %vm1692_vm7, %v1708_v0, %v1709_v14  ;;  %v5747_v33 = vld [vmem:[%s7759_s5 + $0x8] ss:$0 sps:$4 sm:$0xff]   ;;  %v6779_v14 = vld [vmem:[#allocation2 + $0x6c] sm:$0xff]  }
 0x18e   : > { %v3460_v12 = vshll.u32 %v6733_v22, 16  ;;  %v3446_v6 = vshrl.u32 %v6718_v16, 16  ;;  %v3450_v53 = vrot.slane %v3448_v5, 1  ;;  %v2193_v57 = vshll.u32 %v6637_v60, 16  ;;  %v6783_v5 = vld [vmem:[#allocation2 + $0x60] sm:$0xff]   ;;  %5611 = vmatprep.subr.msk.bf16.mxu0 %vm2435_vm2, %v5747_v33 }
 0x18f   : > { %1668 = vrot.lane.b32.xlu0 %v1527_v52, %s5918_s19  ;;  %v1546_v52 = vor.u32 %v1545_v17, %v1541_v10  ;;  %v1714_v10 = vrot.slane %v6756_v42, 1  ;;  %v1715_v20 = vrot.slane %v6743_v41, 1  ;;  %v5749_v17 = vld [vmem:[%s7759_s5 + $0x14] ss:$0 sps:$4 sm:$0xff]   ;;  %v2191_v0 = vshrl.u32 %v6637_v60, 16 }
 0x190   : > { %5610 = vmatprep.subr.msk.bf16.mxu1 %vm2435_vm2, %v5749_v17 }
 0x191   : > { %2228 = vrot.lane.b32.xlu1 %v2117_v49, %s5918_s19  ;;  %v1711_v49 = vrot.slane %v6694_v30, 1  ;;  %v1551_v40 = vsel %vm1467_vm8, %v1546_v52, %v1550_v25  ;;  %v2195_v52 = vrot.slane %v2193_v57, 1  ;;  %v2198_v25 = vshll.u32 %v6630_v54, 16  ;;  %v5754_v54 = vld [vmem:[%s7759_s5 + $0xc] sm:$0xff]  }
 0x193   : > { %v6698_v8 = vpop.permute.xlu0 %3645  ;;  %1749 = vrot.lane.b32.xlu0 %v1707_v38, %s5917_s12  ;;  %v3453_v38 = vshll.u32 %v6731_v19, 16  ;;  %v1713_v50 = vsel %vm1692_vm7, %v1711_v49, %v1712_v24  ;;  %v3458_v49 = vshrl.u32 %v6733_v22, 16  ;;  %v3465_v24 = vshll.u32 %v6764_v59, 16 }
 0x194   : > { %v6708_v46 = vpop.permute.xlu1 %2312  ;;  %v2196_v57 = vor.u32 %v2195_v52, %v2191_v0  ;;  %v3615_v52 = vrot.slane %v6718_v16, 1 }
 0x195   : > { %2244 = vrot.lane.b32.xlu1 %v2213_v13, %s5918_s19  ;;  %v3614_v13 = vsel %vm1692_vm7, %v3612_v18, %v3613_v44  ;;  %v3455_v39 = vrot.slane %v3453_v38, 1  ;;  %v2642_v44 = vsel %vm2435_vm2, %v5747_v33, 0  ;;  %v2200_v33 = vrot.slane %v2198_v25, 1 }
 0x196   : > { %5503 = vmatpush3.bf16.msra.mxu0 %v2642_v44  ;;  %v3616_v25 = vrot.slane %v6731_v19, 1 }
 0x197   : > { %v6722_v11 = vpop.permute.xlu0 %1745  ;;  %3573 = vrot.lane.b32.xlu0 %v3432_v7, %s5918_s19  ;;  %v5748_v7 = vld [vmem:[%s7759_s5] sm:$0xff]  }
 0x198   : > { %v6735_v26 = vpop.permute.xlu1 %2294  ;;  %5504 = vmatprep.subr.bf16.mxu0 %v5748_v7 }
 0x199   : > { %1670 = vrot.lane.b32.xlu1 %v1539_v51, %s5918_s19  ;;  %v3462_v51 = vrot.slane %v3460_v12, 1  ;;  %v1579_v12 = vshll.u32 %v6779_v14, 16 }
 0x19a   : > { %5505 = vmatpush3.bf16.msra.mxu0 %v5748_v7  ;;  %v6819_v7 = vld [vmem:[#allocation2 + $0x84] sm:$0xff]  }
 0x19b   : > { %3653 = vrot.lane.b32.xlu0 %v3611_v23, %s5917_s12  ;;  %v6749_v4 = vpop.permute.xlu0 %2310  ;;  %v3451_v23 = vor.u32 %v3450_v53, %v3446_v6  ;;  %v3463_v38 = vor.u32 %v3462_v51, %v3458_v49  ;;  %v2437_v6 = vsel %vm2435_vm2, %v5749_v17, 0  ;;  %v6810_v17 = vld [vmem:[%s7759_s5 + $0x20] ss:$0 sps:$4 sm:$0xff]   ;;  %v3618_v51 = vrot.slane %v6733_v22, 1  ;;  %7792 = vst [vmem:[#allocation10_spill] sm:$0xff] %v6819_v7 }
 0x19c   : > { %v6766_v56 = vpop.permute.xlu1 %1743  ;;  %5467 = vmatpush3.bf16.msra.mxu1 %v2437_v6  ;;  %v1581_v44 = vrot.slane %v1579_v12, 1  ;;  %v2201_v49 = vsel %vm1467_vm8, %v2196_v57, %v2200_v33  ;;  %v6825_v6 = vld [vmem:[#allocation2 + $0x78] sm:$0xff]  }
 0x19d   : > { %1751 = vrot.lane.b32.xlu1 %v1710_v32, %s5917_s12  ;;  %v1716_v32 = vsel %vm1692_vm7, %v1714_v10, %v1715_v20  ;;  %v3456_v53 = vsel %vm1467_vm8, %v3451_v23, %v3455_v39  ;;  %v3467_v10 = vrot.slane %v3465_v24, 1  ;;  %v5740_v20 = vld [vmem:[#allocation2 + $0x74] ss:$0 sps:$4 sm:$0x11]   ;;  %v3619_v39 = vrot.slane %v6764_v59, 1  ;;  %5468 = vmatprep.subr.bf16.mxu1 %v5754_v54 }
 0x19e   : > { %v1565_v24 = vshrl.u32 %v6783_v5, 16  ;;  %v1584_v19 = vshll.u32 %v5740_v20, 16  ;;  %v3472_v22 = vshll.u32 %v6825_v6, 16 }
 0x19f   : > { %1672 = vrot.lane.b32.xlu0 %v1551_v40, %s5918_s19  ;;  %v6785_v18 = vpop.permute.xlu0 %2216  ;;  %v3468_v23 = vsel %vm1467_vm8, %v3463_v38, %v3467_v10  ;;  %v1577_v38 = vshrl.u32 %v6779_v14, 16  ;;  %v3620_v33 = vsel %vm1692_vm7, %v3618_v51, %v3619_v39  ;;  %v6833_v10 = vld [vmem:[#allocation2 + $0x8c] ss:$0 sps:$4 sm:$0x11]   ;;  %v5780_v39 = vld [vmem:[#allocation2 + $0x18] sm:$0xff]  }
 0x1a0   : > { %v6798_v40 = vpop.permute.xlu1 %2232  ;;  %5469 = vmatpush3.bf16.msra.mxu1 %v5754_v54  ;;  %v1586_v51 = vrot.slane %v1584_v19, 1 }
 0x1a1   : > { %3655 = vrot.lane.b32.xlu1 %v3614_v13, %s5917_s12  ;;  %v6803_v13 = vld [vmem:[#allocation2 + $0x68] ss:$0 sps:$4 sm:$0x11]   ;;  %5612 = vmatprep.subr.msk.bf16.mxu1 %vm2435_vm2, %v6810_v17 }
 0x1a2   : > { %v1572_v59 = vshll.u32 %v6803_v13, 16  ;;  %v1718_v19 = vrot.slane %v6803_v13, 1 }
 0x1a3   : > { %1753 = vrot.lane.b32.xlu0 %v1713_v50, %s5917_s12  ;;  %v1567_v50 = vshll.u32 %v6783_v5, 16  ;;  %v6814_v0 = vpop.permute.xlu0 %3565 }
 0x1a4   : > { %v1574_v45 = vrot.slane %v1572_v59, 1  ;;  %v3489_v59 = vshll.u32 %v6833_v10, 16 }
 0x1a5   : > { %1755 = vrot.lane.b32.xlu1 %v1716_v32, %s5917_s12  ;;  %v1569_v32 = vrot.slane %v1567_v50, 1  ;;  %v1582_v50 = vor.u32 %v1581_v44, %v1577_v38  ;;  %v1720_v38 = vrot.slane %v6779_v14, 1 }
 0x1a7   : > { %3577 = vrot.lane.b32.xlu0 %v3456_v53, %s5918_s19  ;;  %v5779_v53 = vld [vmem:[#allocation2 + $0xc] sm:$0xff]   ;;  %v1570_v15 = vor.u32 %v1569_v32, %v1565_v24  ;;  %v3482_v24 = vshrl.u32 %v6819_v7, 16 }
 0x1a9   : > { %3579 = vrot.lane.b32.xlu1 %v3468_v23, %s5918_s19  ;;  %v3484_v23 = vshll.u32 %v6819_v7, 16 }
 0x1ab   : > { %2242 = vrot.lane.b32.xlu0 %v2201_v49, %s5918_s19  ;;  %v3617_v49 = vsel %vm1692_vm7, %v3615_v52, %v3616_v25  ;;  %v1587_v25 = vsel %vm1467_vm8, %v1582_v50, %v1586_v51  ;;  %v3486_v32 = vrot.slane %v3484_v23, 1  ;;  %v2329_v50 = vsel %vm1773_vm15, %v6278_v55, %v6785_v18  ;;  %v6865_v51 = vld [vmem:[#allocation2 + $0x8c] ss:$0 sps:$4 sm:$0x11]  }
 0x1ac   : > { %v3470_v23 = vshrl.u32 %v6825_v6, 16 }
 0x1ad   : > { %v1663_v12 = vpop.permute.xlu1 %1662  ;;  %3659 = vrot.lane.b32.xlu1 %v3620_v33, %s5917_s12 }
 0x1ae   : > { %v1777_v57 = vsel %vm1773_vm15, %v5779_v53, %v1663_v12  ;;  %v5746_v12 = vld [vmem:[#allocation2 + $0x80] ss:$0 sps:$4 sm:$0x11]   ;;  %v6850_v53 = vld [vmem:[#allocation2 + $0x84] sm:$0xff]  }
 0x1af   : > { %v1810_v54 = vsel %vm512_vm0, %v1777_v57, %v6766_v56  ;;  %3657 = vrot.lane.b32.xlu0 %v3617_v49, %s5917_s12  ;;  %v1721_v56 = vrot.slane %v5740_v20, 1  ;;  %7793 = vst [vmem:[#allocation11_spill] sm:$0xff] %v6850_v53  ;;  %v1717_v20 = vrot.slane %v6783_v5, 1  ;;  %v6857_v57 = vld [vmem:[#allocation2 + $0x78] sm:$0xff]  }
 0x1b0   : > { %v1665_v16 = vpop.permute.xlu0 %1664  ;;  %5507 = vmatmul.mubr.msk.bf16.vlgmr.msra.gmra.mxu0 %vm2402_vm1, %v1810_v54  ;;  %v3477_v54 = vshll.u32 %v5746_v12, 16  ;;  %v1591_v55 = vshll.u32 %v6857_v57, 16 }
 0x1b1   : > { %v1779_v44 = vsel %vm1773_vm15, %v5780_v39, %v1665_v16  ;;  %1678 = vrot.lane.b32.xlu1 %v1587_v25, %s5918_s19  ;;  %v1575_v16 = vsel %vm1467_vm8, %v1570_v15, %v1574_v45  ;;  %v1722_v33 = vsel %vm1692_vm7, %v1720_v38, %v1721_v56  ;;  %v3487_v45 = vor.u32 %v3486_v32, %v3482_v24  ;;  %v5753_v24 = vld [vmem:[#allocation2 + $0x80] ss:$0 sps:$4 sm:$0x11]  }
 0x1b2   : > { %v1812_v52 = vsel %vm512_vm0, %v1779_v44, %v6722_v11  ;;  %v3474_v11 = vrot.slane %v3472_v22, 1  ;;  %v3491_v15 = vrot.slane %v3489_v59, 1  ;;  %v1603_v22 = vshll.u32 %v6850_v53, 16 }
 0x1b3   : > { %5510 = vmatprep.mubr.msk.bf16.mxu0 %vm2402_vm1, %v1812_v52  ;;  %1676 = vrot.lane.b32.xlu0 %v1575_v16, %s5918_s19  ;;  %v1719_v39 = vsel %vm1692_vm7, %v1717_v20, %v1718_v19  ;;  %v2361_v38 = vsel %vm512_vm0, %v2329_v50, %v6688_v63  ;;  %v6878_v56 = vpop.permute.xlu1 %2300  ;;  %v3624_v52 = vrot.slane %v6819_v7, 1  ;;  %v3625_v25 = vrot.slane %v6833_v10, 1 }
 0x1b4   : > { %v3475_v44 = vor.u32 %v3474_v11, %v3470_v23  ;;  %v3492_v32 = vsel %vm1467_vm8, %v3487_v45, %v3491_v15  ;;  %v1605_v59 = vrot.slane %v1603_v22, 1  ;;  %v1608_v16 = vshll.u32 %v6865_v51, 16  ;;  %v6898_v22 = vld [vmem:[#allocation2 + $0x98] ss:$0 sps:$4 sm:$0x11]  }
 0x1b5   : > { %v2215_v49 = vpop.permute.xlu0 %2214  ;;  %1759 = vrot.lane.b32.xlu1 %v1722_v33, %s5917_s12  ;;  %v3621_v20 = vrot.slane %v6825_v6, 1  ;;  %v3622_v19 = vrot.slane %v5746_v12, 1  ;;  %v1593_v11 = vrot.slane %v1591_v55, 1  ;;  %v6890_v33 = vld [vmem:[#allocation2 + $0x90] sm:$0xff]   ;;  %v1589_v10 = vshrl.u32 %v6857_v57, 16 }
 0x1b6   : > { %v2327_v13 = vsel %vm1773_vm15, %v6334_v1, %v2215_v49  ;;  %v3479_v1 = vrot.slane %v3477_v54, 1  ;;  %7794 = vst [vmem:[#allocation12_spill] sm:$0xff] %v6890_v33  ;;  %v1596_v50 = vshll.u32 %v5753_v24, 16  ;;  %v3436_v23 = vshll.u32 %v6739_v29, 16 }
 0x1b7   : > { %v2359_v18 = vsel %vm512_vm0, %v2327_v13, %v6735_v26  ;;  %1757 = vrot.lane.b32.xlu0 %v1719_v39, %s5917_s12  ;;  %v1601_v26 = vshrl.u32 %v6850_v53, 16  ;;  %v3626_v54 = vsel %vm1692_vm7, %v3624_v52, %v3625_v25  ;;  %v1610_v45 = vrot.slane %v1608_v16, 1  ;;  %v6896_v15 = vpop.permute.xlu1 %2316 }
 0x1b8   : > { %5470 = vmatprep.mubr.msk.bf16.mxu1 %vm2402_vm1, %v2359_v18  ;;  %v3480_v63 = vsel %vm1467_vm8, %v3475_v44, %v3479_v1  ;;  %v3623_v12 = vsel %vm1692_vm7, %v3621_v20, %v3622_v19  ;;  %v1594_v13 = vor.u32 %v1593_v11, %v1589_v10  ;;  %v3496_v39 = vshll.u32 %v6890_v33, 16  ;;  %v6914_v20 = vld [vmem:[#allocation2 + $0x9c] sm:$0xff]   ;;  %v6919_v11 = vld [vmem:[#allocation2 + $0x90] sm:$0xff]   ;;  %v390_v10 = vld [vmem:[#allocation2 + $0xcc] sm:$0x1] }
 0x1b9   : > { %5471 = vmatmul.mubr.msk.bf16.vlgmr.msra.gmra.mxu1 %vm2402_vm1, %v2361_v38  ;;  %3583 = vrot.lane.b32.xlu1 %v3492_v32, %s5918_s19  ;;  %v1606_v49 = vor.u32 %v1605_v59, %v1601_v26  ;;  %v1726_v44 = vrot.slane %v6850_v53, 1  ;;  %v1727_v55 = vrot.slane %v6865_v51, 1  ;;  %v1723_v18 = vrot.slane %v6857_v57, 1  ;;  %7795 = vst [vmem:[#allocation13_spill] sm:$0xff] %v6914_v20  ;;  %7796 = vst [vmem:[#allocation14_spill] sm:$0xff] %v6919_v11 }
 0x1ba   : > { %v1724_v38 = vrot.slane %v5753_v24, 1  ;;  %v1598_v52 = vrot.slane %v1596_v50, 1  ;;  %v3434_v25 = vshrl.u32 %v6739_v29, 16  ;;  %v3438_v32 = vrot.slane %v3436_v23, 1 }
 0x1bb   : > { %3581 = vrot.lane.b32.xlu0 %v3480_v63, %s5918_s19  ;;  %v6907_v1 = vpop.permute.xlu0 %2230  ;;  %v3441_v26 = vshll.u32 %v6726_v61, 16  ;;  %v1611_v59 = vsel %vm1467_vm8, %v1606_v49, %v1610_v45  ;;  %v3501_v16 = vshll.u32 %v6898_v22, 16  ;;  %v1555_v63 = vshll.u32 %v6756_v42, 16  ;;  %v6924_v23 = vpop.permute.xlu1 %3647  ;;  %v446_v49 = vld [vmem:[#allocation2 + $0xd4] sm:$0x1] }
 0x1bc   : > { %v1599_v51 = vsel %vm1467_vm8, %v1594_v13, %v1598_v52  ;;  %v3494_v24 = vshrl.u32 %v6890_v33, 16  ;;  %v3498_v19 = vrot.slane %v3496_v39, 1  ;;  %v1728_v61 = vsel %vm1692_vm7, %v1726_v44, %v1727_v55  ;;  %v5776_v52 = vld [vmem:[%s7759_s5 + $0x18] sm:$0xff]  }
 0x1bd   : > { %3663 = vrot.lane.b32.xlu1 %v3626_v54, %s5917_s12  ;;  %v1725_v50 = vsel %vm1692_vm7, %v1723_v18, %v1724_v38  ;;  %v6926_v54 = vld [vmem:[#allocation2 + $0xa4] ss:$0 sps:$4 sm:$0x11]   ;;  %v3439_v45 = vor.u32 %v3438_v32, %v3434_v25  ;;  %v1553_v13 = vshrl.u32 %v6756_v42, 16  ;;  %v1560_v39 = vshll.u32 %v6743_v41, 16 }
 0x1be   : > { %v1557_v44 = vrot.slane %v1555_v63, 1  ;;  %v3508_v55 = vshll.u32 %v6914_v20, 16  ;;  %v391_v18 = vsel %vm6065_vm3, 0, %v390_v10  ;;  %v3499_v38 = vor.u32 %v3498_v19, %v3494_v24  ;;  %v6939_v25 = vld [vmem:[#allocation2 + $0x98] ss:$0 sps:$4 sm:$0x11]  }
 0x1bf   : > { %3661 = vrot.lane.b32.xlu0 %v3623_v12, %s5917_s12  ;;  %v3443_v12 = vrot.slane %v3441_v26, 1  ;;  %v1615_v41 = vshll.u32 %v6919_v11, 16  ;;  %392 = vst [vmem:[#allocation2 + $0xcc] sm:$0x1] %v391_v18  ;;  %v447_v32 = vsel %vm6101_vm6, 0, %v446_v49  ;;  %v3786_v26 = vsel %vm2435_vm2, %v6810_v17, 0  ;;  %v6950_v10 = vpop.permute.xlu1 %1747 }
 0x1c0   : > { %448 = vst [vmem:[#allocation2 + $0xd4] sm:$0x1] %v447_v32  ;;  %5539 = vmatpush3.bf16.msra.mxu1 %v3786_v26  ;;  %v3627_v63 = vrot.slane %v6890_v33, 1  ;;  %v3628_v24 = vrot.slane %v6898_v22, 1  ;;  %v1558_v19 = vor.u32 %v1557_v44, %v1553_v13  ;;  %v3506_v58 = vshrl.u32 %v6914_v20, 16  ;;  %v6954_v49 = vld [vmem:[#allocation2 + $0x9c] sm:$0xff]  }
 0x1c1   : > { %1682 = vrot.lane.b32.xlu1 %v1611_v59, %s5918_s19  ;;  %v3503_v59 = vrot.slane %v3501_v16, 1  ;;  %v3444_v27 = vsel %vm1467_vm8, %v3439_v45, %v3443_v12  ;;  %v1562_v16 = vrot.slane %v1560_v39, 1  ;;  %5540 = vmatprep.subr.bf16.mxu1 %v5776_v52  ;;  %v3513_v17 = vshll.u32 %v6926_v54, 16  ;;  %7797 = vst [vmem:[#allocation15_spill] sm:$0xff] %v6954_v49  ;;  %v6960_v39 = vld [vmem:[#allocation2 + $0xa8] sm:$0xff]  }
 0x1c2   : > { %v1613_v45 = vshrl.u32 %v6919_v11, 16  ;;  %v1617_v12 = vrot.slane %v1615_v41, 1  ;;  %v1620_v22 = vshll.u32 %v6939_v25, 16  ;;  %7798 = vst [vmem:[#allocation16_spill] sm:$0xff] %v6960_v39  ;;  %v3630_v53 = vrot.slane %v6914_v20, 1 }
 0x1c3   : > { %1680 = vrot.lane.b32.xlu0 %v1599_v51, %s5918_s19  ;;  %v6933_v51 = vpop.permute.xlu0 %3649  ;;  %v5762_v44 = vld [vmem:[#allocation2 + $0xa4] ss:$0 sps:$4 sm:$0x11]   ;;  %v1563_v18 = vsel %vm1467_vm8, %v1558_v19, %v1562_v16  ;;  %v3515_v26 = vrot.slane %v3513_v17, 1  ;;  %v3631_v33 = vrot.slane %v6926_v54, 1  ;;  %v1729_v16 = vrot.slane %v6919_v11, 1 }
 0x1c4   : > { %5541 = vmatpush3.bf16.msra.mxu1 %v5776_v52  ;;  %v1618_v41 = vor.u32 %v1617_v12, %v1613_v45  ;;  %v1730_v19 = vrot.slane %v6939_v25, 1  ;;  %v1632_v17 = vshll.u32 %v5762_v44, 16  ;;  %v3518_v12 = vshrl.u32 %v6960_v39, 16 }
 0x1c5   : > { %1763 = vrot.lane.b32.xlu1 %v1728_v61, %s5917_s12  ;;  %v3510_v61 = vrot.slane %v3508_v55, 1  ;;  %v6965_v55 = vld [vmem:[#allocation2 + $0xb0] ss:$0 sps:$4 sm:$0x11]   ;;  %v3632_v25 = vsel %vm1692_vm7, %v3630_v53, %v3631_v33  ;;  %v7001_v53 = vld [vmem:[#allocation2 + $0xb4] sm:$0xff]   ;;  %v1732_v33 = vrot.slane %v6954_v49, 1 }
 0x1c6   : > { %v3525_v54 = vshll.u32 %v6965_v55, 16  ;;  %7800 = vst [vmem:[#allocation18_spill] sm:$0xff] %v7001_v53  ;;  %vm4704_vm3 = vcmask 257152  }
 0x1c7   : > { %1761 = vrot.lane.b32.xlu0 %v1725_v50, %s5917_s12  ;;  %v3504_v50 = vsel %vm1467_vm8, %v3499_v38, %v3503_v59  ;;  %v6963_v13 = vpop.permute.xlu0 %2298  ;;  %v3511_v32 = vor.u32 %v3510_v61, %v3506_v58  ;;  %v1627_v59 = vshll.u32 %v6954_v49, 16  ;;  %v3629_v38 = vsel %vm1692_vm7, %v3627_v63, %v3628_v24 }
 0x1c8   : > { %v1625_v63 = vshrl.u32 %v6954_v49, 16  ;;  %v7015_v49 = vld [vmem:[#allocation2 + $0xc0] sm:$0xff]  }
 0x1c9   : > { %3575 = vrot.lane.b32.xlu1 %v3444_v27, %s5918_s19  ;;  %v1622_v27 = vrot.slane %v1620_v22, 1  ;;  %v3516_v58 = vsel %vm1467_vm8, %v3511_v32, %v3515_v26  ;;  %v1629_v24 = vrot.slane %v1627_v59, 1  ;;  %v1634_v59 = vrot.slane %v1632_v17, 1 }
 0x1cb   : > { %3585 = vrot.lane.b32.xlu0 %v3504_v50, %s5918_s19  ;;  %v3520_v50 = vshll.u32 %v6960_v39, 16  ;;  %v1623_v45 = vsel %vm1467_vm8, %v1618_v41, %v1622_v27  ;;  %v1630_v26 = vor.u32 %v1629_v24, %v1625_v63  ;;  %v1731_v41 = vsel %vm1692_vm7, %v1729_v16, %v1730_v19 }
 0x1cc   : > { %v1733_v63 = vrot.slane %v5762_v44, 1  ;;  %v3633_v24 = vrot.slane %v6960_v39, 1  ;;  %v3634_v16 = vrot.slane %v6965_v55, 1  ;;  %v3636_v19 = vrot.slane %v7001_v53, 1  ;;  %v7025_v39 = vld [vmem:[#allocation2 + $0xb4] sm:$0xff]  }
 0x1cd   : > { %1674 = vrot.lane.b32.xlu1 %v1563_v18, %s5918_s19  ;;  %v3522_v22 = vrot.slane %v3520_v50, 1  ;;  %v6985_v18 = vld [vmem:[#allocation2 + $0xa8] sm:$0xff]   ;;  %v3527_v50 = vrot.slane %v3525_v54, 1  ;;  %v1635_v17 = vsel %vm1467_vm8, %v1630_v26, %v1634_v59  ;;  %v7018_v55 = vld [vmem:[#allocation2 + $0xbc] ss:$0 sps:$4 sm:$0x11]  }
 0x1ce   : > { %v2221_v52 = vpop.permute.xlu1 %2220  ;;  %7799 = vst [vmem:[#allocation17_spill] sm:$0xff] %v6985_v18  ;;  %v1639_v20 = vshll.u32 %v6985_v18, 16  ;;  %v1734_v26 = vsel %vm1692_vm7, %v1732_v33, %v1733_v63  ;;  %v7031_v33 = vld [vmem:[#allocation2 + $0xc8] ss:$0 sps:$4 sm:$0x11]   ;;  %v1738_v63 = vrot.slane %v7025_v39, 1 }
 0x1cf   : > { %3665 = vrot.lane.b32.xlu0 %v3629_v38, %s5917_s12  ;;  %v6991_v38 = vld [vmem:[#allocation2 + $0xbc] ss:$0 sps:$4 sm:$0x11]   ;;  %v3523_v27 = vor.u32 %v3522_v22, %v3518_v12  ;;  %v2333_v59 = vsel %vm1773_vm15, %v6424_v37, %v2221_v52  ;;  %v3544_v37 = vshll.u32 %v7015_v49, 16 }
 0x1d0   : > { %v6978_v61 = vpop.permute.xlu0 %2314  ;;  %v3637_v12 = vrot.slane %v6991_v38, 1 }
 0x1d1   : > { %3587 = vrot.lane.b32.xlu1 %v3516_v58, %s5918_s19  ;;  %v6995_v58 = vld [vmem:[#allocation2 + $0xb0] ss:$0 sps:$4 sm:$0x11]   ;;  %v3528_v22 = vsel %vm1467_vm8, %v3523_v27, %v3527_v50  ;;  %v3635_v27 = vsel %vm1692_vm7, %v3633_v24, %v3634_v16  ;;  %v1739_v24 = vrot.slane %v7018_v55, 1  ;;  %v1735_v16 = vrot.slane %v6985_v18, 1 }
 0x1d2   : > { %v1644_v44 = vshll.u32 %v6995_v58, 16  ;;  %v3638_v50 = vsel %vm1692_vm7, %v3636_v19, %v3637_v12  ;;  %v2365_v12 = vsel %vm512_vm0, %v2333_v59, %v6878_v56  ;;  %v3549_v59 = vshll.u32 %v7031_v33, 16 }
 0x1d3   : > { %1684 = vrot.lane.b32.xlu0 %v1623_v45, %s5918_s19 }
 0x1d4   : > { %v1646_v7 = vrot.slane %v1644_v44, 1 }
 0x1d5   : > { %v6989_v32 = vpop.permute.xlu1 %2236  ;;  %3667 = vrot.lane.b32.xlu1 %v3632_v25, %s5917_s12  ;;  %v1637_v25 = vshrl.u32 %v6985_v18, 16 }
 0x1d7   : > { %1765 = vrot.lane.b32.xlu0 %v1731_v41, %s5917_s12  ;;  %v6999_v45 = vpop.permute.xlu0 %3569  ;;  %v1641_v41 = vrot.slane %v1639_v20, 1  ;;  %v3532_v20 = vshll.u32 %v7001_v53, 16 }
 0x1d9   : > { %1686 = vrot.lane.b32.xlu1 %v1635_v17, %s5918_s19 }
 0x1da   : > { %v7011_v54 = vpop.permute.xlu1 %3567 }
 0x1db   : > { %3589 = vrot.lane.b32.xlu0 %v3528_v22, %s5918_s19  ;;  %v1642_v22 = vor.u32 %v1641_v41, %v1637_v25  ;;  %v1736_v25 = vrot.slane %v6995_v58, 1  ;;  %v3530_v41 = vshrl.u32 %v7001_v53, 16 }
 0x1dd   : > { %v2219_v17 = vpop.permute.xlu0 %2218  ;;  %1767 = vrot.lane.b32.xlu1 %v1734_v26, %s5917_s12  ;;  %v1647_v56 = vsel %vm1467_vm8, %v1642_v22, %v1646_v7  ;;  %v1649_v7 = vshrl.u32 %v7025_v39, 16 }
 0x1de   : > { %v2331_v11 = vsel %vm1773_vm15, %v6491_v62, %v2219_v17  ;;  %v7040_v62 = vld [vmem:[#allocation2 + $0xcc] sm:$0xff]   ;;  %v3534_v17 = vrot.slane %v3532_v20, 1 }
 0x1df   : > { %3669 = vrot.lane.b32.xlu0 %v3635_v27, %s5917_s12  ;;  %v2363_v52 = vsel %vm512_vm0, %v2331_v11, %v6963_v13  ;;  %v1667_v19 = vpop.permute.xlu1 %1666  ;;  %v3537_v11 = vshll.u32 %v6991_v38, 16  ;;  %v5781_v13 = vld [vmem:[#allocation2 + $0x24] sm:$0xff]   ;;  %v3542_v27 = vshrl.u32 %v7015_v49, 16  ;;  %v3546_v38 = vrot.slane %v3544_v37, 1  ;;  %v3192_v37 = vld [vmem:[%s7757_s3] sm:$0xf] }
 0x1e0   : > { %5474 = vmatprep.mubr.msk.bf16.mxu1 %vm2402_vm1, %v2363_v52  ;;  %v1781_v44 = vsel %vm1773_vm15, %v5781_v13, %v1667_v19  ;;  %v1651_v52 = vshll.u32 %v7025_v39, 16  ;;  %v5775_v19 = vld [vmem:[#allocation2 + $0xd4] ss:$0 sps:$4 sm:$0x11]   ;;  %v3556_v20 = vshll.u32 %v7040_v62, 16  ;;  %v1740_v13 = vsel %vm1692_vm7, %v1738_v63, %v1739_v24  ;;  %5613 = vmatprep.subr.msk.bf16.mxu0 %vm2435_vm2, %v3192_v37 }
 0x1e1   : > { %5475 = vmatmul.mubr.msk.bf16.gmra.mxu1 %vm2402_vm1, %v2365_v12  ;;  %v7050_v26 = vpop.permute.xlu0 %2234  ;;  %3671 = vrot.lane.b32.xlu1 %v3638_v50, %s5917_s12  ;;  %v1814_v58 = vsel %vm512_vm0, %v1781_v44, %v6950_v10  ;;  %v3539_v53 = vrot.slane %v3537_v11, 1  ;;  %v3535_v18 = vor.u32 %v3534_v17, %v3530_v41  ;;  %v1656_v10 = vshll.u32 %v7018_v55, 16 }
 0x1e2   : > { %5511 = vmatmul.mubr.msk.bf16.gmra.mxu0 %vm2402_vm1, %v1814_v58  ;;  %v1653_v22 = vrot.slane %v1651_v52, 1  ;;  %v1737_v44 = vsel %vm1692_vm7, %v1735_v16, %v1736_v25  ;;  %v3551_v58 = vrot.slane %v3549_v59, 1  ;;  %v3554_v63 = vshrl.u32 %v7040_v62, 16 }
 0x1e3   : > { %1688 = vrot.lane.b32.xlu0 %v1647_v56, %s5918_s19  ;;  %v2305_v12 = vpop.permute.xlu1 %2304  ;;  %v3547_v56 = vor.u32 %v3546_v38, %v3542_v27  ;;  %v3558_v24 = vrot.slane %v3556_v20, 1  ;;  %v3561_v41 = vshll.u32 %v5775_v19, 16  ;;  %v3540_v17 = vsel %vm1467_vm8, %v3535_v18, %v3539_v53 }
 0x1e4   : > { %v1654_v52 = vor.u32 %v1653_v22, %v1649_v7  ;;  %v4085_v16 = vsel %vm2435_vm2, %v3192_v37, 0  ;;  %v3639_v27 = vrot.slane %v7015_v49, 1  ;;  %v3640_v38 = vrot.slane %v7031_v33, 1 }
 0x1e5   : > { %v2303_v50 = vpop.permute.xlu0 %2302  ;;  %1771 = vrot.lane.b32.xlu1 %v1740_v13, %s5917_s12  ;;  %v1658_v13 = vrot.slane %v1656_v10, 1  ;;  %v3552_v25 = vsel %vm1467_vm8, %v3547_v56, %v3551_v58  ;;  %5575 = vmatpush3.bf16.msra.mxu0 %v4085_v16  ;;  %v3559_v59 = vor.u32 %v3558_v24, %v3554_v63  ;;  %v3563_v20 = vrot.slane %v3561_v41, 1 }
 0x1e6   : > { %v3641_v22 = vsel %vm1692_vm7, %v3639_v27, %v3640_v38  ;;  %v3642_v37 = vrot.slane %v7040_v62, 1  ;;  %v3643_v56 = vrot.slane %v5775_v19, 1  ;;  %v2343_v38 = vsel %vm1773_vm15, %v6343_v9, %v6907_v1 }
 0x1e7   : > { %1769 = vrot.lane.b32.xlu0 %v1737_v44, %s5917_s12  ;;  %v7073_v11 = vpop.permute.xlu1 %2320  ;;  %v1659_v53 = vsel %vm1467_vm8, %v1654_v52, %v1658_v13  ;;  %v3564_v10 = vsel %vm1467_vm8, %v3559_v59, %v3563_v20  ;;  %v5782_v20 = vld [vmem:[#allocation2 + $0x30] sm:$0xff]  }
 0x1e9   : > { %v7075_v55 = vpop.permute.xlu0 %2318  ;;  %3591 = vrot.lane.b32.xlu1 %v3540_v17, %s5918_s19 }
 0x1eb   : > { %3593 = vrot.lane.b32.xlu0 %v3552_v25, %s5918_s19  ;;  %v7084_v44 = vpop.permute.xlu1 %3651 }
 0x1ed   : > { %v2223_v18 = vpop.permute.xlu0 %2222  ;;  %1690 = vrot.lane.b32.xlu1 %v1659_v53, %s5918_s19 }
 0x1ee   : > { %v2335_v7 = vsel %vm1773_vm15, %v6585_v35, %v2223_v18 }
 0x1ef   : > { %3673 = vrot.lane.b32.xlu0 %v3641_v22, %s5917_s12  ;;  %v2367_v33 = vsel %vm512_vm0, %v2335_v7, %v2303_v50  ;;  %v2225_v58 = vpop.permute.xlu1 %2224  ;;  %v3644_v50 = vsel %vm1692_vm7, %v3642_v37, %v3643_v56 }
 0x1f0   : > { %5478 = vmatprep.mubr.msk.bf16.mxu1 %vm2402_vm1, %v2367_v33  ;;  %v2337_v63 = vsel %vm1773_vm15, %v6581_v2, %v2225_v58  ;;  %v2375_v33 = vsel %vm512_vm0, %v2343_v38, %v6749_v4 }
 0x1f1   : > { %v2239_v35 = vpop.permute.xlu0 %2238  ;;  %3595 = vrot.lane.b32.xlu1 %v3564_v10, %s5918_s19  ;;  %v2369_v24 = vsel %vm512_vm0, %v2337_v63, %v2305_v12  ;;  %v2347_v10 = vsel %vm1773_vm15, %v6528_v43, %v7050_v26 }
 0x1f2   : > { %5479 = vmatmul.mubr.msk.bf16.gmra.mxu1 %vm2402_vm1, %v2369_v24  ;;  %v2379_v4 = vsel %vm512_vm0, %v2347_v10, %v6978_v61  ;;  %v5787_v10 = vld [vmem:[#allocation2 + $0x48] sm:$0xff]  }
 0x1f3   : > { %v2241_v41 = vpop.permute.xlu1 %2240 }
 0x1f5   : > { %v2307_v17 = vpop.permute.xlu0 %2306  ;;  %3675 = vrot.lane.b32.xlu1 %v3644_v50, %s5917_s12 }
 0x1f7   : > { %v7103_v19 = vpop.permute.xlu1 %3571 }
 0x1f9   : > { %v2323_v52 = vpop.permute.xlu0 %2322 }
 0x1fb   : > { %v2309_v13 = vpop.permute.xlu1 %2308 }
 0x1fd   : > { %v2227_v16 = vpop.permute.xlu0 %2226 }
 0x1fe   : > { %v2339_v2 = vsel %vm1773_vm15, %v6623_v36, %v2227_v16 }
 0x1ff   : > { %v2371_v25 = vsel %vm512_vm0, %v2339_v2, %v2307_v17  ;;  %v2325_v12 = vpop.permute.xlu1 %2324 }
 0x200   : > { %5482 = vmatprep.mubr.msk.bf16.mxu1 %vm2402_vm1, %v2371_v25 }
 0x201   : > { %v1669_v27 = vpop.permute.xlu0 %1668 }
 0x202   : > { %v1783_v18 = vsel %vm1773_vm15, %v5782_v20, %v1669_v27 }
 0x203   : > { %v2229_v59 = vpop.permute.xlu1 %2228 }
 0x204   : > { %v2341_v53 = vsel %vm1773_vm15, %v6647_v21, %v2229_v59  ;;  %v2345_v21 = vsel %vm1773_vm15, %v6325_v47, %v6798_v40  ;;  %v2351_v40 = vsel %vm1773_vm15, %v6598_v28, %v2239_v35 }
 0x205   : > { %v1750_v7 = vpop.permute.xlu0 %1749  ;;  %v2373_v22 = vsel %vm512_vm0, %v2341_v53, %v2309_v13  ;;  %v2377_v58 = vsel %vm512_vm0, %v2345_v21, %v6708_v46  ;;  %v2349_v46 = vsel %vm1773_vm15, %v6435_v48, %v6989_v32  ;;  %v2383_v48 = vsel %vm512_vm0, %v2351_v40, %v7075_v55  ;;  %v5785_v53 = vld [vmem:[#allocation2 + $0x30] sm:$0xff]  }
 0x206   : > { %v1816_v36 = vsel %vm512_vm0, %v1783_v18, %v1750_v7  ;;  %5483 = vmatmul.mubr.msk.bf16.gmra.mxu1 %vm2402_vm1, %v2373_v22  ;;  %v2381_v17 = vsel %vm512_vm0, %v2349_v46, %v6896_v15  ;;  %v5784_v18 = vld [vmem:[#allocation2 + $0x24] sm:$0xff]  }
 0x207   : > { %5514 = vmatprep.mubr.msk.bf16.mxu0 %vm2402_vm1, %v1816_v36  ;;  %v2245_v9 = vpop.permute.xlu1 %2244  ;;  %5486 = vmatprep.mubr.msk.bf16.mxu1 %vm2402_vm1, %v2375_v33 }
 0x208   : > { %v2357_v27 = vsel %vm1773_vm15, %v6660_v31, %v2245_v9  ;;  %v3680_v31 = vsel %vm1773_vm15, %v5784_v18, %v7011_v54  ;;  %v5786_v9 = vld [vmem:[#allocation2 + $0x3c] sm:$0xff]  }
 0x209   : > { %v7122_v1 = vpop.permute.xlu0 %3573  ;;  %v2389_v59 = vsel %vm512_vm0, %v2357_v27, %v2325_v12  ;;  %v3712_v12 = vsel %vm512_vm0, %v3680_v31, %v6924_v23  ;;  %v3684_v54 = vsel %vm1773_vm15, %v5786_v9, %v7103_v19  ;;  %v7803_v27 = vld [vmem:[#allocation10_spill] sm:$0xff] }
 0x20a   : > { %v3716_v23 = vsel %vm512_vm0, %v3684_v54, %v7084_v44  ;;  %v7806_v9 = vld [vmem:[#allocation14_spill] sm:$0xff] }
 0x20b   : > { %v1671_v37 = vpop.permute.xlu1 %1670 }
 0x20c   : > { %v1785_v63 = vsel %vm1773_vm15, %v6673_v3, %v1671_v37  ;;  %v3686_v37 = vsel %vm1773_vm15, %v5787_v10, %v7122_v1  ;;  %v5791_v10 = vld [vmem:[#allocation2 + $0x28] sm:$0xf] }
 0x20d   : > { %v7130_v56 = vpop.permute.xlu0 %3653 }
 0x20e   : > { %5487 = vmatmul.mubr.msk.bf16.gmra.mxu1 %vm2402_vm1, %v2377_v58 }
 0x20f   : > { %v1752_v24 = vpop.permute.xlu1 %1751  ;;  %5490 = vmatprep.mubr.msk.bf16.mxu1 %vm2402_vm1, %v2379_v4 }
 0x210   : > { %v1818_v47 = vsel %vm512_vm0, %v1785_v63, %v1752_v24 }
 0x211   : > { %v1673_v43 = vpop.permute.xlu0 %1672  ;;  %5515 = vmatmul.mubr.msk.bf16.gmra.mxu0 %vm2402_vm1, %v1818_v47  ;;  %v7801_v47 = vld [vmem:[#allocation8_spill] sm:$0xff] }
 0x212   : > { %v1787_v61 = vsel %vm1773_vm15, %v6694_v30, %v1673_v43  ;;  %v2353_v30 = vsel %vm1773_vm15, %v6589_v34, %v2241_v41  ;;  %v5783_v34 = vld [vmem:[#allocation2 + $0x18] sm:$0xff]  }
 0x213   : > { %v3656_v26 = vpop.permute.xlu1 %3655  ;;  %v2385_v15 = vsel %vm512_vm0, %v2353_v30, %v7073_v11  ;;  %v3678_v41 = vsel %vm1773_vm15, %v5783_v34, %v6814_v0  ;;  %v3682_v0 = vsel %vm1773_vm15, %v5785_v53, %v6999_v45  ;;  %v7805_v53 = vld [vmem:[#allocation11_spill] sm:$0xff] }
 0x214   : > { %v3710_v11 = vsel %vm512_vm0, %v3678_v41, %v6698_v8  ;;  %v3714_v8 = vsel %vm512_vm0, %v3682_v0, %v6933_v51  ;;  %v3718_v51 = vsel %vm512_vm0, %v3686_v37, %v7130_v56  ;;  %v5789_v41 = vld [vmem:[#allocation2 + $0xc] sm:$0xf]  ;;  %v2866_v37 = vshll.u32 %v5791_v10, 16 }
 0x215   : > { %v1754_v3 = vpop.permute.xlu0 %1753 }
 0x216   : > { %v1820_v50 = vsel %vm512_vm0, %v1787_v61, %v1754_v3  ;;  %5491 = vmatmul.mubr.msk.bf16.gmra.mxu1 %vm2402_vm1, %v2381_v17 }
 0x217   : > { %5518 = vmatprep.mubr.msk.bf16.mxu0 %vm2402_vm1, %v1820_v50  ;;  %v1756_v32 = vpop.permute.xlu1 %1755  ;;  %5494 = vmatprep.mubr.msk.bf16.mxu1 %vm2402_vm1, %v2383_v48  ;;  %v7802_v50 = vld [vmem:[#allocation9_spill] sm:$0xff] }
 0x219   : > { %v3578_v28 = vpop.permute.xlu0 %3577 }
 0x21a   : > { %v3690_v1 = vsel %vm1773_vm15, %v7801_v47, %v3578_v28 }
 0x21b   : > { %v3580_v35 = vpop.permute.xlu1 %3579 }
 0x21c   : > { %v3692_v17 = vsel %vm1773_vm15, %v7802_v50, %v3580_v35 }
 0x21d   : > { %v2243_v13 = vpop.permute.xlu0 %2242 }
 0x21e   : > { %v2355_v16 = vsel %vm1773_vm15, %v6637_v60, %v2243_v13  ;;  %5495 = vmatmul.mubr.msk.bf16.gmra.mxu1 %vm2402_vm1, %v2385_v15 }
 0x21f   : > { %v2387_v2 = vsel %vm512_vm0, %v2355_v16, %v2323_v52  ;;  %v3660_v55 = vpop.permute.xlu1 %3659 }
 0x220   : > { %5498 = vmatprep.mubr.msk.bf16.mxu1 %vm2402_vm1, %v2387_v2  ;;  %v3724_v28 = vsel %vm512_vm0, %v3692_v17, %v3660_v55 }
 0x221   : > { %v3658_v25 = vpop.permute.xlu0 %3657 }
 0x222   : > { %v3722_v44 = vsel %vm512_vm0, %v3690_v1, %v3658_v25 }
 0x223   : > { %v1679_v38 = vpop.permute.xlu1 %1678 }
 0x224   : > { %v1793_v30 = vsel %vm1773_vm15, %v6779_v14, %v1679_v38  ;;  %v2809_v38 = vshrl.u32 %v5789_v41, 16 }
 0x225   : > { %v1677_v60 = vpop.permute.xlu0 %1676 }
 0x226   : > { %5499 = vmatmul.mubr.msk.bf16.gmra.mxu1 %vm2402_vm1, %v2389_v59 }
 0x227   : > { %v1760_v52 = vpop.permute.xlu1 %1759  ;;  %5542 = vmatprep.mubr.msk.bf16.mxu1 %vm2402_vm1, %v3710_v11 }
 0x228   : > { %v1826_v16 = vsel %vm512_vm0, %v1793_v30, %v1760_v52 }
 0x229   : > { %v1758_v20 = vpop.permute.xlu0 %1757 }
 0x22b   : > { %v3584_v7 = vpop.permute.xlu1 %3583 }
 0x22c   : > { %v3696_v34 = vsel %vm1773_vm15, %v7803_v27, %v3584_v7 }
 0x22d   : > { %v3582_v36 = vpop.permute.xlu0 %3581 }
 0x22e   : > { %5543 = vmatmul.mubr.msk.bf16.vlgmr.msra.gmra.mxu1 %vm2402_vm1, %v3712_v12 }
 0x22f   : > { %v3664_v22 = vpop.permute.xlu1 %3663  ;;  %5546 = vmatprep.mubr.msk.bf16.mxu1 %vm2402_vm1, %v3714_v8  ;;  %v5790_v8 = vld [vmem:[#allocation2 + $0x24] sm:$0xf] }
 0x230   : > { %v3728_v59 = vsel %vm512_vm0, %v3696_v34, %v3664_v22  ;;  %v2857_v22 = vshrl.u32 %v5790_v8, 16 }
 0x231   : > { %v3662_v33 = vpop.permute.xlu0 %3661 }
 0x233   : > { %v1683_v21 = vpop.permute.xlu1 %1682 }
 0x234   : > { %v1797_v0 = vsel %vm1773_vm15, %v7805_v53, %v1683_v21  ;;  %v2870_v21 = vshrl.u32 %v5791_v10, 16  ;;  %v5799_v10 = vld [vmem:[#allocation2 + $0x40] sm:$0xf] }
 0x235   : > { %v1681_v45 = vpop.permute.xlu0 %1680 }
 0x236   : > { %5547 = vmatmul.mubr.msk.bf16.gmra.mxu1 %vm2402_vm1, %v3716_v23  ;;  %v1795_v35 = vsel %vm1773_vm15, %v6857_v57, %v1681_v45  ;;  %v7804_v57 = vld [vmem:[#allocation12_spill] sm:$0xff]  ;;  %v2860_v45 = vshll.u32 %v5790_v8, 16 }
 0x237   : > { %v1764_v58 = vpop.permute.xlu1 %1763  ;;  %5550 = vmatprep.mubr.msk.bf16.mxu1 %vm2402_vm1, %v3718_v51 }
 0x239   : > { %v1762_v4 = vpop.permute.xlu0 %1761 }
 0x23a   : > { %v1828_v15 = vsel %vm512_vm0, %v1795_v35, %v1762_v4  ;;  %v5792_v4 = vld [vmem:[#allocation2 + $0x14] sm:$0x1] }
 0x23b   : > { %v3576_v63 = vpop.permute.xlu1 %3575  ;;  %v5796_v35 = vld [vmem:[#allocation2 + $0x74] sm:$0x1] }
 0x23c   : > { %v3688_v19 = vsel %vm1773_vm15, %v6739_v29, %v3576_v63  ;;  %v1791_v29 = vsel %vm1773_vm15, %v6783_v5, %v1677_v60  ;;  %v2812_v60 = vshll.u32 %v5789_v41, 16  ;;  %v2828_v63 = vshll.u32 %v5792_v4, 16 }
 0x23d   : > { %v3586_v24 = vpop.permute.xlu0 %3585  ;;  %v3720_v43 = vsel %vm512_vm0, %v3688_v19, %v3656_v26  ;;  %v1824_v3 = vsel %vm512_vm0, %v1791_v29, %v1758_v20 }
 0x23e   : > { %5551 = vmatmul.mubr.msk.bf16.gmra.mxu1 %vm2402_vm1, %v3720_v43  ;;  %v3698_v11 = vsel %vm1773_vm15, %v7804_v57, %v3586_v24  ;;  %v2814_v12 = vrot.slane %v2812_v60, 5  ;;  %v7807_v24 = vld [vmem:[#allocation13_spill] sm:$0xff]  ;;  %v2859_v43 = vrot.slane %v2857_v22, 4 }
 0x23f   : > { %v1675_v56 = vpop.permute.xlu1 %1674  ;;  %5554 = vmatprep.mubr.msk.bf16.mxu1 %vm2402_vm1, %v3722_v44  ;;  %v5793_v44 = vld [vmem:[#allocation2 + $0x30] sm:$0xf] }
 0x240   : > { %v1789_v46 = vsel %vm1773_vm15, %v6756_v42, %v1675_v56  ;;  %v3694_v42 = vsel %vm1773_vm15, %v6825_v6, %v3582_v36  ;;  %v5788_v6 = vld [vmem:[#allocation2 + $0x10] sm:$0xf]  ;;  %v2811_v36 = vrot.slane %v2809_v38, 4  ;;  %v2881_v56 = vshrl.u32 %v5793_v44, 16 }
 0x241   : > { %v3666_v40 = vpop.permute.xlu0 %3665  ;;  %v1822_v61 = vsel %vm512_vm0, %v1789_v46, %v1756_v32  ;;  %v3726_v5 = vsel %vm512_vm0, %v3694_v42, %v3662_v33  ;;  %v2818_v2 = vshll.u32 %v5788_v6, 16  ;;  %v2822_v55 = vshrl.u32 %v5788_v6, 16  ;;  %v5797_v6 = vld [vmem:[#allocation2 + $0x2c] sm:$0x1]  ;;  %v7810_v38 = vld [vmem:[#allocation17_spill] sm:$0xff] }
 0x242   : > { %5519 = vmatmul.mubr.msk.bf16.gmra.mxu0 %vm2402_vm1, %v1822_v61  ;;  %v3730_v52 = vsel %vm512_vm0, %v3698_v11, %v3666_v40  ;;  %v1830_v33 = vsel %vm512_vm0, %v1797_v0, %v1764_v58  ;;  %v2815_v1 = vor.u32 %v2814_v12, %v2811_v36  ;;  %v7808_v40 = vld [vmem:[#allocation16_spill] sm:$0xff]  ;;  %v2862_v61 = vrot.slane %v2860_v45, 5  ;;  %v5798_v36 = vld [vmem:[#allocation2 + $0x3c] sm:$0xf] }
 0x243   : > { %v3588_v26 = vpop.permute.xlu1 %3587  ;;  %5522 = vmatprep.mubr.msk.bf16.mxu0 %vm2402_vm1, %v1824_v3  ;;  %v7234_v20 = vrot.slane %v2818_v2, 5  ;;  %v2824_v18 = vrot.slane %v2822_v55, 4  ;;  %v7251_v3 = vrot.slane %v2866_v37, 5  ;;  %v2876_v2 = vshll.u32 %v5797_v6, 16  ;;  %v7809_v55 = vld [vmem:[#allocation15_spill] sm:$0xff] }
 0x244   : > { %v3700_v58 = vsel %vm1773_vm15, %v7807_v24, %v3588_v26  ;;  %v2884_v26 = vshll.u32 %v5793_v44, 16  ;;  %v2863_v57 = vor.u32 %v2862_v61, %v2859_v43  ;;  %v2905_v12 = vshrl.u32 %v5798_v36, 16 }
 0x245   : > { %v1685_v48 = vpop.permute.xlu0 %1684  ;;  %v2825_v51 = vor.u32 %v2824_v18, %v7234_v20  ;;  %v2908_v8 = vshll.u32 %v5798_v36, 16  ;;  %v2914_v37 = vshll.u32 %v5799_v10, 16  ;;  %v2878_v24 = vrot.slane %v2876_v2, 5 }
 0x246   : > { %5555 = vmatmul.mubr.msk.bf16.gmra.mxu1 %vm2402_vm1, %v3724_v28  ;;  %v1799_v54 = vsel %vm1773_vm15, %v7806_v9, %v1685_v48  ;;  %v2872_v48 = vrot.slane %v2870_v21, 4  ;;  %v5794_v28 = vld [vmem:[#allocation2 + $0x80] sm:$0x1]  ;;  %v7812_v9 = vld [vmem:[#allocation18_spill] sm:$0xff] }
 0x247   : > { %v3668_v32 = vpop.permute.xlu1 %3667  ;;  %5558 = vmatprep.mubr.msk.bf16.mxu1 %vm2402_vm1, %v3726_v5  ;;  %v2826_v17 = vrot.slane %v2825_v51, 4  ;;  %v3044_v42 = vshll.u32 %v5794_v28, 16  ;;  %v2830_v5 = vrot.slane %v2828_v63, 5  ;;  %v2918_v63 = vshrl.u32 %v5799_v10, 16 }
 0x248   : > { %v3732_v46 = vsel %vm512_vm0, %v3700_v58, %v3668_v32  ;;  %v5795_v32 = vld [vmem:[#allocation2 + $0x34] sm:$0xf]  ;;  %v2873_v53 = vor.u32 %v2872_v48, %v7251_v3  ;;  %v7288_v61 = vrot.slane %v2914_v37, 5 }
 0x249   : > { %v1766_v13 = vpop.permute.xlu0 %1765  ;;  %v2831_v18 = vsel %vm6320_vm14, %v2826_v17, %v2830_v5  ;;  %v7271_v22 = vrot.slane %v3044_v42, 5  ;;  %v2920_v28 = vrot.slane %v2918_v63, 4  ;;  %v5802_v5 = vld [vmem:[#allocation2 + $0x4c] sm:$0xf] }
 0x24a   : > { %5523 = vmatmul.mubr.msk.bf16.gmra.mxu0 %vm2402_vm1, %v1826_v16  ;;  %v1832_v23 = vsel %vm512_vm0, %v1799_v54, %v1766_v13  ;;  %v2890_v13 = vshll.u32 %v5795_v32, 16  ;;  %v2894_v16 = vshrl.u32 %v5795_v32, 16  ;;  %v2942_v32 = vshrl.u32 %v5802_v5, 16 }
 0x24b   : > { %v1687_v25 = vpop.permute.xlu1 %1686  ;;  %5526 = vmatprep.mubr.msk.bf16.mxu0 %vm2402_vm1, %v1828_v15  ;;  %v3020_v15 = vshll.u32 %v5796_v35, 16 }
 0x24c   : > { %v1801_v27 = vsel %vm1773_vm15, %v7809_v55, %v1687_v25  ;;  %v2886_v25 = vrot.slane %v2884_v26, 5 }
 0x24d   : > { %v3590_v14 = vpop.permute.xlu0 %3589 }
 0x24e   : > { %5559 = vmatmul.mubr.msk.bf16.gmra.mxu1 %vm2402_vm1, %v3728_v59  ;;  %v3702_v29 = vsel %vm1773_vm15, %v7808_v40, %v3590_v14  ;;  %v7258_v14 = vrot.slane %v2881_v56, 4  ;;  %v2816_v59 = vrot.slane %v2815_v1, 4  ;;  %v2874_v1 = vrot.slane %v2873_v53, 4 }
 0x24f   : > { %v1768_v31 = vpop.permute.xlu1 %1767  ;;  %5562 = vmatprep.mubr.msk.bf16.mxu1 %vm2402_vm1, %v3730_v52  ;;  %v2910_v40 = vrot.slane %v2908_v8, 5  ;;  %v2944_v53 = vrot.slane %v2942_v32, 4 }
 0x250   : > { %v1834_v41 = vsel %vm512_vm0, %v1801_v27, %v1768_v31  ;;  %v2896_v31 = vrot.slane %v2894_v16, 4  ;;  %v2821_v4 = vsel %vm6320_vm14, %v2816_v59, %v7234_v20  ;;  %v2887_v44 = vor.u32 %v2886_v25, %v7258_v14  ;;  %v5805_v14 = vld [vmem:[#allocation2 + $0x58] sm:$0xf] }
 0x251   : > { %v3670_v7 = vpop.permute.xlu0 %3669  ;;  %v5147_v58 = vcombine.low %v2821_v4, %v2831_v18  ;;  %v2879_v55 = vsel %vm6320_vm14, %v2874_v1, %v2878_v24  ;;  %v2921_v59 = vor.u32 %v2920_v28, %v7288_v61  ;;  %v7813_v24 = vld [vmem:[#allocation7_spill] sm:$0xff] }
 0x252   : > { %5527 = vmatmul.mubr.msk.bf16.gmra.mxu0 %vm2402_vm1, %v1830_v33  ;;  %v3734_v50 = vsel %vm512_vm0, %v3702_v29, %v3670_v7  ;;  %v7269_v7 = vrot.slane %v2890_v13, 5  ;;  %v7273_v33 = vrot.slane %v3020_v15, 5  ;;  %v5803_v13 = vld [vmem:[#allocation2 + $0x54] sm:$0xf]  ;;  %v5804_v15 = vld [vmem:[#allocation2 + $0x44] sm:$0x1] }
 0x253   : > { %v3672_v19 = vpop.permute.xlu1 %3671  ;;  %5530 = vmatprep.mubr.msk.bf16.mxu0 %vm2402_vm1, %v1832_v23  ;;  %v5800_v23 = vld [vmem:[#allocation2 + $0x38] sm:$0x1]  ;;  %v2956_v16 = vshll.u32 %v5803_v13, 16  ;;  %v2924_v6 = vshll.u32 %v5804_v15, 16  ;;  %v2888_v27 = vrot.slane %v2887_v44, 4 }
 0x254   : > { %v2900_v51 = vshll.u32 %v5800_v23, 16  ;;  %v2897_v56 = vor.u32 %v2896_v31, %v7269_v7  ;;  %v5806_v31 = vld [vmem:[#allocation2 + $0x50] sm:$0x1]  ;;  %v5808_v1 = vld [vmem:[#allocation2 + $0x60] sm:$0xf] }
 0x255   : > { %v1689_v47 = vpop.permute.xlu0 %1688  ;;  %v2926_v36 = vrot.slane %v2924_v6, 5  ;;  %v7317_v44 = vld [vmem:[#allocation2 + $0x98] sm:$0x1]  ;;  %v5812_v6 = vld [vmem:[#allocation2 + $0x6c] sm:$0xf] }
 0x256   : > { %5563 = vmatmul.mubr.msk.bf16.gmra.mxu1 %vm2402_vm1, %v3732_v46  ;;  %v1803_v60 = vsel %vm1773_vm15, %v7810_v38, %v1689_v47  ;;  %v2864_v47 = vrot.slane %v2863_v57, 4  ;;  %v2907_v46 = vrot.slane %v2905_v12, 4  ;;  %v2902_v35 = vrot.slane %v2900_v51, 5  ;;  %v5807_v12 = vld [vmem:[#allocation2 + $0x5c] sm:$0x1] }
 0x257   : > { %v1772_v30 = vpop.permute.xlu1 %1771  ;;  %5566 = vmatprep.mubr.msk.bf16.mxu1 %vm2402_vm1, %v3734_v50  ;;  %v5801_v50 = vld [vmem:[#allocation2 + $0x48] sm:$0xf]  ;;  %v2966_v38 = vshrl.u32 %v5805_v14, 16  ;;  %v2972_v8 = vshll.u32 %v5807_v12, 16  ;;  %v2893_v51 = vsel %vm6320_vm14, %v2888_v27, %v7269_v7  ;;  %v2980_v7 = vshll.u32 %v5808_v1, 16 }
 0x258   : > { %v2929_v17 = vshrl.u32 %v5801_v50, 16  ;;  %v2932_v42 = vshll.u32 %v5801_v50, 16  ;;  %v5811_v50 = vld [vmem:[#allocation2 + $0x70] sm:$0xf] }
 0x259   : > { %v1770_v34 = vpop.permute.xlu0 %1769  ;;  %v2968_v23 = vrot.slane %v2966_v38, 4 }
 0x25a   : > { %v1836_v11 = vsel %vm512_vm0, %v1803_v60, %v1770_v34  ;;  %5531 = vmatmul.mubr.msk.bf16.gmra.mxu0 %vm2402_vm1, %v1834_v41  ;;  %v2911_v34 = vor.u32 %v2910_v40, %v2907_v46  ;;  %v2962_v41 = vshll.u32 %v5805_v14, 16  ;;  %v2898_v60 = vrot.slane %v2897_v56, 4  ;;  %v5810_v46 = vld [vmem:[#allocation2 + $0x64] sm:$0xf]  ;;  %v5813_v14 = vld [vmem:[#allocation2 + $0x8c] sm:$0x1] }
 0x25b   : > { %v3592_v0 = vpop.permute.xlu1 %3591  ;;  %5534 = vmatprep.mubr.msk.bf16.mxu0 %vm2402_vm1, %v1836_v11  ;;  %v2931_v57 = vrot.slane %v2929_v17, 4  ;;  %v2934_v11 = vrot.slane %v2932_v42, 5  ;;  %v3092_v56 = vshll.u32 %v7317_v44, 16  ;;  %v2986_v40 = vshll.u32 %v5810_v46, 16 }
 0x25c   : > { %v3704_v54 = vsel %vm1773_vm15, %v7812_v9, %v3592_v0  ;;  %v2958_v0 = vrot.slane %v2956_v16, 5  ;;  %v7306_v37 = vrot.slane %v2962_v41, 5  ;;  %v2912_v4 = vrot.slane %v2911_v34, 4  ;;  %v5814_v41 = vld [vmem:[#allocation2 + $0x68] sm:$0x1] }
 0x25d   : > { %v3594_v45 = vpop.permute.xlu0 %3593  ;;  %v3736_v21 = vsel %vm512_vm0, %v3704_v54, %v3672_v19  ;;  %v2935_v63 = vor.u32 %v2934_v11, %v2931_v57  ;;  %v3010_v17 = vshll.u32 %v5811_v50, 16  ;;  %v2982_v16 = vrot.slane %v2980_v7, 5  ;;  %v5815_v57 = vld [vmem:[#allocation2 + $0x78] sm:$0xf] }
 0x25e   : > { %5567 = vmatmul.mubr.msk.bf16.gmra.mxu1 %vm2402_vm1, %v3736_v21  ;;  %v3706_v19 = vsel %vm1773_vm15, %v7015_v49, %v3594_v45  ;;  %v2938_v49 = vshll.u32 %v5802_v5, 16  ;;  %v2903_v21 = vsel %vm6320_vm14, %v2898_v60, %v2902_v35  ;;  %v2917_v42 = vsel %vm6320_vm14, %v2912_v4, %v7288_v61 }
 0x25f   : > { %v1691_v43 = vpop.permute.xlu1 %1690  ;;  %v5150_v28 = vcombine.low %v2893_v51, %v2903_v21  ;;  %v2936_v5 = vrot.slane %v2935_v63, 4  ;;  %v7327_v35 = vrot.slane %v2986_v40, 5  ;;  %v7329_v27 = vrot.slane %v3010_v17, 5  ;;  %v5818_v21 = vld [vmem:[#allocation2 + $0x88] sm:$0xf] }
 0x260   : > { %v1805_v20 = vsel %vm1773_vm15, %v7025_v39, %v1691_v43  ;;  %v2953_v39 = vshrl.u32 %v5803_v13, 16  ;;  %v7301_v18 = vrot.slane %v2938_v49, 5  ;;  %v2977_v43 = vshrl.u32 %v5808_v1, 16 }
 0x261   : > { %v3674_v29 = vpop.permute.xlu0 %3673  ;;  %v1838_v26 = vsel %vm512_vm0, %v1805_v20, %v1772_v30  ;;  %v2869_v30 = vsel %vm6320_vm14, %v2864_v47, %v7251_v3  ;;  %v2948_v3 = vshll.u32 %v5806_v31, 16  ;;  %v3068_v61 = vshll.u32 %v5813_v14, 16 }
 0x262   : > { %v3738_v48 = vsel %vm512_vm0, %v3706_v19, %v3674_v29  ;;  %5535 = vmatmul.mubr.msk.bf16.gmra.mxu0 %vm2402_vm1, %v1838_v26  ;;  %v2955_v25 = vrot.slane %v2953_v39, 4  ;;  %v5149_v10 = vcombine.low %v2869_v30, %v2879_v55  ;;  %v2990_v19 = vshrl.u32 %v5810_v46, 16 }
 0x263   : > { %5570 = vmatprep.mubr.msk.bf16.mxu1 %vm2402_vm1, %v3738_v48  ;;  %v3596_v2 = vpop.permute.xlu1 %3595  ;;  %5576 = vmatprep.mubr.msk.bf16.mxu0 %vm1773_vm15, %v5147_v58  ;;  %v2945_v58 = vor.u32 %v2944_v53, %v7301_v18  ;;  %v2950_v20 = vrot.slane %v2948_v3, 5  ;;  %v2969_v29 = vor.u32 %v2968_v23, %v7306_v37  ;;  %v3014_v48 = vshrl.u32 %v5811_v50, 16 }
 0x264   : > { %v3708_v9 = vsel %vm1773_vm15, %v7040_v62, %v3596_v2  ;;  %v2922_v62 = vrot.slane %v2921_v59, 4  ;;  %v2959_v47 = vor.u32 %v2958_v0, %v2955_v25  ;;  %v2974_v26 = vrot.slane %v2972_v8, 5  ;;  %v5816_v25 = vld [vmem:[#allocation2 + $0x7c] sm:$0xf] }
 0x265   : > { %v2946_v32 = vrot.slane %v2945_v58, 4  ;;  %v2979_v39 = vrot.slane %v2977_v43, 4  ;;  %v2992_v15 = vrot.slane %v2990_v19, 4  ;;  %v3001_v2 = vshrl.u32 %v5812_v6, 16 }
 0x266   : > { %v2927_v49 = vsel %vm6320_vm14, %v2922_v62, %v2926_v36  ;;  %v2960_v13 = vrot.slane %v2959_v47, 4  ;;  %v2970_v30 = vrot.slane %v2969_v29, 4  ;;  %v3004_v55 = vshll.u32 %v5812_v6, 16 }
 0x267   : > { %v3676_v54 = vpop.permute.xlu1 %3675  ;;  %v3016_v34 = vrot.slane %v3014_v48, 4  ;;  %v2996_v38 = vshll.u32 %v5814_v41, 16  ;;  %v5151_v60 = vcombine.low %v2917_v42, %v2927_v49  ;;  %v2941_v59 = vsel %vm6320_vm14, %v2936_v5, %v7301_v18  ;;  %v5819_v42 = vld [vmem:[#allocation2 + $0x90] sm:$0xf] }
 0x268   : > { %v3740_v45 = vsel %vm512_vm0, %v3708_v9, %v3676_v54  ;;  %v3025_v11 = vshrl.u32 %v5815_v57, 16  ;;  %v3028_v53 = vshll.u32 %v5815_v57, 16  ;;  %v3034_v0 = vshll.u32 %v5816_v25, 16 }
 0x269   : > { %5571 = vmatmul.mubr.msk.bf16.gmra.mxu1 %vm2402_vm1, %v3740_v45  ;;  %v3038_v31 = vshrl.u32 %v5816_v25, 16  ;;  %v2951_v3 = vsel %vm6320_vm14, %v2946_v32, %v2950_v20  ;;  %v2965_v36 = vsel %vm6320_vm14, %v2960_v13, %v7306_v37  ;;  %v2983_v12 = vor.u32 %v2982_v16, %v2979_v39  ;;  %v5820_v32 = vld [vmem:[#allocation2 + $0x94] sm:$0xf]  ;;  %v5821_v16 = vld [vmem:[#allocation2 + $0x9c] sm:$0xf] }
 0x26a   : > { %5577 = vmatmul.mubr.msk.bf16.vlgmr.msra.gmra.mxu0 %vm1773_vm15, %v7813_v24  ;;  %v2993_v18 = vor.u32 %v2992_v15, %v7327_v35  ;;  %v2975_v8 = vsel %vm6320_vm14, %v2970_v30, %v2974_v26  ;;  %v3003_v9 = vrot.slane %v3001_v2, 4  ;;  %v3006_v54 = vrot.slane %v3004_v55, 5  ;;  %v5822_v55 = vld [vmem:[#allocation2 + $0xa0] sm:$0xf] }
 0x26b   : > { %5580 = vmatprep.mubr.msk.bf16.mxu0 %vm1773_vm15, %v5149_v10  ;;  %v3017_v45 = vor.u32 %v3016_v34, %v7329_v27  ;;  %v5817_v10 = vld [vmem:[#allocation2 + $0x84] sm:$0xf]  ;;  %v3058_v4 = vshll.u32 %v5818_v21, 16  ;;  %v3062_v63 = vshrl.u32 %v5818_v21, 16  ;;  %v3027_v24 = vrot.slane %v3025_v11, 4 }
 0x26c   : > { %v3049_v23 = vshrl.u32 %v5817_v10, 16  ;;  %v3052_v51 = vshll.u32 %v5817_v10, 16  ;;  %v3030_v62 = vrot.slane %v3028_v53, 5  ;;  %v7345_v58 = vrot.slane %v3034_v0, 5 }
 0x26d   : > { %v3040_v37 = vrot.slane %v3038_v31, 4  ;;  %v7347_v47 = vrot.slane %v3068_v61, 5  ;;  %v2998_v1 = vrot.slane %v2996_v38, 5  ;;  %v5152_v43 = vcombine.low %v2941_v59, %v2951_v3 }
 0x26e   : > { %v5153_v7 = vcombine.low %v2965_v36, %v2975_v8  ;;  %v2984_v46 = vrot.slane %v2983_v12, 4  ;;  %v2994_v40 = vrot.slane %v2993_v18, 4  ;;  %v3007_v19 = vor.u32 %v3006_v54, %v3003_v9  ;;  %v5823_v18 = vld [vmem:[#allocation2 + $0xa4] sm:$0x1] }
 0x26f   : > { %v3018_v20 = vrot.slane %v3017_v45, 4  ;;  %v3051_v29 = vrot.slane %v3049_v23, 4  ;;  %v3054_v50 = vrot.slane %v3052_v51, 5  ;;  %v7349_v17 = vrot.slane %v3058_v4, 5 }
 0x270   : > { %v3064_v48 = vrot.slane %v3062_v63, 4  ;;  %v3031_v26 = vor.u32 %v3030_v62, %v3027_v24  ;;  %v3073_v5 = vshrl.u32 %v5819_v42, 16  ;;  %v3076_v49 = vshll.u32 %v5819_v42, 16  ;;  %v5824_v63 = vld [vmem:[#allocation2 + $0xa8] sm:$0xf] }
 0x271   : > { %v3082_v13 = vshll.u32 %v5820_v32, 16  ;;  %v3086_v39 = vshrl.u32 %v5820_v32, 16  ;;  %v3097_v15 = vshrl.u32 %v5821_v16, 16  ;;  %v3100_v6 = vshll.u32 %v5821_v16, 16  ;;  %v5825_v62 = vld [vmem:[#allocation2 + $0xac] sm:$0xf] }
 0x272   : > { %5581 = vmatmul.mubr.msk.bf16.gmra.mxu0 %vm1773_vm15, %v5150_v28  ;;  %v3041_v28 = vor.u32 %v3040_v37, %v7345_v58  ;;  %v2989_v2 = vsel %vm6320_vm14, %v2984_v46, %v7327_v35  ;;  %v3008_v30 = vrot.slane %v3007_v19, 4  ;;  %v3106_v34 = vshll.u32 %v5822_v55, 16  ;;  %v5826_v46 = vld [vmem:[#allocation2 + $0xb4] sm:$0xf] }
 0x273   : > { %5584 = vmatprep.mubr.msk.bf16.mxu0 %vm1773_vm15, %v5151_v60  ;;  %v3110_v14 = vshrl.u32 %v5822_v55, 16  ;;  %v2999_v61 = vsel %vm6320_vm14, %v2994_v40, %v2998_v1  ;;  %v3023_v41 = vsel %vm6320_vm14, %v3018_v20, %v7273_v33  ;;  %v3055_v38 = vor.u32 %v3054_v50, %v3051_v29  ;;  %v5827_v20 = vld [vmem:[#allocation2 + $0xb8] sm:$0xf] }
 0x274   : > { %v3065_v60 = vor.u32 %v3064_v48, %v7349_v17  ;;  %v3032_v59 = vrot.slane %v3031_v26, 4  ;;  %v3042_v57 = vrot.slane %v3041_v28, 4  ;;  %v3075_v11 = vrot.slane %v3073_v5, 4 }
 0x275   : > { %v3078_v53 = vrot.slane %v3076_v49, 5  ;;  %v7363_v25 = vrot.slane %v3082_v13, 5  ;;  %v3088_v35 = vrot.slane %v3086_v39, 4  ;;  %v3099_v0 = vrot.slane %v3097_v15, 4 }
 0x276   : > { %v3102_v31 = vrot.slane %v3100_v6, 5  ;;  %v5154_v3 = vcombine.low %v2989_v2, %v2999_v61  ;;  %v3013_v36 = vsel %vm6320_vm14, %v3008_v30, %v7329_v27  ;;  %v7368_v12 = vrot.slane %v3106_v34, 5  ;;  %v5828_v6 = vld [vmem:[#allocation2 + $0xb0] sm:$0x1] }
 0x277   : > { %v3112_v33 = vrot.slane %v3110_v14, 4  ;;  %v3116_v8 = vshll.u32 %v5823_v18, 16  ;;  %v5155_v9 = vcombine.low %v3013_v36, %v3023_v41  ;;  %v3056_v54 = vrot.slane %v3055_v38, 4  ;;  %v5829_v38 = vld [vmem:[#allocation2 + $0xc0] sm:$0xf] }
 0x278   : > { %v3066_v45 = vrot.slane %v3065_v60, 4  ;;  %v3094_v10 = vrot.slane %v3092_v56, 5  ;;  %v3037_v23 = vsel %vm6320_vm14, %v3032_v59, %v7345_v58  ;;  %v3047_v27 = vsel %vm6320_vm14, %v3042_v57, %v7271_v22  ;;  %v5830_v57 = vld [vmem:[#allocation2 + $0xc4] sm:$0xf] }
 0x279   : > { %v3079_v51 = vor.u32 %v3078_v53, %v3075_v11  ;;  %v3089_v21 = vor.u32 %v3088_v35, %v7363_v25  ;;  %v3103_v4 = vor.u32 %v3102_v31, %v3099_v0  ;;  %v3121_v24 = vshrl.u32 %v5824_v63, 16  ;;  %v5831_v35 = vld [vmem:[#allocation2 + $0xbc] sm:$0x1] }
 0x27a   : > { %5585 = vmatmul.mubr.msk.bf16.gmra.mxu0 %vm1773_vm15, %v5152_v43  ;;  %v3113_v44 = vor.u32 %v3112_v33, %v7368_v12  ;;  %v3124_v56 = vshll.u32 %v5824_v63, 16  ;;  %v3130_v37 = vshll.u32 %v5825_v62, 16  ;;  %v3134_v1 = vshrl.u32 %v5825_v62, 16 }
 0x27b   : > { %5588 = vmatprep.mubr.msk.bf16.mxu0 %vm1773_vm15, %v5153_v7  ;;  %v3118_v43 = vrot.slane %v3116_v8, 5  ;;  %v5156_v58 = vcombine.low %v3037_v23, %v3047_v27  ;;  %v3061_v22 = vsel %vm6320_vm14, %v3056_v54, %v7349_v17  ;;  %v3071_v7 = vsel %vm6320_vm14, %v3066_v45, %v7347_v47 }
 0x27c   : > { %v3145_v40 = vshrl.u32 %v5826_v46, 16  ;;  %v3148_v19 = vshll.u32 %v5826_v46, 16  ;;  %v3154_v29 = vshll.u32 %v5827_v20, 16  ;;  %v3158_v50 = vshrl.u32 %v5827_v20, 16 }
 0x27d   : > { %v3080_v48 = vrot.slane %v3079_v51, 4  ;;  %v3090_v26 = vrot.slane %v3089_v21, 4  ;;  %v3104_v28 = vrot.slane %v3103_v4, 4  ;;  %v3123_v42 = vrot.slane %v3121_v24, 4  ;;  %v5832_v51 = vld [vmem:[#allocation2 + $0xc8] sm:$0x1] }
 0x27e   : > { %v3114_v5 = vrot.slane %v3113_v44, 4  ;;  %v3126_v49 = vrot.slane %v3124_v56, 5  ;;  %v3132_v32 = vrot.slane %v3130_v37, 5  ;;  %v3136_v13 = vrot.slane %v3134_v1, 4 }
 0x27f   : > { %v5157_v39 = vcombine.low %v3061_v22, %v3071_v7  ;;  %v3147_v17 = vrot.slane %v3145_v40, 4  ;;  %v3150_v16 = vrot.slane %v3148_v19, 5  ;;  %v3156_v47 = vrot.slane %v3154_v29, 5  ;;  %v5472_v7 = vpop.f32.mrf.mxu1 }
 0x280   : > { %v3160_v15 = vrot.slane %v3158_v50, 4  ;;  %v3140_v2 = vshll.u32 %v5828_v6, 16  ;;  %v3085_v30 = vsel %vm6320_vm14, %v3080_v48, %v7363_v25  ;;  %v3095_v55 = vsel %vm6320_vm14, %v3090_v26, %v3094_v10 }
 0x281   : > { %v3109_v34 = vsel %vm6320_vm14, %v3104_v28, %v7368_v12  ;;  %v3119_v14 = vsel %vm6320_vm14, %v3114_v5, %v3118_v43  ;;  %v3127_v61 = vor.u32 %v3126_v49, %v3123_v42  ;;  %v3137_v41 = vor.u32 %v3136_v13, %v3132_v32  ;;  %v2473_v19 = vpop.f32.mrf.mxu1 }
 0x282   : > { %5589 = vmatmul.mubr.msk.bf16.gmra.mxu0 %vm1773_vm15, %v5154_v3  ;;  %v3169_v60 = vshrl.u32 %v5829_v38, 16  ;;  %v3172_v59 = vshll.u32 %v5829_v38, 16  ;;  %v3178_v11 = vshll.u32 %v5830_v57, 16  ;;  %v3182_v53 = vshrl.u32 %v5830_v57, 16 }
 0x283   : > { %5592 = vmatprep.mubr.msk.bf16.mxu0 %vm1773_vm15, %v5155_v9  ;;  %v3164_v25 = vshll.u32 %v5831_v35, 16  ;;  %v3151_v0 = vor.u32 %v3150_v16, %v3147_v17  ;;  %v3161_v31 = vor.u32 %v3160_v15, %v3156_v47  ;;  %v3142_v3 = vrot.slane %v3140_v2, 5  ;;  %v5473_v29 = vpop.f32.mrf.mxu1 }
 0x284   : > { %v5158_v36 = vcombine.low %v3085_v30, %v3095_v55  ;;  %v5159_v33 = vcombine.low %v3109_v34, %v3119_v14  ;;  %v3128_v18 = vrot.slane %v3127_v61, 4  ;;  %v3138_v12 = vrot.slane %v3137_v41, 4  ;;  %v5508_v55 = vpop.f32.mrf.mxu0 }
 0x285   : > { %v3171_v8 = vrot.slane %v3169_v60, 4  ;;  %v3174_v9 = vrot.slane %v3172_v59, 5  ;;  %v3180_v54 = vrot.slane %v3178_v11, 5  ;;  %v3184_v45 = vrot.slane %v3182_v53, 4  ;;  %v2476_v50 = vpop.f32.mrf.mxu1 }
 0x286   : > { %v3166_v10 = vrot.slane %v3164_v25, 5  ;;  %v3152_v23 = vrot.slane %v3151_v0, 4  ;;  %v3162_v27 = vrot.slane %v3161_v31, 4  ;;  %v3188_v21 = vshll.u32 %v5832_v51, 16  ;;  %v2678_v61 = vpop.f32.mrf.mxu0 }
 0x287   : > { %v3133_v4 = vsel %vm6320_vm14, %v3128_v18, %v3132_v32  ;;  %v3143_v63 = vsel %vm6320_vm14, %v3138_v12, %v3142_v3  ;;  %v3175_v24 = vor.u32 %v3174_v9, %v3171_v8  ;;  %v3185_v44 = vor.u32 %v3184_v45, %v3180_v54  ;;  %v7470_v8 = vld [vmem:[%s7760_s6] ss:$0 sm:$0xff] }
 0x288   : > { %v3157_v56 = vsel %vm6320_vm14, %v3152_v23, %v3156_v47  ;;  %v3167_v62 = vsel %vm6320_vm14, %v3162_v27, %v3166_v10  ;;  %v5160_v37 = vcombine.low %v3133_v4, %v3143_v63  ;;  %v3190_v1 = vrot.slane %v3188_v21, 5  ;;  %v5509_v60 = vpop.f32.mrf.mxu0 }
 0x289   : > { %v5161_v43 = vcombine.low %v3157_v56, %v3167_v62  ;;  %v3186_v22 = vrot.slane %v3185_v44, 4  ;;  %v2679_v9 = vadd.f32 %v2678_v61, %v2473_v19  ;;  %v2690_v10 = vadd.f32 %v5509_v60, %v5473_v29 }
 0x28a   : > { %5593 = vmatmul.mubr.msk.bf16.gmra.mxu0 %vm1773_vm15, %v5156_v58  ;;  %v3176_v58 = vrot.slane %v3175_v24, 4  ;;  %v2681_v11 = vpop.f32.mrf.mxu0  ;;  %vm4495_vm0 = vcmask 125952  }
 0x28b   : > { %5596 = vmatprep.mubr.msk.bf16.mxu0 %vm1773_vm15, %v5157_v39  ;;  %v3191_v40 = vsel %vm6320_vm14, %v3186_v22, %v3190_v1  ;;  %v2682_v4 = vadd.f32 %v2681_v11, %v2476_v50 }
 0x28c   : > { %v3181_v46 = vsel %vm6320_vm14, %v3176_v58, %v3180_v54 }
 0x28d   : > { %v5162_v20 = vcombine.low %v3181_v46, %v3191_v40 }
 0x292   : > { %5597 = vmatmul.mubr.msk.bf16.gmra.mxu0 %vm1773_vm15, %v5158_v36 }
 0x293   : > { %5600 = vmatprep.mubr.msk.bf16.mxu0 %vm1773_vm15, %v5159_v33  ;;  %v2687_v33 = vadd.f32 %v5508_v55, %v5472_v7 }
 0x29a   : > { %5601 = vmatmul.mubr.msk.bf16.gmra.mxu0 %vm1773_vm15, %v5160_v37 }
 0x29b   : > { %5604 = vmatprep.mubr.msk.bf16.mxu0 %vm1773_vm15, %v5161_v43 }
 0x2a1   : > { %v5476_v48 = vpop.f32.mrf.mxu1 }
 0x2a2   : > { %5605 = vmatmul.mubr.msk.bf16.gmra.mxu0 %vm1773_vm15, %v5162_v20  ;;  %v5512_v35 = vpop.f32.mrf.mxu0 }
 0x2a3   : > { %v2489_v26 = vpop.f32.mrf.mxu1  ;;  %v2703_v56 = vadd.f32 %v5512_v35, %v5476_v48 }
 0x2a4   : > { %v2694_v31 = vpop.f32.mrf.mxu0 }
 0x2a5   : > { %v5477_v28 = vpop.f32.mrf.mxu1  ;;  %v2695_v46 = vadd.f32 %v2694_v31, %v2489_v26 }
 0x2a6   : > { %v5513_v18 = vpop.f32.mrf.mxu0 }
 0x2a7   : > { %v7417_v42 = vpop.f32.mrf.mxu1  ;;  %v2706_v29 = vadd.f32 %v5513_v18, %v5477_v28 }
 0x2a8   : > { %v2697_v51 = vpop.f32.mrf.mxu0 }
 0x2b2   : > { %v7419_v5 = vpop.f32.mrf.mxu1 }
 0x2b4   : > { %v7421_v49 = vpop.f32.mrf.mxu1 }
 0x2b6   : > { %v7423_v32 = vpop.f32.mrf.mxu1 }
 0x2b8   : > { %v7425_v13 = vpop.f32.mrf.mxu1 }
 0x2c6   : > { %v7427_v52 = vpop.f32.mrf.mxu1 }
 0x2c8   : > { %v7429_v39 = vpop.f32.mrf.mxu1 }
 0x2ca   : > { %v7431_v17 = vpop.f32.mrf.mxu1 }
 0x2cc   : > { %v7433_v16 = vpop.f32.mrf.mxu1 }
 0x2ce   : > { %v7435_v47 = vpop.f32.mrf.mxu1 }
 0x2d0   : > { %v7437_v15 = vpop.f32.mrf.mxu1 }
 0x2d1   : > { %v5516_v62 = vpop.f32.mrf.mxu0 }
 0x2d2   : > { %v7439_v6 = vpop.f32.mrf.mxu1  ;;  %v2719_v28 = vadd.f32 %v5516_v62, %v7419_v5 }
 0x2d3   : > { %v2710_v50 = vpop.f32.mrf.mxu0 }
 0x2d4   : > { %v7441_v2 = vpop.f32.mrf.mxu1 }
 0x2d5   : > { %v5517_v18 = vpop.f32.mrf.mxu0 }
 0x2d6   : > { %v7443_v30 = vpop.f32.mrf.mxu1 }
 0x2d7   : > { %v2713_v5 = vpop.f32.mrf.mxu0 }
 0x2d8   : > { %v7445_v34 = vpop.f32.mrf.mxu1 }
 0x2da   : > { %v7447_v14 = vpop.f32.mrf.mxu1 }
 0x2dc   : > { %v7449_v41 = vpop.f32.mrf.mxu1 }
 0x2de   : > { %v7451_v38 = vpop.f32.mrf.mxu1 }
 0x2e0   : > { %v7453_v59 = vpop.f32.mrf.mxu1 }
 0x2e2   : > { %v7455_v57 = vpop.f32.mrf.mxu1 }
 0x2e4   : > { %v7457_v53 = vpop.f32.mrf.mxu1 }
 0x2e6   : > { %v7459_v25 = vpop.f32.mrf.mxu1 }
 0x2e8   : > { %v7461_v0 = vpop.f32.mrf.mxu1 }
 0x2ea   : > { %v7463_v3 = vpop.f32.mrf.mxu1 }
 0x2ec   : > { %v7465_v36 = vpop.f32.mrf.mxu1 }
 0x2ee   : > { %v5544_v12 = vpop.f32.mrf.mxu1 }
 0x2ef   : > { %v3951_v54 = vadd.f32 %v5544_v12, %v2687_v33  ;;  %v2698_v12 = vadd.f32 %v2697_v51, %v7417_v42  ;;  %v2711_v42 = vadd.f32 %v2710_v50, %v7421_v49 }
 0x2f0   : > { %v3822_v45 = vpop.f32.mrf.mxu1 }
 0x2f1   : > { %v4305_v23 = vadd.f32 %v7470_v8, %v3951_v54  ;;  %v3949_v27 = vadd.f32 %v3822_v45, %v2679_v9 }
 0x2f2   : > { %v5545_v21 = vpop.f32.mrf.mxu1 }
 0x2f3   : > { %v4337_v63 = vmax.f32 %v4305_v23, 0.0  ;;  %v4303_v24 = vadd.f32 %v7470_v8, %v3949_v27  ;;  %v3952_v44 = vadd.f32 %v5545_v21, %v2690_v10 }
 0x2f4   : > { %v3825_v37 = vpop.f32.mrf.mxu1 }
 0x2f5   : > { %v5314_v1 = vpack.c.bf16 %v4337_v63, %v4337_v63  ;;  %v4335_v43 = vmax.f32 %v4303_v24, 0.0  ;;  %v4306_v58 = vadd.f32 %v7470_v8, %v3952_v44  ;;  %v3950_v22 = vadd.f32 %v3825_v37, %v2682_v4 }
 0x2f6   : > { %v5548_v7 = vpop.f32.mrf.mxu1 }
 0x2f7   : > { %v4338_v40 = vmax.f32 %v4306_v58, 0.0  ;;  %v4304_v19 = vadd.f32 %v7470_v8, %v3950_v22  ;;  %v3955_v20 = vadd.f32 %v5548_v7, %v2703_v56  ;;  %4612 = vrot.lane.b32.xlu0 %v5314_v1, %s5917_s12  ;;  %v5312_v55 = vpack.c.bf16 %v4335_v43, %v4335_v43 }
 0x2f8   : > { %v3838_v61 = vpop.f32.mrf.mxu1  ;;  %v2722_v58 = vadd.f32 %v5517_v18, %v7423_v32  ;;  %v2714_v7 = vadd.f32 %v2713_v5, %v7425_v13 }
 0x2f9   : > { %v5315_v48 = vpack.c.bf16 %v4338_v40, %v4338_v40  ;;  %v4336_v60 = vmax.f32 %v4304_v19, 0.0  ;;  %v4309_v11 = vadd.f32 %v7470_v8, %v3955_v20  ;;  %v3953_v35 = vadd.f32 %v3838_v61, %v2695_v46 }
 0x2fa   : > { %v5549_v33 = vpop.f32.mrf.mxu1 }
 0x2fb   : > { %v4341_v9 = vmax.f32 %v4309_v11, 0.0  ;;  %v4307_v26 = vadd.f32 %v7470_v8, %v3953_v35  ;;  %v3956_v31 = vadd.f32 %v5549_v33, %v2706_v29  ;;  %4608 = vrot.lane.b32.xlu0 %v5312_v55, %s5917_s12  ;;  %4614 = vrot.lane.b32.xlu1 %v5315_v48, %s5917_s12  ;;  %v5313_v54 = vpack.c.bf16 %v4336_v60, %v4336_v60 }
 0x2fc   : > { %v3841_v45 = vpop.f32.mrf.mxu1 }
 0x2fd   : > { %v5318_v10 = vpack.c.bf16 %v4341_v9, %v4341_v9  ;;  %v4339_v23 = vmax.f32 %v4307_v26, 0.0  ;;  %v4310_v27 = vadd.f32 %v7470_v8, %v3956_v31  ;;  %v3954_v21 = vadd.f32 %v3841_v45, %v2698_v12 }
 0x2fe   : > { %v5552_v4 = vpop.f32.mrf.mxu1 }
 0x2ff   : > { %v4342_v51 = vmax.f32 %v4310_v27, 0.0  ;;  %v4308_v63 = vadd.f32 %v7470_v8, %v3954_v21  ;;  %v3959_v24 = vadd.f32 %v5552_v4, %v2719_v28  ;;  %4610 = vrot.lane.b32.xlu1 %v5313_v54, %s5917_s12  ;;  %4620 = vrot.lane.b32.xlu0 %v5318_v10, %s5917_s12  ;;  %v5316_v44 = vpack.c.bf16 %v4339_v23, %v4339_v23 }
 0x300   : > { %v3854_v56 = vpop.f32.mrf.mxu1 }
 0x301   : > { %v5319_v62 = vpack.c.bf16 %v4342_v51, %v4342_v51  ;;  %v4340_v37 = vmax.f32 %v4308_v63, 0.0  ;;  %v4313_v1 = vadd.f32 %v7470_v8, %v3959_v24  ;;  %v3957_v43 = vadd.f32 %v3854_v56, %v2711_v42 }
 0x302   : > { %v5520_v22 = vpop.f32.mrf.mxu0  ;;  %v5553_v49 = vpop.f32.mrf.mxu1 }
 0x303   : > { %v4345_v46 = vmax.f32 %v4313_v1, 0.0  ;;  %v4311_v40 = vadd.f32 %v7470_v8, %v3957_v43  ;;  %4616 = vrot.lane.b32.xlu0 %v5316_v44, %s5917_s12  ;;  %4622 = vrot.lane.b32.xlu1 %v5319_v62, %s5917_s12  ;;  %v3960_v19 = vadd.f32 %v5553_v49, %v2722_v58  ;;  %v5317_v50 = vpack.c.bf16 %v4340_v37, %v4340_v37 }
 0x304   : > { %v2726_v20 = vpop.f32.mrf.mxu0  ;;  %v3857_v29 = vpop.f32.mrf.mxu1  ;;  %v2735_v61 = vadd.f32 %v5520_v22, %v7427_v52 }
 0x305   : > { %v5322_v55 = vpack.c.bf16 %v4345_v46, %v4345_v46  ;;  %v3958_v48 = vadd.f32 %v3857_v29, %v2714_v7  ;;  %v4343_v32 = vmax.f32 %v4311_v40, 0.0  ;;  %v4314_v60 = vadd.f32 %v7470_v8, %v3960_v19 }
 0x306   : > { %v5521_v11 = vpop.f32.mrf.mxu0  ;;  %v5556_v13 = vpop.f32.mrf.mxu1  ;;  %v2727_v35 = vadd.f32 %v2726_v20, %v7429_v39 }
 0x307   : > { %v4312_v33 = vadd.f32 %v7470_v8, %v3958_v48  ;;  %v3963_v12 = vadd.f32 %v5556_v13, %v2735_v61  ;;  %4618 = vrot.lane.b32.xlu1 %v5317_v50, %s5917_s12  ;;  %v4346_v9 = vmax.f32 %v4314_v60, 0.0  ;;  %4628 = vrot.lane.b32.xlu0 %v5322_v55, %s5917_s12  ;;  %v5320_v18 = vpack.c.bf16 %v4343_v32, %v4343_v32 }
 0x308   : > { %v2729_v26 = vpop.f32.mrf.mxu0  ;;  %v3870_v31 = vpop.f32.mrf.mxu1  ;;  %v2738_v10 = vadd.f32 %v5521_v11, %v7431_v17 }
 0x309   : > { %v4317_v52 = vadd.f32 %v7470_v8, %v3963_v12  ;;  %v3961_v28 = vadd.f32 %v3870_v31, %v2727_v35  ;;  %v5323_v54 = vpack.c.bf16 %v4346_v9, %v4346_v9  ;;  %v4344_v45 = vmax.f32 %v4312_v33, 0.0 }
 0x30a   : > { %v5524_v23 = vpop.f32.mrf.mxu0  ;;  %v5557_v39 = vpop.f32.mrf.mxu1  ;;  %v2730_v21 = vadd.f32 %v2729_v26, %v7433_v16 }
 0x30b   : > { %v4349_v27 = vmax.f32 %v4317_v52, 0.0  ;;  %v4315_v4 = vadd.f32 %v7470_v8, %v3961_v28  ;;  %v3964_v42 = vadd.f32 %v5557_v39, %v2738_v10  ;;  %4624 = vrot.lane.b32.xlu0 %v5320_v18, %s5917_s12  ;;  %4630 = vrot.lane.b32.xlu1 %v5323_v54, %s5917_s12  ;;  %v2751_v5 = vadd.f32 %v5524_v23, %v7435_v47 }
 0x30c   : > { %v2742_v51 = vpop.f32.mrf.mxu0  ;;  %v3873_v63 = vpop.f32.mrf.mxu1  ;;  %v5321_v56 = vpack.c.bf16 %v4344_v45, %v4344_v45 }
 0x30d   : > { %v5326_v24 = vpack.c.bf16 %v4349_v27, %v4349_v27  ;;  %v3962_v44 = vadd.f32 %v3873_v63, %v2730_v21  ;;  %v4347_v17 = vmax.f32 %v4315_v4, 0.0  ;;  %v4318_v62 = vadd.f32 %v7470_v8, %v3964_v42 }
 0x30e   : > { %v5525_v37 = vpop.f32.mrf.mxu0  ;;  %v5560_v1 = vpop.f32.mrf.mxu1  ;;  %v2743_v16 = vadd.f32 %v2742_v51, %v7437_v15 }
 0x30f   : > { %v4316_v43 = vadd.f32 %v7470_v8, %v3962_v44  ;;  %v3967_v58 = vadd.f32 %v5560_v1, %v2751_v5  ;;  %v4350_v22 = vmax.f32 %v4318_v62, 0.0  ;;  %4626 = vrot.lane.b32.xlu1 %v5321_v56, %s5917_s12  ;;  %4636 = vrot.lane.b32.xlu0 %v5326_v24, %s5917_s12  ;;  %v5324_v40 = vpack.c.bf16 %v4347_v17, %v4347_v17 }
 0x310   : > { %v2745_v49 = vpop.f32.mrf.mxu0  ;;  %v3886_v7 = vpop.f32.mrf.mxu1  ;;  %v2754_v29 = vadd.f32 %v5525_v37, %v7439_v6 }
 0x311   : > { %v4321_v47 = vadd.f32 %v7470_v8, %v3967_v58  ;;  %v3965_v46 = vadd.f32 %v3886_v7, %v2743_v16  ;;  %v5327_v19 = vpack.c.bf16 %v4350_v22, %v4350_v22  ;;  %v4348_v20 = vmax.f32 %v4316_v43, 0.0 }
 0x312   : > { %v5528_v50 = vpop.f32.mrf.mxu0  ;;  %v5561_v15 = vpop.f32.mrf.mxu1  ;;  %v2746_v61 = vadd.f32 %v2745_v49, %v7441_v2 }
 0x313   : > { %v4353_v55 = vmax.f32 %v4321_v47, 0.0  ;;  %v4319_v48 = vadd.f32 %v7470_v8, %v3965_v46  ;;  %v3968_v32 = vadd.f32 %v5561_v15, %v2754_v29  ;;  %4632 = vrot.lane.b32.xlu0 %v5324_v40, %s5917_s12  ;;  %4638 = vrot.lane.b32.xlu1 %v5327_v19, %s5917_s12  ;;  %v2767_v35 = vadd.f32 %v5528_v50, %v7443_v30 }
 0x314   : > { %v2758_v60 = vpop.f32.mrf.mxu0  ;;  %v3889_v11 = vpop.f32.mrf.mxu1  ;;  %v5325_v12 = vpack.c.bf16 %v4348_v20, %v4348_v20 }
 0x315   : > { %v5330_v13 = vpack.c.bf16 %v4353_v55, %v4353_v55  ;;  %v3966_v33 = vadd.f32 %v3889_v11, %v2746_v61  ;;  %v4351_v6 = vmax.f32 %v4319_v48, 0.0  ;;  %v4322_v9 = vadd.f32 %v7470_v8, %v3968_v32 }
 0x316   : > { %v5529_v26 = vpop.f32.mrf.mxu0  ;;  %v5564_v31 = vpop.f32.mrf.mxu1  ;;  %v2759_v2 = vadd.f32 %v2758_v60, %v7445_v34 }
 0x317   : > { %v4320_v52 = vadd.f32 %v7470_v8, %v3966_v33  ;;  %v3971_v28 = vadd.f32 %v5564_v31, %v2767_v35  ;;  %v4354_v18 = vmax.f32 %v4322_v9, 0.0  ;;  %4634 = vrot.lane.b32.xlu1 %v5325_v12, %s5917_s12  ;;  %4644 = vrot.lane.b32.xlu0 %v5330_v13, %s5917_s12  ;;  %v5328_v23 = vpack.c.bf16 %v4351_v6, %v4351_v6  ;;  %v7554_v31 = vld [vmem:[%s7758_s4] ss:$0 sm:$0xff] }
 0x318   : > { %v2761_v54 = vpop.f32.mrf.mxu0  ;;  %v3902_v45 = vpop.f32.mrf.mxu1  ;;  %v2770_v21 = vadd.f32 %v5529_v26, %v7447_v14 }
 0x319   : > { %v4325_v30 = vadd.f32 %v7470_v8, %v3971_v28  ;;  %v3969_v10 = vadd.f32 %v3902_v45, %v2759_v2  ;;  %v5331_v39 = vpack.c.bf16 %v4354_v18, %v4354_v18  ;;  %v4352_v27 = vmax.f32 %v4320_v52, 0.0 }
 0x31a   : > { %v5532_v4 = vpop.f32.mrf.mxu0  ;;  %v5565_v34 = vpop.f32.mrf.mxu1  ;;  %v2762_v51 = vadd.f32 %v2761_v54, %v7449_v41 }
 0x31b   : > { %v4357_v42 = vmax.f32 %v4325_v30, 0.0  ;;  %v4323_v63 = vadd.f32 %v7470_v8, %v3969_v10  ;;  %v3972_v24 = vadd.f32 %v5565_v34, %v2770_v21  ;;  %4640 = vrot.lane.b32.xlu0 %v5328_v23, %s5917_s12  ;;  %4646 = vrot.lane.b32.xlu1 %v5331_v39, %s5917_s12  ;;  %v2783_v17 = vadd.f32 %v5532_v4, %v7451_v38 }
 0x31c   : > { %v2774_v5 = vpop.f32.mrf.mxu0  ;;  %v3905_v44 = vpop.f32.mrf.mxu1  ;;  %v5329_v37 = vpack.c.bf16 %v4352_v27, %v4352_v27 }
 0x31d   : > { %v5334_v56 = vpack.c.bf16 %v4357_v42, %v4357_v42  ;;  %v3970_v62 = vadd.f32 %v3905_v44, %v2762_v51  ;;  %v4355_v14 = vmax.f32 %v4323_v63, 0.0  ;;  %v4326_v1 = vadd.f32 %v7470_v8, %v3972_v24 }
 0x31e   : > { %v5533_v16 = vpop.f32.mrf.mxu0  ;;  %v5568_v43 = vpop.f32.mrf.mxu1  ;;  %v2775_v41 = vadd.f32 %v2774_v5, %v7453_v59 }
 0x31f   : > { %v4324_v58 = vadd.f32 %v7470_v8, %v3970_v62  ;;  %v3975_v22 = vadd.f32 %v5568_v43, %v2783_v17  ;;  %v4358_v49 = vmax.f32 %v4326_v1, 0.0  ;;  %4642 = vrot.lane.b32.xlu1 %v5329_v37, %s5917_s12  ;;  %4652 = vrot.lane.b32.xlu0 %v5334_v56, %s5917_s12  ;;  %v5332_v40 = vpack.c.bf16 %v4355_v14, %v4355_v14 }
 0x320   : > { %v2777_v7 = vpop.f32.mrf.mxu0  ;;  %v3918_v38 = vpop.f32.mrf.mxu1  ;;  %v2786_v29 = vadd.f32 %v5533_v16, %v7455_v57 }
 0x321   : > { %v4329_v47 = vadd.f32 %v7470_v8, %v3975_v22  ;;  %v3973_v46 = vadd.f32 %v3918_v38, %v2775_v41  ;;  %v5335_v19 = vpack.c.bf16 %v4358_v49, %v4358_v49  ;;  %v4356_v20 = vmax.f32 %v4324_v58, 0.0 }
 0x322   : > { %v5536_v59 = vpop.f32.mrf.mxu0  ;;  %v5569_v50 = vpop.f32.mrf.mxu1  ;;  %v2778_v55 = vadd.f32 %v2777_v7, %v7457_v53 }
 0x323   : > { %v4361_v15 = vmax.f32 %v4329_v47, 0.0  ;;  %v4327_v61 = vadd.f32 %v7470_v8, %v3973_v46  ;;  %v3976_v48 = vadd.f32 %v5569_v50, %v2786_v29  ;;  %4648 = vrot.lane.b32.xlu0 %v5332_v40, %s5917_s12  ;;  %4654 = vrot.lane.b32.xlu1 %v5335_v19, %s5917_s12  ;;  %v5333_v35 = vpack.c.bf16 %v4356_v20, %v4356_v20 }
 0x324   : > { %v2790_v32 = vpop.f32.mrf.mxu0  ;;  %v3921_v60 = vpop.f32.mrf.mxu1  ;;  %v2799_v53 = vadd.f32 %v5536_v59, %v7459_v25 }
 0x325   : > { %v5338_v11 = vpack.c.bf16 %v4361_v15, %v4361_v15  ;;  %v3974_v13 = vadd.f32 %v3921_v60, %v2778_v55  ;;  %v4359_v57 = vmax.f32 %v4327_v61, 0.0  ;;  %v4330_v33 = vadd.f32 %v7470_v8, %v3976_v48 }
 0x326   : > { %v5537_v12 = vpop.f32.mrf.mxu0  ;;  %v2791_v2 = vadd.f32 %v2790_v32, %v7461_v0 }
 0x327   : > { %v4328_v6 = vadd.f32 %v7470_v8, %v3974_v13  ;;  %v4362_v9 = vmax.f32 %v4330_v33, 0.0  ;;  %4650 = vrot.lane.b32.xlu1 %v5333_v35, %s5917_s12  ;;  %4660 = vrot.lane.b32.xlu0 %v5338_v11, %s5917_s12  ;;  %v5336_v28 = vpack.c.bf16 %v4359_v57, %v4359_v57  ;;  %v2802_v23 = vadd.f32 %v5537_v12, %v7463_v3 }
 0x328   : > { %v2793_v26 = vpop.f32.mrf.mxu0 }
 0x329   : > { %v5572_v52 = vpop.f32.mrf.mxu1  ;;  %v5339_v18 = vpack.c.bf16 %v4362_v9, %v4362_v9  ;;  %v4360_v54 = vmax.f32 %v4328_v6, 0.0  ;;  %v2794_v0 = vadd.f32 %v2793_v26, %v7465_v36 }
 0x32a   : > { %v3979_v45 = vadd.f32 %v5572_v52, %v2799_v53  ;;  %v5578_v30 = vpop.f32.mrf.mxu0 }
 0x32b   : > { %v4130_v25 = vadd.f32 %v5578_v30, %v7554_v31  ;;  %v3934_v10 = vpop.f32.mrf.mxu1  ;;  %4656 = vrot.lane.b32.xlu0 %v5336_v28, %s5917_s12  ;;  %4662 = vrot.lane.b32.xlu1 %v5339_v18, %s5917_s12  ;;  %v5337_v42 = vpack.c.bf16 %v4360_v54, %v4360_v54 }
 0x32c   : > { %v3977_v39 = vadd.f32 %v3934_v10, %v2791_v2  ;;  %v4121_v27 = vpop.f32.mrf.mxu0  ;;  %v4333_v51 = vadd.f32 %v7470_v8, %v3979_v45 }
 0x32d   : > { %v4250_v21 = vmax.f32 %v4130_v25, 0.0  ;;  %v4122_v4 = vadd.f32 %v7554_v31, %v4121_v27  ;;  %v5573_v34 = vpop.f32.mrf.mxu1 }
 0x32e   : > { %v4331_v3 = vadd.f32 %v7470_v8, %v3977_v39  ;;  %v3980_v63 = vadd.f32 %v5573_v34, %v2802_v23  ;;  %v5579_v24 = vpop.f32.mrf.mxu0  ;;  %v4365_v43 = vmax.f32 %v4333_v51, 0.0 }
 0x32f   : > { %v5282_v5 = vpack.c.bf16 %v4250_v21, %v4250_v21  ;;  %v4248_v36 = vmax.f32 %v4122_v4, 0.0  ;;  %v4133_v44 = vadd.f32 %v5579_v24, %v7554_v31  ;;  %v3937_v56 = vpop.f32.mrf.mxu1  ;;  %4658 = vrot.lane.b32.xlu1 %v5337_v42, %s5917_s12 }
 0x330   : > { %v4363_v17 = vmax.f32 %v4331_v3, 0.0  ;;  %v3978_v62 = vadd.f32 %v3937_v56, %v2794_v0  ;;  %v4124_v37 = vpop.f32.mrf.mxu0  ;;  %v4334_v58 = vadd.f32 %v7470_v8, %v3980_v63 }
 0x331   : > { %4498 = vst.msk [vmem:[%s7568_s16 + $0x8] sm:$0xf] %vm4495_vm0, %v5282_v5  ;;  %v5280_v14 = vpack.c.bf16 %v4248_v36, %v4248_v36  ;;  %v4251_v1 = vmax.f32 %v4133_v44, 0.0  ;;  %v4125_v16 = vadd.f32 %v7554_v31, %v4124_v37 }
 0x332   : > { %v5340_v41 = vpack.c.bf16 %v4363_v17, %v4363_v17  ;;  %v4332_v22 = vadd.f32 %v7470_v8, %v3978_v62  ;;  %v5582_v49 = vpop.f32.mrf.mxu0  ;;  %v5342_v8 = vpack.c.bf16 %v4365_v43, %v4365_v43  ;;  %v4366_v59 = vmax.f32 %v4334_v58, 0.0 }
 0x333   : > { %4496 = vst.msk [vmem:[%s7568_s16] sm:$0xf] %vm4495_vm0, %v5280_v14  ;;  %v5283_v7 = vpack.c.bf16 %v4251_v1, %v4251_v1  ;;  %v4249_v38 = vmax.f32 %v4125_v16, 0.0  ;;  %v4146_v47 = vadd.f32 %v5582_v49, %v7554_v31 }
 0x334   : > { %v4364_v46 = vmax.f32 %v4332_v22, 0.0  ;;  %v4137_v40 = vpop.f32.mrf.mxu0  ;;  %4664 = vrot.lane.b32.xlu0 %v5340_v41, %s5917_s12  ;;  %v5343_v35 = vpack.c.bf16 %v4366_v59, %v4366_v59 }
 0x335   : > { %4499 = vst.msk [vmem:[%s7568_s16 + $0xc] sm:$0xf] %vm4495_vm0, %v5283_v7  ;;  %v5281_v19 = vpack.c.bf16 %v4249_v38, %v4249_v38  ;;  %v4254_v20 = vmax.f32 %v4146_v47, 0.0  ;;  %v4138_v29 = vadd.f32 %v7554_v31, %v4137_v40 }
 0x336   : > { %v5341_v50 = vpack.c.bf16 %v4364_v46, %v4364_v46  ;;  %v5583_v15 = vpop.f32.mrf.mxu0 }
 0x337   : > { %4497 = vst.msk [vmem:[%s7568_s16 + $0x4] sm:$0xf] %vm4495_vm0, %v5281_v19  ;;  %v5286_v55 = vpack.c.bf16 %v4254_v20, %v4254_v20  ;;  %v4252_v61 = vmax.f32 %v4138_v29, 0.0  ;;  %v4149_v48 = vadd.f32 %v5583_v15, %v7554_v31 }
 0x338   : > { %v4140_v32 = vpop.f32.mrf.mxu0  ;;  %4668 = vrot.lane.b32.xlu0 %v5342_v8, %s5917_s12  ;;  %4666 = vrot.lane.b32.xlu1 %v5341_v50, %s5917_s12 }
 0x339   : > { %4502 = vst.msk [vmem:[%s7568_s16 + $0x18] sm:$0xf] %vm4495_vm0, %v5286_v55  ;;  %v5284_v60 = vpack.c.bf16 %v4252_v61, %v4252_v61  ;;  %v4255_v11 = vmax.f32 %v4149_v48, 0.0  ;;  %v4141_v13 = vadd.f32 %v7554_v31, %v4140_v32 }
 0x33a   : > { %v5586_v57 = vpop.f32.mrf.mxu0 }
 0x33b   : > { %4500 = vst.msk [vmem:[%s7568_s16 + $0x10] sm:$0xf] %vm4495_vm0, %v5284_v60  ;;  %v5287_v33 = vpack.c.bf16 %v4255_v11, %v4255_v11  ;;  %v4253_v12 = vmax.f32 %v4141_v13, 0.0  ;;  %v4162_v6 = vadd.f32 %v5586_v57, %v7554_v31 }
 0x33c   : > { %v4153_v53 = vpop.f32.mrf.mxu0  ;;  %4670 = vrot.lane.b32.xlu1 %v5343_v35, %s5917_s12 }
 0x33d   : > { %4503 = vst.msk [vmem:[%s7568_s16 + $0x1c] sm:$0xf] %vm4495_vm0, %v5287_v33  ;;  %v5285_v9 = vpack.c.bf16 %v4253_v12, %v4253_v12  ;;  %v4258_v26 = vmax.f32 %v4162_v6, 0.0  ;;  %v4154_v2 = vadd.f32 %v7554_v31, %v4153_v53 }
 0x33e   : > { %v5587_v52 = vpop.f32.mrf.mxu0 }
 0x33f   : > { %4501 = vst.msk [vmem:[%s7568_s16 + $0x14] sm:$0xf] %vm4495_vm0, %v5285_v9  ;;  %v5290_v28 = vpack.c.bf16 %v4258_v26, %v4258_v26  ;;  %v4256_v18 = vmax.f32 %v4154_v2, 0.0  ;;  %v4165_v54 = vadd.f32 %v5587_v52, %v7554_v31 }
 0x340   : > { %v4156_v45 = vpop.f32.mrf.mxu0 }
 0x341   : > { %4506 = vst.msk [vmem:[%s7568_s16 + $0x28] sm:$0xf] %vm4495_vm0, %v5290_v28  ;;  %v5288_v30 = vpack.c.bf16 %v4256_v18, %v4256_v18  ;;  %v4259_v25 = vmax.f32 %v4165_v54, 0.0  ;;  %v4157_v10 = vadd.f32 %v7554_v31, %v4156_v45 }
 0x342   : > { %v5590_v23 = vpop.f32.mrf.mxu0 }
 0x343   : > { %4504 = vst.msk [vmem:[%s7568_s16 + $0x20] sm:$0xf] %vm4495_vm0, %v5288_v30  ;;  %v5291_v39 = vpack.c.bf16 %v4259_v25, %v4259_v25  ;;  %v4257_v27 = vmax.f32 %v4157_v10, 0.0  ;;  %v4178_v0 = vadd.f32 %v5590_v23, %v7554_v31 }
 0x344   : > { %v4169_v21 = vpop.f32.mrf.mxu0 }
 0x345   : > { %4507 = vst.msk [vmem:[%s7568_s16 + $0x2c] sm:$0xf] %vm4495_vm0, %v5291_v39  ;;  %v5289_v4 = vpack.c.bf16 %v4257_v27, %v4257_v27  ;;  %v4262_v34 = vmax.f32 %v4178_v0, 0.0  ;;  %v4170_v42 = vadd.f32 %v7554_v31, %v4169_v21 }
 0x346   : > { %v5591_v51 = vpop.f32.mrf.mxu0 }
 0x347   : > { %4505 = vst.msk [vmem:[%s7568_s16 + $0x24] sm:$0xf] %vm4495_vm0, %v5289_v4  ;;  %v5294_v3 = vpack.c.bf16 %v4262_v34, %v4262_v34  ;;  %v4260_v63 = vmax.f32 %v4170_v42, 0.0  ;;  %v4181_v24 = vadd.f32 %v5591_v51, %v7554_v31 }
 0x348   : > { %v4172_v5 = vpop.f32.mrf.mxu0 }
 0x349   : > { %4510 = vst.msk [vmem:[%s7568_s16 + $0x38] sm:$0xf] %vm4495_vm0, %v5294_v3  ;;  %v5292_v36 = vpack.c.bf16 %v4260_v63, %v4260_v63  ;;  %v4263_v44 = vmax.f32 %v4181_v24, 0.0  ;;  %v4173_v56 = vadd.f32 %v7554_v31, %v4172_v5 }
 0x34a   : > { %v5594_v17 = vpop.f32.mrf.mxu0 }
 0x34b   : > { %4508 = vst.msk [vmem:[%s7568_s16 + $0x30] sm:$0xf] %vm4495_vm0, %v5292_v36  ;;  %v5295_v62 = vpack.c.bf16 %v4263_v44, %v4263_v44  ;;  %v4261_v37 = vmax.f32 %v4173_v56, 0.0  ;;  %v4194_v14 = vadd.f32 %v5594_v17, %v7554_v31 }
 0x34c   : > { %v4185_v1 = vpop.f32.mrf.mxu0 }
 0x34d   : > { %4511 = vst.msk [vmem:[%s7568_s16 + $0x3c] sm:$0xf] %vm4495_vm0, %v5295_v62  ;;  %v5293_v16 = vpack.c.bf16 %v4261_v37, %v4261_v37  ;;  %v4266_v43 = vmax.f32 %v4194_v14, 0.0  ;;  %v4186_v41 = vadd.f32 %v7554_v31, %v4185_v1 }
 0x34e   : > { %v5595_v58 = vpop.f32.mrf.mxu0 }
 0x34f   : > { %4509 = vst.msk [vmem:[%s7568_s16 + $0x34] sm:$0xf] %vm4495_vm0, %v5293_v16  ;;  %v5298_v22 = vpack.c.bf16 %v4266_v43, %v4266_v43  ;;  %v4264_v49 = vmax.f32 %v4186_v41, 0.0  ;;  %v4197_v7 = vadd.f32 %v5595_v58, %v7554_v31 }
 0x350   : > { %v4188_v38 = vpop.f32.mrf.mxu0 }
 0x351   : > { %4514 = vst.msk [vmem:[%s7568_s16 + $0x48] sm:$0xf] %vm4495_vm0, %v5298_v22  ;;  %v5296_v47 = vpack.c.bf16 %v4264_v49, %v4264_v49  ;;  %v4267_v46 = vmax.f32 %v4197_v7, 0.0  ;;  %v4189_v40 = vadd.f32 %v7554_v31, %v4188_v38 }
 0x352   : > { %v5598_v19 = vpop.f32.mrf.mxu0 }
 0x353   : > { %4512 = vst.msk [vmem:[%s7568_s16 + $0x40] sm:$0xf] %vm4495_vm0, %v5296_v47  ;;  %v5299_v20 = vpack.c.bf16 %v4267_v46, %v4267_v46  ;;  %v4265_v29 = vmax.f32 %v4189_v40, 0.0  ;;  %v4210_v8 = vadd.f32 %v5598_v19, %v7554_v31 }
 0x354   : > { %v4201_v59 = vpop.f32.mrf.mxu0 }
 0x355   : > { %4515 = vst.msk [vmem:[%s7568_s16 + $0x4c] sm:$0xf] %vm4495_vm0, %v5299_v20  ;;  %v5297_v50 = vpack.c.bf16 %v4265_v29, %v4265_v29  ;;  %v4270_v15 = vmax.f32 %v4210_v8, 0.0  ;;  %v4202_v55 = vadd.f32 %v7554_v31, %v4201_v59 }
 0x356   : > { %v5599_v61 = vpop.f32.mrf.mxu0 }
 0x357   : > { %4513 = vst.msk [vmem:[%s7568_s16 + $0x44] sm:$0xf] %vm4495_vm0, %v5297_v50  ;;  %v5302_v48 = vpack.c.bf16 %v4270_v15, %v4270_v15  ;;  %v4268_v32 = vmax.f32 %v4202_v55, 0.0  ;;  %v4213_v60 = vadd.f32 %v5599_v61, %v7554_v31 }
 0x358   : > { %v4204_v11 = vpop.f32.mrf.mxu0 }
 0x359   : > { %4518 = vst.msk [vmem:[%s7568_s16 + $0x58] sm:$0xf] %vm4495_vm0, %v5302_v48  ;;  %v5300_v13 = vpack.c.bf16 %v4268_v32, %v4268_v32  ;;  %v4271_v35 = vmax.f32 %v4213_v60, 0.0  ;;  %v4205_v57 = vadd.f32 %v7554_v31, %v4204_v11 }
 0x35a   : > { %v5602_v33 = vpop.f32.mrf.mxu0 }
 0x35b   : > { %4516 = vst.msk [vmem:[%s7568_s16 + $0x50] sm:$0xf] %vm4495_vm0, %v5300_v13  ;;  %v5303_v12 = vpack.c.bf16 %v4271_v35, %v4271_v35  ;;  %v4269_v6 = vmax.f32 %v4205_v57, 0.0  ;;  %v4226_v53 = vadd.f32 %v5602_v33, %v7554_v31 }
 0x35c   : > { %v4217_v9 = vpop.f32.mrf.mxu0 }
 0x35d   : > { %4519 = vst.msk [vmem:[%s7568_s16 + $0x5c] sm:$0xf] %vm4495_vm0, %v5303_v12  ;;  %v5301_v26 = vpack.c.bf16 %v4269_v6, %v4269_v6  ;;  %v4274_v2 = vmax.f32 %v4226_v53, 0.0  ;;  %v4218_v52 = vadd.f32 %v7554_v31, %v4217_v9 }
 0x35e   : > { %v5603_v28 = vpop.f32.mrf.mxu0 }
 0x35f   : > { %4517 = vst.msk [vmem:[%s7568_s16 + $0x54] sm:$0xf] %vm4495_vm0, %v5301_v26  ;;  %v5306_v18 = vpack.c.bf16 %v4274_v2, %v4274_v2  ;;  %v4272_v54 = vmax.f32 %v4218_v52, 0.0  ;;  %v4229_v45 = vadd.f32 %v5603_v28, %v7554_v31 }
 0x360   : > { %v4220_v30 = vpop.f32.mrf.mxu0 }
 0x361   : > { %4522 = vst.msk [vmem:[%s7568_s16 + $0x68] sm:$0xf] %vm4495_vm0, %v5306_v18  ;;  %v5304_v25 = vpack.c.bf16 %v4272_v54, %v4272_v54  ;;  %v4275_v10 = vmax.f32 %v4229_v45, 0.0  ;;  %v4221_v23 = vadd.f32 %v7554_v31, %v4220_v30 }
 0x362   : > { %v5606_v39 = vpop.f32.mrf.mxu0 }
 0x363   : > { %4520 = vst.msk [vmem:[%s7568_s16 + $0x60] sm:$0xf] %vm4495_vm0, %v5304_v25  ;;  %v5307_v27 = vpack.c.bf16 %v4275_v10, %v4275_v10  ;;  %v4273_v0 = vmax.f32 %v4221_v23, 0.0  ;;  %v4242_v21 = vadd.f32 %v5606_v39, %v7554_v31 }
 0x364   : > { %v4233_v4 = vpop.f32.mrf.mxu0 }
 0x365   : > { %4523 = vst.msk [vmem:[%s7568_s16 + $0x6c] sm:$0xf] %vm4495_vm0, %v5307_v27  ;;  %v5305_v34 = vpack.c.bf16 %v4273_v0, %v4273_v0  ;;  %v4278_v42 = vmax.f32 %v4242_v21, 0.0  ;;  %v4234_v51 = vadd.f32 %v7554_v31, %v4233_v4 }
 0x366   : > { %v5607_v3 = vpop.f32.mrf.mxu0 }
 0x367   : > { %4521 = vst.msk [vmem:[%s7568_s16 + $0x64] sm:$0xf] %vm4495_vm0, %v5305_v34  ;;  %v5310_v63 = vpack.c.bf16 %v4278_v42, %v4278_v42  ;;  %v4276_v24 = vmax.f32 %v4234_v51, 0.0  ;;  %v4245_v5 = vadd.f32 %v5607_v3, %v7554_v31 }
 0x368   : > { %v4236_v36 = vpop.f32.mrf.mxu0 }
 0x369   : > { %4526 = vst.msk [vmem:[%s7568_s16 + $0x78] sm:$0xf] %vm4495_vm0, %v5310_v63  ;;  %v5308_v44 = vpack.c.bf16 %v4276_v24, %v4276_v24  ;;  %v4279_v56 = vmax.f32 %v4245_v5, 0.0  ;;  %v4237_v17 = vadd.f32 %v7554_v31, %v4236_v36  ;;  %v4613_v62 = vpop.permute.xlu0 %4612 }
 0x36a   : > { %4707 = vst.msk [vmem:[%s7568_s16 + $0x8] sm:$0xf] %vm4704_vm3, %v4613_v62 }
 0x36b   : > { %4524 = vst.msk [vmem:[%s7568_s16 + $0x70] sm:$0xf] %vm4495_vm0, %v5308_v44  ;;  %v5311_v37 = vpack.c.bf16 %v4279_v56, %v4279_v56  ;;  %v4277_v14 = vmax.f32 %v4237_v17, 0.0 }
 0x36d   : > { %4527 = vst.msk [vmem:[%s7568_s16 + $0x7c] sm:$0xf] %vm4495_vm0, %v5311_v37  ;;  %v5309_v1 = vpack.c.bf16 %v4277_v14, %v4277_v14  ;;  %v4615_v16 = vpop.permute.xlu1 %4614  ;;  %v4609_v43 = vpop.permute.xlu0 %4608 }
 0x36e   : > { %4708 = vst.msk [vmem:[%s7568_s16 + $0xc] sm:$0xf] %vm4704_vm3, %v4615_v16  ;;  %4705 = vst.msk [vmem:[%s7568_s16] sm:$0xf] %vm4704_vm3, %v4609_v43 }
 0x36f   : > { %4525 = vst.msk [vmem:[%s7568_s16 + $0x74] sm:$0xf] %vm4495_vm0, %v5309_v1 }
 0x371   : > { %v4611_v31 = vpop.permute.xlu1 %4610  ;;  %v4621_v41 = vpop.permute.xlu0 %4620 }
 0x372   : > { %4706 = vst.msk [vmem:[%s7568_s16 + $0x4] sm:$0xf] %vm4704_vm3, %v4611_v31  ;;  %4711 = vst.msk [vmem:[%s7568_s16 + $0x18] sm:$0xf] %vm4704_vm3, %v4621_v41 }
 0x375   : > { %v4623_v58 = vpop.permute.xlu1 %4622  ;;  %v4617_v22 = vpop.permute.xlu0 %4616 }
 0x376   : > { %4712 = vst.msk [vmem:[%s7568_s16 + $0x1c] sm:$0xf] %vm4704_vm3, %v4623_v58  ;;  %4709 = vst.msk [vmem:[%s7568_s16 + $0x10] sm:$0xf] %vm4704_vm3, %v4617_v22 }
 0x379   : > { %v4619_v49 = vpop.permute.xlu1 %4618  ;;  %v4629_v7 = vpop.permute.xlu0 %4628 }
 0x37a   : > { %4710 = vst.msk [vmem:[%s7568_s16 + $0x14] sm:$0xf] %vm4704_vm3, %v4619_v49  ;;  %4715 = vst.msk [vmem:[%s7568_s16 + $0x28] sm:$0xf] %vm4704_vm3, %v4629_v7 }
 0x37d   : > { %v4631_v38 = vpop.permute.xlu1 %4630  ;;  %v4625_v47 = vpop.permute.xlu0 %4624 }
 0x37e   : > { %4716 = vst.msk [vmem:[%s7568_s16 + $0x2c] sm:$0xf] %vm4704_vm3, %v4631_v38  ;;  %4713 = vst.msk [vmem:[%s7568_s16 + $0x20] sm:$0xf] %vm4704_vm3, %v4625_v47 }
 0x381   : > { %v4627_v46 = vpop.permute.xlu1 %4626  ;;  %v4637_v40 = vpop.permute.xlu0 %4636 }
 0x382   : > { %4714 = vst.msk [vmem:[%s7568_s16 + $0x24] sm:$0xf] %vm4704_vm3, %v4627_v46  ;;  %4719 = vst.msk [vmem:[%s7568_s16 + $0x38] sm:$0xf] %vm4704_vm3, %v4637_v40 }
 0x385   : > { %v4639_v19 = vpop.permute.xlu1 %4638  ;;  %v4633_v20 = vpop.permute.xlu0 %4632 }
 0x386   : > { %4720 = vst.msk [vmem:[%s7568_s16 + $0x3c] sm:$0xf] %vm4704_vm3, %v4639_v19  ;;  %4717 = vst.msk [vmem:[%s7568_s16 + $0x30] sm:$0xf] %vm4704_vm3, %v4633_v20 }
 0x389   : > { %v4635_v29 = vpop.permute.xlu1 %4634  ;;  %v4645_v8 = vpop.permute.xlu0 %4644 }
 0x38a   : > { %4718 = vst.msk [vmem:[%s7568_s16 + $0x34] sm:$0xf] %vm4704_vm3, %v4635_v29  ;;  %4723 = vst.msk [vmem:[%s7568_s16 + $0x48] sm:$0xf] %vm4704_vm3, %v4645_v8 }
 0x38d   : > { %v4647_v59 = vpop.permute.xlu1 %4646  ;;  %v4641_v50 = vpop.permute.xlu0 %4640 }
 0x38e   : > { %4724 = vst.msk [vmem:[%s7568_s16 + $0x4c] sm:$0xf] %vm4704_vm3, %v4647_v59  ;;  %4721 = vst.msk [vmem:[%s7568_s16 + $0x40] sm:$0xf] %vm4704_vm3, %v4641_v50 }
 0x391   : > { %v4643_v15 = vpop.permute.xlu1 %4642  ;;  %v4653_v55 = vpop.permute.xlu0 %4652 }
 0x392   : > { %4722 = vst.msk [vmem:[%s7568_s16 + $0x44] sm:$0xf] %vm4704_vm3, %v4643_v15  ;;  %4727 = vst.msk [vmem:[%s7568_s16 + $0x58] sm:$0xf] %vm4704_vm3, %v4653_v55 }
 0x395   : > { %v4655_v61 = vpop.permute.xlu1 %4654  ;;  %v4649_v48 = vpop.permute.xlu0 %4648 }
 0x396   : > { %4728 = vst.msk [vmem:[%s7568_s16 + $0x5c] sm:$0xf] %vm4704_vm3, %v4655_v61  ;;  %4725 = vst.msk [vmem:[%s7568_s16 + $0x50] sm:$0xf] %vm4704_vm3, %v4649_v48 }
 0x399   : > { %v4651_v32 = vpop.permute.xlu1 %4650  ;;  %v4661_v60 = vpop.permute.xlu0 %4660 }
 0x39a   : > { %4726 = vst.msk [vmem:[%s7568_s16 + $0x54] sm:$0xf] %vm4704_vm3, %v4651_v32  ;;  %4731 = vst.msk [vmem:[%s7568_s16 + $0x68] sm:$0xf] %vm4704_vm3, %v4661_v60 }
 0x39d   : > { %v4663_v11 = vpop.permute.xlu1 %4662  ;;  %v4657_v13 = vpop.permute.xlu0 %4656 }
 0x39e   : > { %4732 = vst.msk [vmem:[%s7568_s16 + $0x6c] sm:$0xf] %vm4704_vm3, %v4663_v11  ;;  %4729 = vst.msk [vmem:[%s7568_s16 + $0x60] sm:$0xf] %vm4704_vm3, %v4657_v13 }
 0x3a1   : > { %v4659_v35 = vpop.permute.xlu1 %4658 }
 0x3a2   : > { %4730 = vst.msk [vmem:[%s7568_s16 + $0x64] sm:$0xf] %vm4704_vm3, %v4659_v35 }
 0x3a6   : > { %v4665_v57 = vpop.permute.xlu0 %4664 }
 0x3a7   : > { %4733 = vst.msk [vmem:[%s7568_s16 + $0x70] sm:$0xf] %vm4704_vm3, %v4665_v57 }
 0x3aa   : > { %v4667_v33 = vpop.permute.xlu1 %4666  ;;  %v4669_v12 = vpop.permute.xlu0 %4668 }
 0x3ab   : > { %4734 = vst.msk [vmem:[%s7568_s16 + $0x74] sm:$0xf] %vm4704_vm3, %v4667_v33  ;;  %4735 = vst.msk [vmem:[%s7568_s16 + $0x78] sm:$0xf] %vm4704_vm3, %v4669_v12 }
 0x3ae   : > { %v4671_v6 = vpop.permute.xlu1 %4670 }
 0x3af   : > { %4736 = vst.msk [vmem:[%s7568_s16 + $0x7c] sm:$0xf] %vm4704_vm3, %v4671_v6 }
 0x3b0 PF: > { %s20_s29 = sadd.s32 1, %s5911_s29   ;;  %s7814_s24 = smov %s5895_s25 }
 0x3b1   : > { %p17_p8 = scmp.ge.s32.totalorder %s20_s29, 4   ;;  %s7815_s25 = smov %s5899_s26 }
 0x3b2   : > { %s7816_s26 = smov %s6008_s13  ;;  %s7817_s27 = smov %s5907_s28 }
 0x3b3   : > { %s7818_s28 = smov %s7820_s8  ;;  %19 = sbr.rel (!%p17_p8) target bundleno = 4 (0x4), region = 97 }
 0x3b8   :  { %4767 = vsyncpa [#allocation4], 1 }
 0x3b9   :  { %4769 = vsyncpa [#allocation4 + $0x1], 1 }

</bundles_post_ra>
